<compile_context>
chip_gen: v7x
topology: tpu7x:2x2x1
jax: 0.10.0
libtpu: 0.0.40
codegen_flags: <defaults>
</compile_context>

<pallas_src>
import random

import jax
import jax.numpy as jnp
from jax.experimental import pallas as pl
from jax.experimental.pallas import tpu as pltpu

C_IN = 128   # x channels
C_OUT = 128
H = 28       # x dim 2 ("a")
W = 28       # x dim 3 ("b")
KH = 3
K = KH * C_IN            # 384
HW = H * W               # 784

# Deterministic stand-in for the module's per-instantiation random shift_direction.
# TODO(synk): shift_direction is frozen at import time (seed 0 -> +1); the PyTorch
# module re-randomizes it per instantiation.
random.seed(0)
SHIFT = int((random.random() > 0.5) * 2 - 1)   # -> +1


def _conv_combine_kernel(xcol_ref, w2_ref, w1_ref, o_ref):
    # xcol_ref : (K, HW)    bf16 im2col slab; row = kh*C_IN + c, col = b*H + a
    # w2_ref   : (C_OUT, K) bf16
    # w1_ref   : (C_OUT, 2) f32
    # o_ref    : (C_OUT, HW) f32
    #
    # One K=384 MXU matmul, f32 accumulation (bf16 operands, lane-aligned RHS).
    t4 = jnp.dot(w2_ref[...], xcol_ref[...],
                 preferred_element_type=jnp.float32)        # (128, 784) f32
    # t4[:, b*H + a] = t4_spec[oc, b, a] (on the a-pre-rolled input), b = 0..W-1.

    w1_0 = w1_ref[:, 0:1]                                    # (128, 1)
    w1_1 = w1_ref[:, 1:2]
    if SHIFT == 1:
        # out[:, b*H+a] = W1[:,1]*t4[(b-1)%W] + W1[:,0]*t4[b]
        # circular shift of the b-groups == rotate of the flat 784 axis by +H (XLU).
        t4_rot = pltpu.roll(t4, H, axis=1)
        out = w1_1 * t4_rot + w1_0 * t4
    else:
        # out[:, b*H+a] = W1[:,1]*t4[b] + W1[:,0]*t4[(b+1)%W]
        t4_rot = pltpu.roll(t4, -H, axis=1)
        out = w1_1 * t4 + w1_0 * t4_rot
    o_ref[...] = out


@jax.jit
def forward(x, w1, w2):
    """x: (1, 128, 28, 28) NCHW; w1: (128, 2); w2: (128, 3, 128) -> (1, 128, 28, 28)."""
    x0 = x[0].astype(jnp.float32)                     # (C, H, W) = (c, a, b)
    xr = jnp.roll(x0, SHIFT, axis=1)                  # fold the final roll along 'a'
    xt = jnp.transpose(xr, (0, 2, 1))                 # (c, b, a) -> b-major columns
    xpad = jnp.pad(xt, ((0, 0), (1, 1), (0, 0)))      # zero pad along b -> (c, W+2, a)
    # Lane-aligned im2col slab: tap kh is the (c, W, H) window at padded-b offset kh.
    taps = jnp.stack([xpad[:, kh:kh + W, :] for kh in range(KH)], axis=0)  # (3, c, b, a)
    xcol = taps.reshape(K, HW).astype(jnp.bfloat16)   # row = kh*C_IN + c, col = b*H + a

    w2m = w2.reshape(C_OUT, K).astype(jnp.bfloat16)   # [oc, kh*C + c]
    w1f = w1.astype(jnp.float32)

    out = pl.pallas_call(
        _conv_combine_kernel,
        out_shape=jax.ShapeDtypeStruct((C_OUT, HW), jnp.float32),
        grid_spec=pltpu.PrefetchScalarGridSpec(
            num_scalar_prefetch=0,
            grid=(1,),                                # whole problem in one step (<2 MiB VMEM)
            in_specs=[
                pl.BlockSpec((K, HW), lambda i: (0, 0)),
                pl.BlockSpec((C_OUT, K), lambda i: (0, 0)),
                pl.BlockSpec((C_OUT, 2), lambda i: (0, 0)),
            ],
            out_specs=pl.BlockSpec((C_OUT, HW), lambda i: (0, 0)),
        ),
        compiler_params=pltpu.CompilerParams(
            dimension_semantics=("arbitrary",)),
    )(xcol, w2m, w1f)

    # out[oc, b*H + a] -> (1, oc, b, a); pure reshape, no transpose pass.
    return out.reshape(1, C_OUT, W, H)


def reference(x, w1, w2, shift):
    """Pure-JAX transcription of the PyTorch forward (for verification)."""
    t3 = jnp.einsum('ikjl->ilkj', x)                          # (1, 28, 128, 28)
    t3 = t3.reshape(1, 1, 28, 3584)
    t3p = jnp.pad(t3, ((0, 0), (0, 0), (1, 1), (0, 0)))       # unfold (3,1), pad (1,0)
    cols = jnp.stack([t3p[0, 0, kh:kh + 28, :] for kh in range(3)], axis=0)
    t3u = cols.reshape(1, 3, 28, 128, 28)
    t4 = jnp.einsum('lknjm,ikj->linm', t3u, w2, precision='highest')
    t5 = jnp.einsum('kiml,ij->kimjl', t4, w1, precision='highest')
    t6 = t5.reshape(1, 128, 56, 28)
    t6 = jnp.roll(t6, shift, axis=2)
    t6 = t6.reshape(1, 128, 28, 2, 28).sum(axis=3)
    t7 = jnp.roll(t6, shift, axis=3)
    return t7


if __name__ == "__main__":
    key = jax.random.PRNGKey(0)
    kx, k1, k2 = jax.random.split(key, 3)
    # shapes are fixed by the module's hard-coded reshapes:
    # x (1,128,28,28), W1 (128,2), W2 (128,3,128)
    x = jax.random.normal(kx, (1, C_IN, H, W), dtype=jnp.float32)
    w1 = jax.random.normal(k1, (C_OUT, 2), dtype=jnp.float32)
    w2 = jax.random.normal(k2, (C_OUT, KH, C_IN), dtype=jnp.float32)

    y = jax.block_until_ready(forward(x, w1, w2))
    y_ref = jax.block_until_ready(reference(x, w1, w2, SHIFT))

    assert y.shape == (1, C_OUT, W, H), y.shape
    # Tolerance sized for bf16 MXU operands (f32 accumulation) vs. a HIGHEST-precision
    # reference over a 384-term contraction: compare relative to the output scale.
    scale = float(jnp.max(jnp.abs(y_ref)))
    max_err = float(jnp.max(jnp.abs(y - y_ref)))
    rel_l2 = float(jnp.linalg.norm((y - y_ref).ravel()) /
                   jnp.linalg.norm(y_ref.ravel()))
    if not (max_err <= 1e-2 * scale and rel_l2 <= 5e-3):
        raise SystemExit(
            f"mismatch vs reference: max_abs_err={max_err:e} "
            f"(ref scale {scale:e}), rel_l2={rel_l2:e}")
    print("KERNEL_OK")
</pallas_src>

<mosaic_0001>
module attributes {stable_mosaic.version = 11 : i64} {
  func.func @_conv_combine_kernel(%arg0: i32, %arg1: memref<384x784xbf16, #tpu.memory_space<vmem>>, %arg2: memref<128x384xbf16, #tpu.memory_space<vmem>>, %arg3: memref<128x2xf32, #tpu.memory_space<vmem>>, %arg4: memref<128x784xf32, #tpu.memory_space<vmem>>) attributes {dimension_semantics = [#tpu.dimension_semantics<arbitrary>], iteration_bounds = array<i64: 1>, scalar_prefetch = 0 : i64, scratch_operands = 0 : i64, tpu.core_type = #tpu.core_type<tc>, window_params = [{pipeline_mode = #tpu.pipeline_mode<synchronous>, transform_indices = @transform_0, window_bounds = array<i64: 384, 784>}, {pipeline_mode = #tpu.pipeline_mode<synchronous>, transform_indices = @transform_1, window_bounds = array<i64: 128, 384>}, {pipeline_mode = #tpu.pipeline_mode<synchronous>, transform_indices = @transform_2, window_bounds = array<i64: 128, 2>}, {pipeline_mode = #tpu.pipeline_mode<synchronous>, transform_indices = @transform_3, window_bounds = array<i64: 128, 784>}]} {
    %c0 = arith.constant 0 : index
    %c0_0 = arith.constant 0 : index
    %0 = vector.load %arg2[%c0, %c0_0] : memref<128x384xbf16, #tpu.memory_space<vmem>>, vector<128x384xbf16>
    %c0_1 = arith.constant 0 : index
    %c0_2 = arith.constant 0 : index
    %1 = vector.load %arg1[%c0_1, %c0_2] : memref<384x784xbf16, #tpu.memory_space<vmem>>, vector<384x784xbf16>
    %cst = arith.constant dense<0.000000e+00> : vector<128x784xf32>
    %2 = tpu.matmul %0, %1, %cst {dimension_numbers = #tpu.dot_dimension_numbers<[1], [0], [0], [1], [0, 0, 1, 1], [], []>} : vector<128x384xbf16>, vector<384x784xbf16>, vector<128x784xf32> -> vector<128x784xf32>
    %c0_3 = arith.constant 0 : index
    %c0_4 = arith.constant 0 : index
    %3 = vector.load %arg3[%c0_3, %c0_4] : memref<128x2xf32, #tpu.memory_space<vmem>>, vector<128x1xf32>
    %c0_5 = arith.constant 0 : index
    %c1 = arith.constant 1 : index
    %4 = vector.load %arg3[%c0_5, %c1] : memref<128x2xf32, #tpu.memory_space<vmem>>, vector<128x1xf32>
    %c28_i32 = arith.constant 28 : i32
    %5 = tpu.dynamic_rotate %2 by %c28_i32 dim 1 : vector<128x784xf32>, i32 -> vector<128x784xf32>
    %6 = vector.broadcast %4 : vector<128x1xf32> to vector<128x784xf32>
    %7 = arith.mulf %6, %5 : vector<128x784xf32>
    %8 = vector.broadcast %3 : vector<128x1xf32> to vector<128x784xf32>
    %9 = arith.mulf %8, %2 : vector<128x784xf32>
    %10 = arith.addf %7, %9 : vector<128x784xf32>
    %c0_6 = arith.constant 0 : index
    %c0_7 = arith.constant 0 : index
    %11 = vector.load %arg4[%c0_6, %c0_7] : memref<128x784xf32, #tpu.memory_space<vmem>>, vector<128x784xf32>
    tpu.vector_store %arg4[%c0_6, %c0_7], %10 {strides = array<i32>} : memref<128x784xf32, #tpu.memory_space<vmem>>, vector<128x784xf32>,
    return
  }
  func.func @transform_0(%arg0: i32) -> (i32, i32) {
    %c0_i32 = arith.constant 0 : i32
    %c0_i32_0 = arith.constant 0 : i32
    %c0_i32_1 = arith.constant 0 : i32
    return %c0_i32, %c0_i32_0 : i32, i32
  }
  func.func @transform_1(%arg0: i32) -> (i32, i32) {
    %c0_i32 = arith.constant 0 : i32
    %c0_i32_0 = arith.constant 0 : i32
    %c0_i32_1 = arith.constant 0 : i32
    return %c0_i32, %c0_i32_0 : i32, i32
  }
  func.func @transform_2(%arg0: i32) -> (i32, i32) {
    %c0_i32 = arith.constant 0 : i32
    %c0_i32_0 = arith.constant 0 : i32
    %c0_i32_1 = arith.constant 0 : i32
    return %c0_i32, %c0_i32_0 : i32, i32
  }
  func.func @transform_3(%arg0: i32) -> (i32, i32) {
    %c0_i32 = arith.constant 0 : i32
    %c0_i32_0 = arith.constant 0 : i32
    %c0_i32_1 = arith.constant 0 : i32
    return %c0_i32, %c0_i32_0 : i32, i32
  }
}

</mosaic_0001>

<bundles_post_ra>
// kernel: forward.1
= control target key start
LH: loop header
LB: loop body
LE: loop exit
PB: predicated region body
PF: predicated region fallthrough
CT: control target
= control target key end

     0   :  { %v4936_v38 = vmov 1   ;;  %s4939_s16 = smov 116   ;;  %vm2119_vm0 = vcmask 1047680   ;;  %vm3176_vm1 = vcmask 949248   ;;  %s4940_s17 = smov 12   ;;  %vm3913_vm2 = vcmask 97280   ;;  %s8591_s0 = inlined_call_operand.vmem [shape: bf16[384,784], index: 0, kind: input, shape index: {}]   ;;  %s8592_s1 = inlined_call_operand.vmem [shape: bf16[128,384], index: 1, kind: input, shape index: {}]   ;;  %s8593_s2 = inlined_call_operand.vmem [shape: f32[128,2], index: 2, kind: input, shape index: {}]   ;;  %s8594_s3 = inlined_call_operand.vmem [shape: f32[128,784], index: 3, kind: output, shape index: {}]  }
   0x1   :  { %v4664_v0 = vld [vmem:[%s8591_s0 + $0x4] ss:$28 sps:$4 sm:$0xff]   ;;  %v4666_v1 = vld [vmem:[%s8591_s0 + $0xc] ss:$28 sps:$4 sm:$0xff]   ;;  %v4670_v4 = vld [vmem:[%s8591_s0 + $0x3c] ss:$28 sps:$4 sm:$0xff]   ;;  %4661 = vset.pattern.permute.xlu1 %v4936_v38  ;;  %4660 = vset.pattern.permute.xlu0 %v4936_v38 }
   0x2   :  { %1231 = vmatprep.subr.bf16.mxu0 %v4664_v0  ;;  %v4668_v2 = vld [vmem:[%s8591_s0] ss:$28 sps:$4 sm:$0xff]   ;;  %v4669_v3 = vld [vmem:[%s8591_s0 + $0x8] ss:$28 sps:$4 sm:$0xff]   ;;  %1457 = vmatprep.subr.bf16.mxu1 %v4666_v1  ;;  %v4674_v6 = vld [vmem:[%s8591_s0 + $0x38] ss:$28 sps:$4 sm:$0xff]  }
   0x3   :  { %1232 = vmatpush1.bf16.msra.mxu0 %v4668_v2  ;;  %1458 = vmatpush1.bf16.msra.mxu1 %v4669_v3  ;;  %v4672_v5 = vld [vmem:[%s8591_s0 + $0x44] ss:$28 sps:$4 sm:$0xff]   ;;  %v4676_v8 = vld [vmem:[%s8591_s0 + $0x74] ss:$28 sps:$4 sm:$0xff]   ;;  %v4678_v9 = vld [vmem:[%s8591_s0 + $0x7c] ss:$28 sps:$4 sm:$0xff]  }
   0x4   :  { %1233 = vmatprep.subr.bf16.mxu0 %v4670_v4  ;;  %v4675_v7 = vld [vmem:[%s8591_s0 + $0x40] ss:$28 sps:$4 sm:$0xff]   ;;  %1459 = vmatprep.subr.bf16.mxu1 %v4672_v5  ;;  %v4680_v10 = vld [vmem:[%s8591_s0 + $0x70] ss:$28 sps:$4 sm:$0xff]   ;;  %v4681_v11 = vld [vmem:[%s8591_s0 + $0x78] ss:$28 sps:$4 sm:$0xff]  }
   0x5   :  { %v4682_v12 = vld [vmem:[%s8591_s0 + $0xac] ss:$28 sps:$4 sm:$0xff]   ;;  %v4684_v13 = vld [vmem:[%s8591_s0 + $0xb4] ss:$28 sps:$4 sm:$0xff]   ;;  %v4688_v16 = vld [vmem:[%s8591_s0 + $0xe4] ss:$28 sps:$4 sm:$0xff]  }
   0x6   :  { %v4686_v14 = vld [vmem:[%s8591_s0 + $0xa8] ss:$28 sps:$4 sm:$0xff]   ;;  %v4687_v15 = vld [vmem:[%s8591_s0 + $0xb0] ss:$28 sps:$4 sm:$0xff]   ;;  %v4692_v18 = vld [vmem:[%s8591_s0 + $0xe0] ss:$28 sps:$4 sm:$0xff]  }
   0x7   :  { %1234 = vmatpush1.bf16.msra.mxu0 %v4674_v6  ;;  %1460 = vmatpush1.bf16.msra.mxu1 %v4675_v7  ;;  %v4690_v17 = vld [vmem:[%s8591_s0 + $0xec] ss:$28 sps:$4 sm:$0xff]   ;;  %v4694_v20 = vld [vmem:[%s8591_s0 + $0x11c] ss:$28 sps:$4 sm:$0xff]   ;;  %v4696_v21 = vld [vmem:[%s8591_s0 + $0x124] ss:$28 sps:$4 sm:$0xff]  }
   0x8   :  { %1235 = vmatprep.subr.bf16.mxu0 %v4676_v8  ;;  %1461 = vmatprep.subr.bf16.mxu1 %v4678_v9  ;;  %v4693_v19 = vld [vmem:[%s8591_s0 + $0xe8] ss:$28 sps:$4 sm:$0xff]   ;;  %v4698_v22 = vld [vmem:[%s8591_s0 + $0x118] ss:$28 sps:$4 sm:$0xff]   ;;  %v4699_v23 = vld [vmem:[%s8591_s0 + $0x120] ss:$28 sps:$4 sm:$0xff]  }
   0x9   :  { %v4700_v24 = vld [vmem:[%s8591_s0 + $0x154] ss:$28 sps:$4 sm:$0xff]   ;;  %v4702_v25 = vld [vmem:[%s8591_s0 + $0x15c] ss:$28 sps:$4 sm:$0xff]   ;;  %v4706_v28 = vld [vmem:[%s8591_s0 + $0x18c] ss:$28 sps:$4 sm:$0xff]  }
   0xa   :  { %v4704_v26 = vld [vmem:[%s8591_s0 + $0x150] ss:$28 sps:$4 sm:$0xff]   ;;  %v4705_v27 = vld [vmem:[%s8591_s0 + $0x158] ss:$28 sps:$4 sm:$0xff]   ;;  %v4710_v30 = vld [vmem:[%s8591_s0 + $0x188] ss:$28 sps:$4 sm:$0xff]  }
   0xb   :  { %1236 = vmatpush1.bf16.msra.mxu0 %v4680_v10  ;;  %1462 = vmatpush1.bf16.msra.mxu1 %v4681_v11  ;;  %v4708_v29 = vld [vmem:[%s8591_s0 + $0x194] ss:$28 sps:$4 sm:$0xff]   ;;  %v4712_v32 = vld [vmem:[%s8591_s0 + $0x1c4] ss:$28 sps:$4 sm:$0xff]   ;;  %v4714_v33 = vld [vmem:[%s8591_s0 + $0x1cc] ss:$28 sps:$4 sm:$0xff]  }
   0xc   :  { %1237 = vmatprep.subr.bf16.mxu0 %v4682_v12  ;;  %1463 = vmatprep.subr.bf16.mxu1 %v4684_v13  ;;  %v4711_v31 = vld [vmem:[%s8591_s0 + $0x190] ss:$28 sps:$4 sm:$0xff]   ;;  %v4716_v34 = vld [vmem:[%s8591_s0 + $0x1c0] ss:$28 sps:$4 sm:$0xff]   ;;  %v4717_v35 = vld [vmem:[%s8591_s0 + $0x1c8] ss:$28 sps:$4 sm:$0xff]  }
   0xd   :  { %v4718_v36 = vld [vmem:[%s8591_s0 + $0x1fc] ss:$28 sps:$4 sm:$0xff]   ;;  %v4720_v37 = vld [vmem:[%s8591_s0 + $0x204] ss:$28 sps:$4 sm:$0xff]   ;;  %v4724_v41 = vld [vmem:[%s8591_s0 + $0x234] ss:$28 sps:$4 sm:$0xff]  }
   0xe   :  { %v4722_v39 = vld [vmem:[%s8591_s0 + $0x1f8] ss:$28 sps:$4 sm:$0xff]   ;;  %v4723_v40 = vld [vmem:[%s8591_s0 + $0x200] ss:$28 sps:$4 sm:$0xff]   ;;  %v4728_v43 = vld [vmem:[%s8591_s0 + $0x230] ss:$28 sps:$4 sm:$0xff]  }
   0xf   :  { %1238 = vmatpush1.bf16.msra.mxu0 %v4686_v14  ;;  %1464 = vmatpush1.bf16.msra.mxu1 %v4687_v15  ;;  %v4726_v42 = vld [vmem:[%s8591_s0 + $0x23c] ss:$28 sps:$4 sm:$0xff]   ;;  %v4730_v45 = vld [vmem:[%s8591_s0 + $0x26c] ss:$28 sps:$4 sm:$0xff]   ;;  %v4732_v46 = vld [vmem:[%s8591_s0 + $0x274] ss:$28 sps:$4 sm:$0xff]  }
  0x10   :  { %1239 = vmatprep.subr.bf16.mxu0 %v4688_v16  ;;  %1465 = vmatprep.subr.bf16.mxu1 %v4690_v17  ;;  %v4729_v44 = vld [vmem:[%s8591_s0 + $0x238] ss:$28 sps:$4 sm:$0xff]   ;;  %v4734_v47 = vld [vmem:[%s8591_s0 + $0x268] ss:$28 sps:$4 sm:$0xff]   ;;  %v4735_v48 = vld [vmem:[%s8591_s0 + $0x270] ss:$28 sps:$4 sm:$0xff]  }
  0x11   :  { %v5108_v49 = vld [vmem:[%s8592_s1 + $0x4] ss:$12 sps:$4 sm:$0xff]   ;;  %v4738_v51 = vld [vmem:[%s8591_s0 + $0x2ac] ss:$28 sps:$4 sm:$0xff]   ;;  %v4740_v52 = vld [vmem:[%s8591_s0 + $0x2a0] ss:$28 sps:$4 sm:$0xff]  }
  0x12   :  { %v4736_v50 = vld [vmem:[%s8591_s0 + $0x2a4] ss:$28 sps:$4 sm:$0xff]   ;;  %1263 = vmatprep.mubr.bf16.mxu0 %v5108_v49  ;;  %1489 = vmatprep.mubr.bf16.mxu1 %v5108_v49  ;;  %v4742_v54 = vld [vmem:[%s8591_s0 + $0x2dc] ss:$28 sps:$4 sm:$0xff]   ;;  %v4748_v58 = vld [vmem:[%s8591_s0 + $0x314] ss:$28 sps:$4 sm:$0xff]  }
  0x13   :  { %1240 = vmatpush1.bf16.msra.mxu0 %v4692_v18  ;;  %1466 = vmatpush1.bf16.msra.mxu1 %v4693_v19  ;;  %v4741_v53 = vld [vmem:[%s8591_s0 + $0x2a8] ss:$28 sps:$4 sm:$0xff]   ;;  %v4746_v56 = vld [vmem:[%s8591_s0 + $0x2d8] ss:$28 sps:$4 sm:$0xff]   ;;  %v4747_v57 = vld [vmem:[%s8591_s0 + $0x2e0] ss:$28 sps:$4 sm:$0xff]  }
  0x14   :  { %1241 = vmatprep.subr.bf16.mxu0 %v4694_v20  ;;  %1467 = vmatprep.subr.bf16.mxu1 %v4696_v21  ;;  %v4744_v55 = vld [vmem:[%s8591_s0 + $0x2e4] ss:$28 sps:$4 sm:$0xff]   ;;  %v4750_v59 = vld [vmem:[%s8591_s0 + $0x31c] ss:$28 sps:$4 sm:$0xff]   ;;  %v4752_v60 = vld [vmem:[%s8591_s0 + $0x310] ss:$28 sps:$4 sm:$0xff]  }
  0x15   :  { %v4753_v61 = vld [vmem:[%s8591_s0 + $0x318] ss:$28 sps:$4 sm:$0xff]   ;;  %v4754_v62 = vld [vmem:[%s8591_s0 + $0x34c] ss:$28 sps:$4 sm:$0xff]   ;;  %v4768_v3 = vld [vmem:[%s8591_s0 + $0x384] ss:$28 sps:$4 sm:$0xff]  }
  0x16   :  { %v4756_v63 = vld [vmem:[%s8591_s0 + $0x354] ss:$28 sps:$4 sm:$0xff]   ;;  %v4758_v0 = vld [vmem:[%s8591_s0 + $0x348] ss:$28 sps:$4 sm:$0xff]   ;;  %v5169_v4 = vld [vmem:[%s8592_s1] ss:$12 sps:$4 sm:$0xff]  }
  0x17   :  { %1242 = vmatpush1.bf16.msra.mxu0 %v4698_v22  ;;  %1468 = vmatpush1.bf16.msra.mxu1 %v4699_v23  ;;  %v4759_v1 = vld [vmem:[%s8591_s0 + $0x350] ss:$28 sps:$4 sm:$0xff]   ;;  %v4763_v5 = vld [vmem:[%s8591_s0 + $0x388] ss:$28 sps:$4 sm:$0xff]   ;;  %v4766_v6 = vld [vmem:[%s8591_s0 + $0x380] ss:$28 sps:$4 sm:$0xff]  }
  0x18   :  { %1243 = vmatprep.subr.bf16.mxu0 %v4700_v24  ;;  %1469 = vmatprep.subr.bf16.mxu1 %v4702_v25  ;;  %v4765_v2 = vld [vmem:[%s8591_s0 + $0x38c] ss:$28 sps:$4 sm:$0xff]   ;;  %v4774_v8 = vld [vmem:[%s8591_s0 + $0x3c4] ss:$28 sps:$4 sm:$0xff]   ;;  %v4777_v9 = vld [vmem:[%s8591_s0 + $0x3bc] ss:$28 sps:$4 sm:$0xff]  }
  0x19   :  { %v5180_v7 = vld [vmem:[%s8592_s1 + $0x1c] ss:$12 sps:$4 sm:$0xff]   ;;  %v4775_v11 = vld [vmem:[%s8591_s0 + $0x3b8] ss:$28 sps:$4 sm:$0xff]   ;;  %v4784_v17 = vld [vmem:[%s8591_s0 + $0x3f0] ss:$28 sps:$4 sm:$0xff]  }
  0x1a   :  { %v4772_v10 = vld [vmem:[%s8591_s0 + $0x3c0] ss:$28 sps:$4 sm:$0xff]   ;;  %v4786_v13 = vld [vmem:[%s8591_s0 + $0x3f4] ss:$28 sps:$4 sm:$0xff]   ;;  %v5207_v14 = vld [vmem:[%s8592_s1 + $0x18] ss:$12 sps:$4 sm:$0xff]  }
  0x1b   :  { %1244 = vmatpush1.bf16.msra.mxu0 %v4704_v26  ;;  %1470 = vmatpush1.bf16.msra.mxu1 %v4705_v27  ;;  %v4783_v12 = vld [vmem:[%s8591_s0 + $0x3fc] ss:$28 sps:$4 sm:$0xff]   ;;  %v5212_v15 = vld [vmem:[%s8592_s1 + $0x34] ss:$12 sps:$4 sm:$0xff]   ;;  %v4795_v19 = vld [vmem:[%s8591_s0 + $0x42c] ss:$28 sps:$4 sm:$0xff]  }
  0x1c   :  { %1245 = vmatprep.subr.bf16.mxu0 %v4706_v28  ;;  %1471 = vmatprep.subr.bf16.mxu1 %v4708_v29  ;;  %v4781_v16 = vld [vmem:[%s8591_s0 + $0x3f8] ss:$28 sps:$4 sm:$0xff]   ;;  %v4790_v20 = vld [vmem:[%s8591_s0 + $0x430] ss:$28 sps:$4 sm:$0xff]   ;;  %v4793_v21 = vld [vmem:[%s8591_s0 + $0x428] ss:$28 sps:$4 sm:$0xff]  }
  0x1d   :  { %v4792_v18 = vld [vmem:[%s8591_s0 + $0x434] ss:$28 sps:$4 sm:$0xff]   ;;  %v4801_v22 = vld [vmem:[%s8591_s0 + $0x46c] ss:$28 sps:$4 sm:$0xff]   ;;  %v4804_v23 = vld [vmem:[%s8591_s0 + $0x464] ss:$28 sps:$4 sm:$0xff]  }
  0x1e   :  { %v5245_v24 = vld [vmem:[%s8592_s1 + $0x30] ss:$12 sps:$4 sm:$0xff]   ;;  %v5250_v25 = vld [vmem:[%s8592_s1 + $0x4c] ss:$12 sps:$4 sm:$0xff]   ;;  %v4799_v26 = vld [vmem:[%s8591_s0 + $0x468] ss:$28 sps:$4 sm:$0xff]  }
  0x1f   :  { %1246 = vmatpush1.bf16.msra.mxu0 %v4710_v30  ;;  %1472 = vmatpush1.bf16.msra.mxu1 %v4711_v31  ;;  %v4802_v27 = vld [vmem:[%s8591_s0 + $0x460] ss:$28 sps:$4 sm:$0xff]   ;;  %v4811_v31 = vld [vmem:[%s8591_s0 + $0x498] ss:$28 sps:$4 sm:$0xff]   ;;  %vm4144_vm3 = vcmask 130048  }
  0x20   :  { %1247 = vmatprep.subr.bf16.mxu0 %v4712_v32  ;;  %1473 = vmatprep.subr.bf16.mxu1 %v4714_v33  ;;  %v4810_v28 = vld [vmem:[%s8591_s0 + $0x4a4] ss:$28 sps:$4 sm:$0xff]   ;;  %v4813_v29 = vld [vmem:[%s8591_s0 + $0x49c] ss:$28 sps:$4 sm:$0xff]   ;;  %v4822_v33 = vld [vmem:[%s8591_s0 + $0x4d4] ss:$28 sps:$4 sm:$0xff]  }
  0x21   :  { %v4808_v30 = vld [vmem:[%s8591_s0 + $0x4a0] ss:$28 sps:$4 sm:$0xff]   ;;  %v4828_v38 = vld [vmem:[%s8591_s0 + $0x514] ss:$28 sps:$4 sm:$0xff]  }
  0x22   :  { %v4819_v32 = vld [vmem:[%s8591_s0 + $0x4dc] ss:$28 sps:$4 sm:$0xff]  }
  0x23   :  { %1248 = vmatpush1.bf16.msra.mxu0 %v4716_v34  ;;  %1474 = vmatpush1.bf16.msra.mxu1 %v4717_v35  ;;  %v5283_v34 = vld [vmem:[%s8592_s1 + $0x48] ss:$12 sps:$4 sm:$0xff]   ;;  %v5288_v35 = vld [vmem:[%s8592_s1 + $0x64] ss:$12 sps:$4 sm:$0xff]  }
  0x24   :  { %1249 = vmatprep.subr.bf16.mxu0 %v4718_v36  ;;  %1475 = vmatprep.subr.bf16.mxu1 %v4720_v37  ;;  %v4817_v36 = vld [vmem:[%s8591_s0 + $0x4d8] ss:$28 sps:$4 sm:$0xff]   ;;  %v4820_v37 = vld [vmem:[%s8591_s0 + $0x4d0] ss:$28 sps:$4 sm:$0xff]  }
  0x27   :  { %1250 = vmatpush1.bf16.msra.mxu0 %v4722_v39  ;;  %1476 = vmatpush1.bf16.msra.mxu1 %v4723_v40  ;;  %v4831_v39 = vld [vmem:[%s8591_s0 + $0x50c] ss:$28 sps:$4 sm:$0xff]  }
  0x28   :  { %1251 = vmatprep.subr.bf16.mxu0 %v4724_v41  ;;  %1477 = vmatprep.subr.bf16.mxu1 %v4726_v42  ;;  %v4826_v40 = vld [vmem:[%s8591_s0 + $0x510] ss:$28 sps:$4 sm:$0xff]   ;;  %v4829_v41 = vld [vmem:[%s8591_s0 + $0x508] ss:$28 sps:$4 sm:$0xff]  }
  0x29   :  { %v5315_v42 = vld [vmem:[%s8593_s2 + $0x8] sm:$0xff] }
  0x2a   :  { %2463 = vperm.xlu1 %4661, %v5315_v42  }
  0x2b   :  { %1252 = vmatpush1.bf16.msra.mxu0 %v4728_v43  ;;  %1478 = vmatpush1.bf16.msra.mxu1 %v4729_v44  ;;  %v4835_v43 = vld [vmem:[%s8591_s0 + $0x14] ss:$28 sps:$4 sm:$0xff]  }
  0x2c   :  { %1253 = vmatprep.subr.bf16.mxu0 %v4730_v45  ;;  %1479 = vmatprep.subr.bf16.mxu1 %v4732_v46  ;;  %v4864_v44 = vld [vmem:[%s8591_s0 + $0x1d8] ss:$28 sps:$4 sm:$0xff]   ;;  %v5326_v45 = vld [vmem:[%s8592_s1 + $0x60] ss:$12 sps:$4 sm:$0xff]   ;;  %v5332_v46 = vld [vmem:[%s8592_s1 + $0x7c] ss:$12 sps:$4 sm:$0xff]  }
  0x2f   :  { %1254 = vmatpush1.bf16.msra.mxu0 %v4734_v47  ;;  %1480 = vmatpush1.bf16.msra.mxu1 %v4735_v48  ;;  %v5337_v47 = vld [vmem:[%s8593_s2 + $0x10] sm:$0xff]  ;;  %v5347_v48 = vld [vmem:[%s8593_s2 + $0x20] sm:$0xff] }
  0x30   :  { %1255 = vmatprep.subr.bf16.mxu0 %v4736_v50  ;;  %1481 = vmatprep.subr.bf16.mxu1 %v4738_v51  ;;  %v2103_v50 = vld [vmem:[%s8593_s2] sm:$0xff] }
  0x31   :  { %2468 = vperm.xlu1 %4661, %v5337_v47   ;;  %v5355_v51 = vld [vmem:[%s8592_s1 + $0x78] ss:$12 sps:$4 sm:$0xff]   ;;  %2458 = vperm.xlu0 %4660, %v2103_v50  }
  0x33   :  { %1256 = vmatpush1.bf16.msra.mxu0 %v4740_v52  ;;  %1482 = vmatpush1.bf16.msra.mxu1 %v4741_v53  ;;  %v5360_v52 = vld [vmem:[%s8592_s1 + $0x94] ss:$12 sps:$4 sm:$0xff]  }
  0x34   :  { %1257 = vmatprep.subr.bf16.mxu0 %v4742_v54  ;;  %1483 = vmatprep.subr.bf16.mxu1 %v4744_v55  ;;  %v5366_v53 = vld [vmem:[%s8593_s2 + $0x30] sm:$0xff]  ;;  %v5371_v54 = vld [vmem:[%s8593_s2 + $0x18] sm:$0xff]  ;;  %v5382_v55 = vld [vmem:[%s8593_s2 + $0x40] sm:$0xff] }
  0x35   :  { %2478 = vperm.xlu1 %4661, %v5347_v48   ;;  %2473 = vperm.xlu0 %4660, %v5371_v54  }
  0x37   :  { %1258 = vmatpush1.bf16.msra.mxu0 %v4746_v56  ;;  %1484 = vmatpush1.bf16.msra.mxu1 %v4747_v57  ;;  %v5387_v56 = vld [vmem:[%s8592_s1 + $0x90] ss:$12 sps:$4 sm:$0xff]   ;;  %v5392_v57 = vld [vmem:[%s8593_s2 + $0x28] sm:$0xff] }
  0x38   :  { %1259 = vmatprep.subr.bf16.mxu0 %v4748_v58  ;;  %1485 = vmatprep.subr.bf16.mxu1 %v4750_v59  ;;  %v5397_v58 = vld [vmem:[%s8592_s1 + $0xac] ss:$12 sps:$4 sm:$0xff]   ;;  %v5404_v59 = vld [vmem:[%s8593_s2 + $0x50] sm:$0xff] }
  0x39   :  { %2488 = vperm.xlu1 %4661, %v5366_v53   ;;  %2483 = vperm.xlu0 %4660, %v5392_v57  }
  0x3b   :  { %1260 = vmatpush1.bf16.msra.mxu0 %v4752_v60  ;;  %1486 = vmatpush1.bf16.msra.mxu1 %v4753_v61  ;;  %v5411_v60 = vld [vmem:[%s8593_s2 + $0x38] sm:$0xff]  ;;  %v5420_v61 = vld [vmem:[%s8593_s2 + $0x60] sm:$0xff] }
  0x3c   :  { %1261 = vmatprep.subr.bf16.mxu0 %v4754_v62  ;;  %1487 = vmatprep.subr.bf16.mxu1 %v4756_v63  ;;  %v5425_v62 = vld [vmem:[%s8592_s1 + $0xa8] ss:$12 sps:$4 sm:$0xff]  }
  0x3d   :  { %2498 = vperm.xlu1 %4661, %v5382_v55   ;;  %2493 = vperm.xlu0 %4660, %v5411_v60   ;;  %v5430_v63 = vld [vmem:[%s8593_s2 + $0x48] sm:$0xff] }
  0x3f   :  { %1262 = vmatpush1.bf16.msra.mxu0 %v4758_v0  ;;  %1488 = vmatpush1.bf16.msra.mxu1 %v4759_v1  ;;  %v5437_v0 = vld [vmem:[%s8593_s2 + $0x70] sm:$0xff]  ;;  %v4937_v1 = vmov 0  }
  0x40   :  { %1570 = vmatprep.subr.bf16.mxu1 %v4765_v2  ;;  %1344 = vmatprep.subr.bf16.mxu0 %v4768_v3  ;;  %v5446_v2 = vld [vmem:[%s8593_s2 + $0x58] sm:$0xff]  ;;  %v5453_v3 = vld [vmem:[%s8593_s2 + $0x68] sm:$0xff] }
  0x41   :  { %2508 = vperm.xlu1 %4661, %v5404_v59   ;;  %2503 = vperm.xlu0 %4660, %v5430_v63  }
  0x42   :  { %1264 = vmatmul.mubr.bf16.vlgmr.msra.gmra.mrb[0].mxu0 %v5169_v4  ;;  %1490 = vmatmul.mubr.bf16.vlgmr.msra.gmra.mrb[0].mxu1 %v5169_v4 }
  0x43   :  { %1571 = vmatpush1.bf16.msra.mxu1 %v4763_v5  ;;  %1345 = vmatpush1.bf16.msra.mxu0 %v4766_v6  ;;  %v5458_v5 = vld [vmem:[%s8592_s1 + $0x8] ss:$12 sps:$4 sm:$0xff]   ;;  %v4833_v6 = vld [vmem:[%s8591_s0 + $0x10] ss:$28 sps:$4 sm:$0xff]  }
  0x44   :  { %1273 = vmatprep.mubr.bf16.mxu0 %v5180_v7  ;;  %1499 = vmatprep.mubr.bf16.mxu1 %v5180_v7 }
  0x45   :  { %1572 = vmatprep.subr.bf16.mxu1 %v4774_v8  ;;  %1346 = vmatprep.subr.bf16.mxu0 %v4777_v9  ;;  %v4838_v8 = vld [vmem:[%s8591_s0 + $0x4c] ss:$28 sps:$4 sm:$0xff]  }
  0x46   :  { %2518 = vperm.xlu1 %4661, %v5420_v61   ;;  %2513 = vperm.xlu0 %4660, %v5446_v2   ;;  %v4836_v9 = vld [vmem:[%s8591_s0 + $0x48] ss:$28 sps:$4 sm:$0xff]  }
  0x47   :  { %1573 = vmatpush1.bf16.msra.mxu1 %v4772_v10  ;;  %1347 = vmatpush1.bf16.msra.mxu0 %v4775_v11  ;;  %v4865_v10 = vld [vmem:[%s8591_s0 + $0x18] ss:$28 sps:$4 sm:$0xff]   ;;  %v4869_v11 = vld [vmem:[%s8591_s0 + $0x210] ss:$28 sps:$4 sm:$0xff]  }
  0x48   :  { %1574 = vmatprep.subr.bf16.mxu1 %v4783_v12  ;;  %1348 = vmatprep.subr.bf16.mxu0 %v4786_v13  ;;  %v5483_v12 = vld [vmem:[%s8593_s2 + $0x78] sm:$0xff]  ;;  %v4842_v13 = vld [vmem:[%s8591_s0 + $0x84] ss:$28 sps:$4 sm:$0xff]  }
  0x4a   :  { %1274 = vmatmul.mubr.bf16.gmra.mrb[4].mxu0 %v5207_v14  ;;  %1500 = vmatmul.mubr.bf16.gmra.mrb[4].mxu1 %v5207_v14 }
  0x4b   :  { %1283 = vmatprep.mubr.bf16.mxu0 %v5212_v15  ;;  %1509 = vmatprep.mubr.bf16.mxu1 %v5212_v15 }
  0x4c   :  { %1575 = vmatpush1.bf16.msra.mxu1 %v4781_v16  ;;  %1349 = vmatpush1.bf16.msra.mxu0 %v4784_v17  ;;  %v4870_v16 = vld [vmem:[%s8591_s0 + $0x50] ss:$28 sps:$4 sm:$0xff]  }
  0x4d   :  { %1576 = vmatprep.subr.bf16.mxu1 %v4792_v18  ;;  %1350 = vmatprep.subr.bf16.mxu0 %v4795_v19  ;;  %v5496_v17 = vld [vmem:[%s8592_s1 + $0x20] ss:$12 sps:$4 sm:$0xff]   ;;  %v4845_v19 = vld [vmem:[%s8591_s0 + $0xbc] ss:$28 sps:$4 sm:$0xff]  }
  0x4e   :  { %2528 = vperm.xlu1 %4661, %v5437_v0   ;;  %2523 = vperm.xlu0 %4660, %v5453_v3   ;;  %v4840_v18 = vld [vmem:[%s8591_s0 + $0x80] ss:$28 sps:$4 sm:$0xff]  }
  0x50   :  { %1577 = vmatpush1.bf16.msra.mxu1 %v4790_v20  ;;  %1351 = vmatpush1.bf16.msra.mxu0 %v4793_v21  ;;  %v4875_v20 = vld [vmem:[%s8591_s0 + $0x248] ss:$28 sps:$4 sm:$0xff]  }
  0x51   :  { %1578 = vmatprep.subr.bf16.mxu1 %v4801_v22  ;;  %1352 = vmatprep.subr.bf16.mxu0 %v4804_v23  ;;  %v4876_v21 = vld [vmem:[%s8591_s0 + $0x88] ss:$28 sps:$4 sm:$0xff]   ;;  %v4843_v22 = vld [vmem:[%s8591_s0 + $0xb8] ss:$28 sps:$4 sm:$0xff]   ;;  %v4880_v23 = vld [vmem:[%s8591_s0 + $0x280] ss:$28 sps:$4 sm:$0xff]  }
  0x52   :  { %1284 = vmatmul.mubr.bf16.gmra.mrb[8].mxu0 %v5245_v24  ;;  %1510 = vmatmul.mubr.bf16.gmra.mrb[8].mxu1 %v5245_v24 }
  0x53   :  { %1293 = vmatprep.mubr.bf16.mxu0 %v5250_v25  ;;  %1519 = vmatprep.mubr.bf16.mxu1 %v5250_v25 }
  0x54   :  { %1579 = vmatpush1.bf16.msra.mxu1 %v4799_v26  ;;  %1353 = vmatpush1.bf16.msra.mxu0 %v4802_v27  ;;  %v4849_v26 = vld [vmem:[%s8591_s0 + $0xf4] ss:$28 sps:$4 sm:$0xff]   ;;  %v5529_v27 = vld [vmem:[%s8592_s1 + $0x38] ss:$12 sps:$4 sm:$0xff]  }
  0x55   :  { %1580 = vmatprep.subr.bf16.mxu1 %v4810_v28  ;;  %1354 = vmatprep.subr.bf16.mxu0 %v4813_v29  ;;  %v4847_v28 = vld [vmem:[%s8591_s0 + $0xf0] ss:$28 sps:$4 sm:$0xff]  }
  0x56   :  { %4662 = vset.pattern.permute.xlu1 %v4937_v1  ;;  %2533 = vperm.xlu0 %4660, %v5483_v12   ;;  %v4852_v29 = vld [vmem:[%s8591_s0 + $0x12c] ss:$28 sps:$4 sm:$0xff]  }
  0x57   :  { %2665 = vperm.xlu1 %4662, %v2103_v50   ;;  %v4868_v50 = vld [vmem:[%s8591_s0 + $0x20c] ss:$28 sps:$4 sm:$0xff]  }
  0x58   :  { %1581 = vmatpush1.bf16.msra.mxu1 %v4808_v30  ;;  %1355 = vmatpush1.bf16.msra.mxu0 %v4811_v31  ;;  %v4881_v30 = vld [vmem:[%s8591_s0 + $0xc0] ss:$28 sps:$4 sm:$0xff]   ;;  %v4886_v31 = vld [vmem:[%s8591_s0 + $0x2b8] ss:$28 sps:$4 sm:$0xff]  }
  0x59   :  { %1582 = vmatprep.subr.bf16.mxu1 %v4819_v32  ;;  %1356 = vmatprep.subr.bf16.mxu0 %v4822_v33  ;;  %v4850_v32 = vld [vmem:[%s8591_s0 + $0x128] ss:$28 sps:$4 sm:$0xff]  }
  0x5a   :  { %1294 = vmatmul.mubr.bf16.gmra.mrb[12].mxu0 %v5283_v34  ;;  %1520 = vmatmul.mubr.bf16.gmra.mrb[12].mxu1 %v5283_v34  ;;  %v4856_v33 = vld [vmem:[%s8591_s0 + $0x164] ss:$28 sps:$4 sm:$0xff]  }
  0x5b   :  { %1303 = vmatprep.mubr.bf16.mxu0 %v5288_v35  ;;  %1529 = vmatprep.mubr.bf16.mxu1 %v5288_v35 }
  0x5c   :  { %1583 = vmatpush1.bf16.msra.mxu1 %v4817_v36  ;;  %1357 = vmatpush1.bf16.msra.mxu0 %v4820_v37  ;;  %v4887_v36 = vld [vmem:[%s8591_s0 + $0xf8] ss:$28 sps:$4 sm:$0xff]   ;;  %v5563_v37 = vld [vmem:[%s8592_s1 + $0x50] ss:$12 sps:$4 sm:$0xff]  }
  0x5d   :  { %1584 = vmatprep.subr.bf16.mxu1 %v4828_v38  ;;  %1358 = vmatprep.subr.bf16.mxu0 %v4831_v39  ;;  %v4854_v38 = vld [vmem:[%s8591_s0 + $0x160] ss:$28 sps:$4 sm:$0xff]  }
  0x5e   :  { %2673 = vperm.xlu1 %4662, %v5337_v47   ;;  %4663 = vset.pattern.permute.xlu0 %v4937_v1  ;;  %v4859_v39 = vld [vmem:[%s8591_s0 + $0x19c] ss:$28 sps:$4 sm:$0xff]   ;;  %v5596_v47 = vld [vmem:[%s8592_s1 + $0x68] ss:$12 sps:$4 sm:$0xff]  }
  0x5f   :  { %2669 = vperm.xlu0 %4663, %v5315_v42   ;;  %v4857_v42 = vld [vmem:[%s8591_s0 + $0x198] ss:$28 sps:$4 sm:$0xff]  }
  0x60   :  { %1585 = vmatpush1.bf16.msra.mxu1 %v4826_v40  ;;  %1359 = vmatpush1.bf16.msra.mxu0 %v4829_v41  ;;  %v4891_v40 = vld [vmem:[%s8591_s0 + $0x2f0] ss:$28 sps:$4 sm:$0xff]  }
  0x61   :  { %1683 = vmatprep.subr.bf16.mxu0 %v4835_v43  ;;  %4447 = vmatprep.subr.bf16.mxu1 %v4864_v44  ;;  %v4892_v41 = vld [vmem:[%s8591_s0 + $0x130] ss:$28 sps:$4 sm:$0xff]   ;;  %v4897_v43 = vld [vmem:[%s8591_s0 + $0x328] ss:$28 sps:$4 sm:$0xff]  }
  0x62   :  { %1304 = vmatmul.mubr.bf16.gmra.mrb[16].mxu0 %v5326_v45  ;;  %1530 = vmatmul.mubr.bf16.gmra.mrb[16].mxu1 %v5326_v45  ;;  %v4863_v44 = vld [vmem:[%s8591_s0 + $0x1d4] ss:$28 sps:$4 sm:$0xff]  }
  0x63   :  { %1313 = vmatprep.mubr.bf16.mxu0 %v5332_v46  ;;  %1539 = vmatprep.mubr.bf16.mxu1 %v5332_v46 }
  0x64   :  { %2677 = vperm.xlu1 %4662, %v5371_v54   ;;  %2681 = vperm.xlu0 %4663, %v5347_v48   ;;  %v4861_v48 = vld [vmem:[%s8591_s0 + $0x1d0] ss:$28 sps:$4 sm:$0xff]   ;;  %v4902_v54 = vld [vmem:[%s8591_s0 + $0x360] ss:$28 sps:$4 sm:$0xff]  }
  0x68   :  { %2685 = vperm.xlu1 %4662, %v5392_v57   ;;  %2689 = vperm.xlu0 %4663, %v5366_v53   ;;  %v4898_v53 = vld [vmem:[%s8591_s0 + $0x168] ss:$28 sps:$4 sm:$0xff]  }
  0x69   :  { %v4866_v57 = vld [vmem:[%s8591_s0 + $0x208] ss:$28 sps:$4 sm:$0xff]  }
  0x6a   :  { %1314 = vmatmul.mubr.bf16.gmra.mrb[20].mxu0 %v5355_v51  ;;  %1540 = vmatmul.mubr.bf16.gmra.mrb[20].mxu1 %v5355_v51 }
  0x6b   :  { %1323 = vmatprep.mubr.bf16.mxu0 %v5360_v52  ;;  %1549 = vmatprep.mubr.bf16.mxu1 %v5360_v52 }
  0x6c   :  { %2693 = vperm.xlu1 %4662, %v5411_v60   ;;  %2697 = vperm.xlu0 %4663, %v5382_v55   ;;  %v4874_v55 = vld [vmem:[%s8591_s0 + $0x244] ss:$28 sps:$4 sm:$0xff]  }
  0x6d   :  { %v4903_v60 = vld [vmem:[%s8591_s0 + $0x1a0] ss:$28 sps:$4 sm:$0xff]  }
  0x70   :  { %2701 = vperm.xlu1 %4662, %v5430_v63   ;;  %v5629_v63 = vld [vmem:[%s8592_s1 + $0x80] ss:$12 sps:$4 sm:$0xff]   ;;  %2705 = vperm.xlu0 %4663, %v5404_v59   ;;  %v4877_v59 = vld [vmem:[%s8591_s0 + $0x278] ss:$28 sps:$4 sm:$0xff]  }
  0x72   :  { %1324 = vmatmul.mubr.bf16.gmra.mrb[24].mxu0 %v5387_v56  ;;  %1550 = vmatmul.mubr.bf16.gmra.mrb[24].mxu1 %v5387_v56 }
  0x73   :  { %1333 = vmatprep.mubr.bf16.mxu0 %v5397_v58  ;;  %1559 = vmatprep.mubr.bf16.mxu1 %v5397_v58 }
  0x74   :  { %2709 = vperm.xlu1 %4662, %v5446_v2   ;;  %v4872_v2 = vld [vmem:[%s8591_s0 + $0x240] ss:$28 sps:$4 sm:$0xff]   ;;  %2713 = vperm.xlu0 %4663, %v5420_v61   ;;  %v4888_v61 = vld [vmem:[%s8591_s0 + $0x2e8] ss:$28 sps:$4 sm:$0xff]  }
  0x78   :  { %2717 = vperm.xlu1 %4662, %v5453_v3   ;;  %v4879_v3 = vld [vmem:[%s8591_s0 + $0x27c] ss:$28 sps:$4 sm:$0xff]   ;;  %2721 = vperm.xlu0 %4663, %v5437_v0  }
  0x79   :  { %v5677_v0 = vld [vmem:[%s8592_s1 + $0xb0] ss:$12 sps:$4 sm:$0xff]  }
  0x7a   :  { %1334 = vmatmul.mubr.bf16.gmra.mrb[28].mxu0 %v5425_v62  ;;  %1560 = vmatmul.mubr.bf16.gmra.mrb[28].mxu1 %v5425_v62 }
  0x7b   :  { %1376 = vmatprep.mubr.bf16.mxu0 %v4937_v1  ;;  %1602 = vmatprep.mubr.bf16.mxu1 %v4937_v1 }
  0x7c   :  { %2725 = vperm.xlu1 %4662, %v5483_v12   ;;  %v4896_v12 = vld [vmem:[%s8591_s0 + $0x324] ss:$28 sps:$4 sm:$0xff]  }
  0x82   :  { %1377 = vmatmul.mubr.bf16.vlgmr.msra.gmra.mrb[0].mxu0 %v5458_v5  ;;  %1603 = vmatmul.mubr.bf16.vlgmr.msra.gmra.mrb[0].mxu1 %v5458_v5 }
  0x83   :  { %1684 = vmatpush1.bf16.msra.mxu0 %v4833_v6  ;;  %1386 = vmatprep.mubr.bf16.mxu0 %v4937_v1  ;;  %v4907_v6 = vld [vmem:[%s8591_s0 + $0x398] ss:$28 sps:$4 sm:$0xff]  }
  0x84   :  { %1685 = vmatprep.subr.bf16.mxu0 %v4838_v8  ;;  %1612 = vmatprep.mubr.bf16.mxu1 %v4937_v1  ;;  %v4885_v8 = vld [vmem:[%s8591_s0 + $0x2b4] ss:$28 sps:$4 sm:$0xff]  }
  0x85   :  { %4448 = vmatpush3.bf16.msra.mxu1 %v4865_v10  ;;  %v4883_v10 = vld [vmem:[%s8591_s0 + $0x2b0] ss:$28 sps:$4 sm:$0xff]  }
  0x86   :  { %4449 = vmatprep.subr.bf16.mxu1 %v4869_v11  ;;  %v4890_v11 = vld [vmem:[%s8591_s0 + $0x2ec] ss:$28 sps:$4 sm:$0xff]  }
  0x87   :  { %1686 = vmatpush1.bf16.msra.mxu0 %v4836_v9  ;;  %v5655_v9 = vld [vmem:[%s8592_s1 + $0x98] ss:$12 sps:$4 sm:$0xff]  }
  0x88   :  { %1687 = vmatprep.subr.bf16.mxu0 %v4842_v13  ;;  %v4894_v13 = vld [vmem:[%s8591_s0 + $0x320] ss:$28 sps:$4 sm:$0xff]  }
  0x89   :  { %4450 = vmatpush3.bf16.msra.mxu1 %v4870_v16  ;;  %v4901_v16 = vld [vmem:[%s8591_s0 + $0x35c] ss:$28 sps:$4 sm:$0xff]  }
  0x8a   :  { %1387 = vmatmul.mubr.bf16.gmra.mrb[4].mxu0 %v5496_v17  ;;  %1613 = vmatmul.mubr.bf16.gmra.mrb[4].mxu1 %v5496_v17 }
  0x8b   :  { %1688 = vmatpush1.bf16.msra.mxu0 %v4840_v18  ;;  %1396 = vmatprep.mubr.bf16.mxu0 %v4937_v1  ;;  %v4899_v18 = vld [vmem:[%s8591_s0 + $0x358] ss:$28 sps:$4 sm:$0xff]  }
  0x8c   :  { %1689 = vmatprep.subr.bf16.mxu0 %v4845_v19  ;;  %1622 = vmatprep.mubr.bf16.mxu1 %v4937_v1  ;;  %v4906_v19 = vld [vmem:[%s8591_s0 + $0x394] ss:$28 sps:$4 sm:$0xff]  }
  0x8d   :  { %4451 = vmatprep.subr.bf16.mxu1 %v4875_v20  ;;  %v4904_v20 = vld [vmem:[%s8591_s0 + $0x390] ss:$28 sps:$4 sm:$0xff]  }
  0x8e   :  { %4452 = vmatpush3.bf16.msra.mxu1 %v4876_v21  ;;  %v4910_v21 = vld [vmem:[%s8591_s0 + $0x3cc] ss:$28 sps:$4 sm:$0xff]  }
  0x8f   :  { %1690 = vmatpush1.bf16.msra.mxu0 %v4843_v22  ;;  %4453 = vmatprep.subr.bf16.mxu1 %v4880_v23  ;;  %v4911_v22 = vld [vmem:[%s8591_s0 + $0x3d0] ss:$28 sps:$4 sm:$0xff]   ;;  %v4914_v23 = vld [vmem:[%s8591_s0 + $0x404] ss:$28 sps:$4 sm:$0xff]  }
  0x90   :  { %1691 = vmatprep.subr.bf16.mxu0 %v4849_v26  ;;  %v4918_v26 = vld [vmem:[%s8591_s0 + $0x43c] ss:$28 sps:$4 sm:$0xff]  }
  0x92   :  { %1397 = vmatmul.mubr.bf16.gmra.mrb[8].mxu0 %v5529_v27  ;;  %1623 = vmatmul.mubr.bf16.gmra.mrb[8].mxu1 %v5529_v27 }
  0x93   :  { %1692 = vmatpush1.bf16.msra.mxu0 %v4847_v28  ;;  %1406 = vmatprep.mubr.bf16.mxu0 %v4937_v1  ;;  %v4919_v28 = vld [vmem:[%s8591_s0 + $0x440] ss:$28 sps:$4 sm:$0xff]  }
  0x94   :  { %1693 = vmatprep.subr.bf16.mxu0 %v4852_v29  ;;  %1632 = vmatprep.mubr.bf16.mxu1 %v4937_v1  ;;  %v4916_v29 = vld [vmem:[%s8591_s0 + $0x438] ss:$28 sps:$4 sm:$0xff]  }
  0x95   :  { %4454 = vmatpush3.bf16.msra.mxu1 %v4881_v30  ;;  %v4922_v30 = vld [vmem:[%s8591_s0 + $0x474] ss:$28 sps:$4 sm:$0xff]  }
  0x96   :  { %4455 = vmatprep.subr.bf16.mxu1 %v4886_v31  ;;  %v4926_v31 = vld [vmem:[%s8591_s0 + $0x4ac] ss:$28 sps:$4 sm:$0xff]  }
  0x97   :  { %1694 = vmatpush1.bf16.msra.mxu0 %v4850_v32  ;;  %v4927_v32 = vld [vmem:[%s8591_s0 + $0x4b0] ss:$28 sps:$4 sm:$0xff]  }
  0x98   :  { %1695 = vmatprep.subr.bf16.mxu0 %v4856_v33  ;;  %v4924_v33 = vld [vmem:[%s8591_s0 + $0x4a8] ss:$28 sps:$4 sm:$0xff]  }
  0x99   :  { %4456 = vmatpush3.bf16.msra.mxu1 %v4887_v36  ;;  %v4930_v36 = vld [vmem:[%s8591_s0 + $0x4e4] ss:$28 sps:$4 sm:$0xff]  }
  0x9a   :  { %1407 = vmatmul.mubr.bf16.gmra.mrb[12].mxu0 %v5563_v37  ;;  %1633 = vmatmul.mubr.bf16.gmra.mrb[12].mxu1 %v5563_v37 }
  0x9b   :  { %1696 = vmatpush1.bf16.msra.mxu0 %v4854_v38  ;;  %1416 = vmatprep.mubr.bf16.mxu0 %v4937_v1  ;;  %v4934_v38 = vld [vmem:[%s8591_s0 + $0x51c] ss:$28 sps:$4 sm:$0xff]  }
  0x9c   :  { %1697 = vmatprep.subr.bf16.mxu0 %v4859_v39  ;;  %1642 = vmatprep.mubr.bf16.mxu1 %v4937_v1  ;;  %v4935_v39 = vld [vmem:[%s8591_s0 + $0x520] ss:$28 sps:$4 sm:$0xff]  }
  0x9d   :  { %4457 = vmatprep.subr.bf16.mxu1 %v4891_v40  ;;  %v4932_v40 = vld [vmem:[%s8591_s0 + $0x518] ss:$28 sps:$4 sm:$0xff]  }
  0x9e   :  { %4458 = vmatpush3.bf16.msra.mxu1 %v4892_v41 }
  0x9f   :  { %1698 = vmatpush1.bf16.msra.mxu0 %v4857_v42  ;;  %4459 = vmatprep.subr.bf16.mxu1 %v4897_v43 }
  0xa0   :  { %1699 = vmatprep.subr.bf16.mxu0 %v4863_v44 }
  0xa2   :  { %1417 = vmatmul.mubr.bf16.gmra.mrb[16].mxu0 %v5596_v47  ;;  %1643 = vmatmul.mubr.bf16.gmra.mrb[16].mxu1 %v5596_v47 }
  0xa3   :  { %1700 = vmatpush1.bf16.msra.mxu0 %v4861_v48  ;;  %1426 = vmatprep.mubr.bf16.mxu0 %v4937_v1 }
  0xa4   :  { %1701 = vmatprep.subr.bf16.mxu0 %v4868_v50  ;;  %1652 = vmatprep.mubr.bf16.mxu1 %v4937_v1 }
  0xa5   :  { %4460 = vmatpush3.bf16.msra.mxu1 %v4898_v53 }
  0xa6   :  { %4461 = vmatprep.subr.bf16.mxu1 %v4902_v54 }
  0xa7   :  { %1702 = vmatpush1.bf16.msra.mxu0 %v4866_v57 }
  0xa8   :  { %1703 = vmatprep.subr.bf16.mxu0 %v4874_v55 }
  0xa9   :  { %4462 = vmatpush3.bf16.msra.mxu1 %v4903_v60 }
  0xaa   :  { %1427 = vmatmul.mubr.bf16.gmra.mrb[20].mxu0 %v5629_v63  ;;  %1653 = vmatmul.mubr.bf16.gmra.mrb[20].mxu1 %v5629_v63 }
  0xab   :  { %1704 = vmatpush1.bf16.msra.mxu0 %v4872_v2  ;;  %1436 = vmatprep.mubr.bf16.mxu0 %v4937_v1 }
  0xac   :  { %1705 = vmatprep.subr.bf16.mxu0 %v4879_v3  ;;  %1662 = vmatprep.mubr.bf16.mxu1 %v4937_v1 }
  0xad   :  { %4527 = vmatprep.subr.bf16.mxu1 %v4907_v6 }
  0xaf   :  { %1706 = vmatpush1.bf16.msra.mxu0 %v4877_v59 }
  0xb0   :  { %1707 = vmatprep.subr.bf16.mxu0 %v4885_v8 }
  0xb2   :  { %1437 = vmatmul.mubr.bf16.gmra.mrb[24].mxu0 %v5655_v9  ;;  %1663 = vmatmul.mubr.bf16.gmra.mrb[24].mxu1 %v5655_v9 }
  0xb3   :  { %1708 = vmatpush1.bf16.msra.mxu0 %v4883_v10  ;;  %1446 = vmatprep.mubr.bf16.mxu0 %v4937_v1 }
  0xb4   :  { %1709 = vmatprep.subr.bf16.mxu0 %v4890_v11  ;;  %1672 = vmatprep.mubr.bf16.mxu1 %v4937_v1 }
  0xb7   :  { %1710 = vmatpush1.bf16.msra.mxu0 %v4888_v61 }
  0xb8   :  { %1711 = vmatprep.subr.bf16.mxu0 %v4896_v12 }
  0xba   :  { %1447 = vmatmul.mubr.bf16.gmra.mrb[28].mxu0 %v5677_v0  ;;  %1673 = vmatmul.mubr.bf16.gmra.mrb[28].mxu1 %v5677_v0 }
  0xbb   :  { %1712 = vmatpush1.bf16.msra.mxu0 %v4894_v13  ;;  %1715 = vmatprep.mubr.bf16.mxu0 %v5108_v49 }
  0xbc   :  { %1713 = vmatprep.subr.bf16.mxu0 %v4901_v16  ;;  %1941 = vmatprep.mubr.bf16.mxu1 %v5108_v49  ;;  %v4908_v49 = vld [vmem:[%s8591_s0 + $0x3c8] ss:$28 sps:$4 sm:$0xff]  }
  0xbf   :  { %1714 = vmatpush1.bf16.msra.mxu0 %v4899_v18 }
  0xc0   :  { %1796 = vmatprep.subr.bf16.mxu0 %v4906_v19 }
  0xc2   :  { %1716 = vmatmul.mubr.bf16.vlgmr.msra.gmra.mrb[32].mxu0 %v5169_v4  ;;  %1942 = vmatmul.mubr.bf16.vlgmr.msra.gmra.mrb[32].mxu1 %v5169_v4  ;;  %v4915_v4 = vld [vmem:[%s8591_s0 + $0x408] ss:$28 sps:$4 sm:$0xff]  }
  0xc3   :  { %1725 = vmatprep.mubr.bf16.mxu0 %v5180_v7  ;;  %1949 = vmatprep.mubr.bf16.mxu1 %v5180_v7  ;;  %v4912_v7 = vld [vmem:[%s8591_s0 + $0x400] ss:$28 sps:$4 sm:$0xff]  }
  0xc4   :  { %1797 = vmatpush1.bf16.msra.mxu0 %v4904_v20  ;;  %4528 = vmatpush3.bf16.msra.mxu1 %v4907_v6 }
  0xc5   :  { %1798 = vmatprep.subr.bf16.mxu0 %v4910_v21  ;;  %4529 = vmatprep.subr.bf16.mxu1 %v4911_v22 }
  0xc8   :  { %1799 = vmatpush1.bf16.msra.mxu0 %v4908_v49  ;;  %4530 = vmatpush3.bf16.msra.mxu1 %v4911_v22 }
  0xc9   :  { %1800 = vmatprep.subr.bf16.mxu0 %v4914_v23  ;;  %4531 = vmatprep.subr.bf16.mxu1 %v4915_v4 }
  0xca   :  { %1726 = vmatmul.mubr.bf16.gmra.mrb[36].mxu0 %v5207_v14  ;;  %1950 = vmatmul.mubr.bf16.gmra.mrb[36].mxu1 %v5207_v14  ;;  %v4923_v14 = vld [vmem:[%s8591_s0 + $0x478] ss:$28 sps:$4 sm:$0xff]  }
  0xcb   :  { %1735 = vmatprep.mubr.bf16.mxu0 %v5212_v15  ;;  %1957 = vmatprep.mubr.bf16.mxu1 %v5212_v15  ;;  %v4920_v15 = vld [vmem:[%s8591_s0 + $0x470] ss:$28 sps:$4 sm:$0xff]  }
  0xcc   :  { %1801 = vmatpush1.bf16.msra.mxu0 %v4912_v7  ;;  %4532 = vmatpush3.bf16.msra.mxu1 %v4915_v4 }
  0xcd   :  { %1802 = vmatprep.subr.bf16.mxu0 %v4918_v26  ;;  %4533 = vmatprep.subr.bf16.mxu1 %v4919_v28 }
  0xd0   :  { %1803 = vmatpush1.bf16.msra.mxu0 %v4916_v29  ;;  %4534 = vmatpush3.bf16.msra.mxu1 %v4919_v28 }
  0xd1   :  { %1804 = vmatprep.subr.bf16.mxu0 %v4922_v30  ;;  %4535 = vmatprep.subr.bf16.mxu1 %v4923_v14 }
  0xd2   :  { %1736 = vmatmul.mubr.bf16.gmra.mrb[40].mxu0 %v5245_v24  ;;  %1958 = vmatmul.mubr.bf16.gmra.mrb[40].mxu1 %v5245_v24  ;;  %v4931_v24 = vld [vmem:[%s8591_s0 + $0x4e8] ss:$28 sps:$4 sm:$0xff]  }
  0xd3   :  { %1745 = vmatprep.mubr.bf16.mxu0 %v5250_v25  ;;  %1965 = vmatprep.mubr.bf16.mxu1 %v5250_v25  ;;  %v4928_v25 = vld [vmem:[%s8591_s0 + $0x4e0] ss:$28 sps:$4 sm:$0xff]   ;;  %s4938_s0 = smov 16  }
  0xd4   :  { %1805 = vmatpush1.bf16.msra.mxu0 %v4920_v15  ;;  %4536 = vmatpush3.bf16.msra.mxu1 %v4923_v14 }
  0xd5   :  { %1806 = vmatprep.subr.bf16.mxu0 %v4926_v31  ;;  %4537 = vmatprep.subr.bf16.mxu1 %v4927_v32 }
  0xd8   :  { %1807 = vmatpush1.bf16.msra.mxu0 %v4924_v33  ;;  %4538 = vmatpush3.bf16.msra.mxu1 %v4927_v32 }
  0xd9   :  { %1808 = vmatprep.subr.bf16.mxu0 %v4930_v36  ;;  %4539 = vmatprep.subr.bf16.mxu1 %v4931_v24 }
  0xda   :  { %1746 = vmatmul.mubr.bf16.gmra.mrb[44].mxu0 %v5283_v34  ;;  %1966 = vmatmul.mubr.bf16.gmra.mrb[44].mxu1 %v5283_v34  ;;  %v5812_v34 = vpop.permute.xlu1 %2463 }
  0xdb   :  { %1755 = vmatprep.mubr.bf16.mxu0 %v5288_v35  ;;  %1973 = vmatprep.mubr.bf16.mxu1 %v5288_v35  ;;  %8813 = vst [vmem:[#allocation2_spill] sm:$0xff] %v5812_v34 }
  0xdc   :  { %1809 = vmatpush1.bf16.msra.mxu0 %v4928_v25  ;;  %4540 = vmatpush3.bf16.msra.mxu1 %v4931_v24 }
  0xdd   :  { %1810 = vmatprep.subr.bf16.mxu0 %v4934_v38  ;;  %4541 = vmatprep.subr.bf16.mxu1 %v4935_v39 }
  0xde   :  { %v5816_v35 = vpop.permute.xlu1 %2468 }
  0xdf   :  { %8814 = vst [vmem:[#allocation3_spill] sm:$0xff] %v5816_v35 }
  0xe0   :  { %1811 = vmatpush1.bf16.msra.mxu0 %v4932_v40  ;;  %4542 = vmatpush3.bf16.msra.mxu1 %v4935_v39 }
  0xe2   :  { %1756 = vmatmul.mubr.bf16.gmra.mrb[48].mxu0 %v5326_v45  ;;  %1974 = vmatmul.mubr.bf16.gmra.mrb[48].mxu1 %v5326_v45  ;;  %v5818_v45 = vpop.permute.xlu0 %2458 }
  0xe3   :  { %1765 = vmatprep.mubr.bf16.mxu0 %v5332_v46  ;;  %1981 = vmatprep.mubr.bf16.mxu1 %v5332_v46  ;;  %8815 = vst [vmem:[#allocation4_spill] sm:$0xff] %v5818_v45  ;;  %v5821_v46 = vpop.permute.xlu1 %2478 }
  0xe4   :  { %8816 = vst [vmem:[#allocation5_spill] sm:$0xff] %v5821_v46 }
  0xea   :  { %1766 = vmatmul.mubr.bf16.gmra.mrb[52].mxu0 %v5355_v51  ;;  %1982 = vmatmul.mubr.bf16.gmra.mrb[52].mxu1 %v5355_v51  ;;  %v5823_v51 = vpop.permute.xlu0 %2473 }
  0xeb   :  { %1775 = vmatprep.mubr.bf16.mxu0 %v5360_v52  ;;  %1989 = vmatprep.mubr.bf16.mxu1 %v5360_v52  ;;  %8817 = vst [vmem:[#allocation6_spill] sm:$0xff] %v5823_v51  ;;  %v5825_v52 = vpop.permute.xlu1 %2488 }
  0xec   :  { %8818 = vst [vmem:[#allocation7_spill] sm:$0xff] %v5825_v52 }
  0xf2   :  { %1776 = vmatmul.mubr.bf16.gmra.mrb[56].mxu0 %v5387_v56  ;;  %1990 = vmatmul.mubr.bf16.gmra.mrb[56].mxu1 %v5387_v56  ;;  %v5827_v56 = vpop.permute.xlu0 %2483 }
  0xf3   :  { %1785 = vmatprep.mubr.bf16.mxu0 %v5397_v58  ;;  %1997 = vmatprep.mubr.bf16.mxu1 %v5397_v58  ;;  %8819 = vst [vmem:[#allocation8_spill] sm:$0xff] %v5827_v56  ;;  %v5829_v58 = vpop.permute.xlu1 %2498 }
  0xf4   :  { %8820 = vst [vmem:[#allocation9_spill] sm:$0xff] %v5829_v58 }
  0xfa   :  { %1786 = vmatmul.mubr.bf16.gmra.mrb[60].mxu0 %v5425_v62  ;;  %1998 = vmatmul.mubr.bf16.gmra.mrb[60].mxu1 %v5425_v62  ;;  %v5831_v62 = vpop.permute.xlu0 %2493 }
  0xfb   :  { %1828 = vmatprep.mubr.bf16.mxu0 %v4937_v1  ;;  %4543 = vmatprep.mubr.bf16.mxu1 %v5458_v5  ;;  %8821 = vst [vmem:[#allocation10_spill] sm:$0xff] %v5831_v62 }
 0x102   :  { %1829 = vmatmul.mubr.bf16.vlgmr.msra.gmra.mrb[32].mxu0 %v5458_v5  ;;  %4544 = vmatmul.mubr.bf16.vlgmr.msra.gmra.mrb[64].mxu1 %v5496_v17  ;;  %v5833_v5 = vpop.permute.xlu1 %2508 }
 0x103   :  { %1838 = vmatprep.mubr.bf16.mxu0 %v4937_v1  ;;  %4547 = vmatprep.mubr.bf16.mxu1 %v5529_v27  ;;  %8822 = vst [vmem:[#allocation11_spill] sm:$0xff] %v5833_v5 }
 0x10a   :  { %1839 = vmatmul.mubr.bf16.gmra.mrb[36].mxu0 %v5496_v17  ;;  %4548 = vmatmul.mubr.bf16.gmra.mrb[68].mxu1 %v5563_v37  ;;  %v5837_v17 = vpop.permute.xlu1 %2518 }
 0x10b   :  { %1848 = vmatprep.mubr.bf16.mxu0 %v4937_v1  ;;  %4551 = vmatprep.mubr.bf16.mxu1 %v5596_v47  ;;  %8824 = vst [vmem:[#allocation13_spill] sm:$0xff] %v5837_v17 }
 0x10e   :  { %v5844_v53 = vpop.permute.xlu1 %2528 }
 0x10f   :  { %8826 = vst [vmem:[#allocation15_spill] sm:$0xff] %v5844_v53 }
 0x112   :  { %1849 = vmatmul.mubr.bf16.gmra.mrb[40].mxu0 %v5529_v27  ;;  %4552 = vmatmul.mubr.bf16.gmra.mrb[72].mxu1 %v5629_v63  ;;  %v5867_v8 = vpop.permute.xlu1 %2665 }
 0x113   :  { %1858 = vmatprep.mubr.bf16.mxu0 %v4937_v1  ;;  %4555 = vmatprep.mubr.bf16.mxu1 %v5655_v9  ;;  %8828 = vst [vmem:[#allocation17_spill] sm:$0xff] %v5867_v8 }
 0x11a   :  { %1859 = vmatmul.mubr.bf16.gmra.mrb[44].mxu0 %v5563_v37  ;;  %4556 = vmatmul.mubr.bf16.gmra.mrb[76].mxu1 %v5677_v0 }
 0x11b   :  { %1868 = vmatprep.mubr.bf16.mxu0 %v4937_v1 }
 0x122   :  { %1869 = vmatmul.mubr.bf16.gmra.mrb[48].mxu0 %v5596_v47 }
 0x123   :  { %1878 = vmatprep.mubr.bf16.mxu0 %v4937_v1 }
 0x12a   :  { %1879 = vmatmul.mubr.bf16.gmra.mrb[52].mxu0 %v5629_v63 }
 0x12b   :  { %1888 = vmatprep.mubr.bf16.mxu0 %v4937_v1 }
 0x132   :  { %1889 = vmatmul.mubr.bf16.gmra.mrb[56].mxu0 %v5655_v9 }
 0x133   :  { %1898 = vmatprep.mubr.bf16.mxu0 %v4937_v1  ;;  %v5835_v1 = vpop.permute.xlu0 %2503 }
 0x134   :  { %8823 = vst [vmem:[#allocation12_spill] sm:$0xff] %v5835_v1 }
 0x137   :  { %v5839_v27 = vpop.permute.xlu0 %2513 }
 0x138   :  { %8825 = vst [vmem:[#allocation14_spill] sm:$0xff] %v5839_v27 }
 0x13a   :  { %1899 = vmatmul.mubr.bf16.gmra.mrb[60].mxu0 %v5677_v0 }
 0x13b   :  { %v5846_v54 = vpop.permute.xlu0 %2523 }
 0x13c   :  { %8827 = vst [vmem:[#allocation16_spill] sm:$0xff] %v5846_v54 }
 0x13f   :  { %v5871_v10 = vpop.permute.xlu0 %2533 }
 0x140   :  { %8829 = vst [vmem:[#allocation18_spill] sm:$0xff] %v5871_v10 }
 0x143   :  { %v5894_v22 = vpop.permute.xlu0 %2669 }
 0x144   :  { %8830 = vst [vmem:[#allocation19_spill] sm:$0xff] %v5894_v22 }
 0x155   :  { %v1378_v37 = vpop.f32.mrb[0].mxu0  ;;  %v1604_v41 = vpop.f32.mrb[0].mxu1 }
 0x156   :  { %v1606_v42 = vpop.f32.mrb[1].mxu1  ;;  %2120 = vrot.lane.b32.xlu0 %v1378_v37, %s4938_s0  ;;  %v1380_v43 = vpop.f32.mrb[1].mxu0  ;;  %v2728_v19 = vmul.f32 %v5867_v8, %v1378_v37  ;;  %v2730_v23 = vmul.f32 %v5867_v8, %v1604_v41 }
 0x157   :  { %v1382_v44 = vpop.f32.mrb[2].mxu0  ;;  %v1608_v47 = vpop.f32.mrb[2].mxu1  ;;  %v2729_v9 = vmul.f32 %v5867_v8, %v1380_v43  ;;  %v2731_v12 = vmul.f32 %v5867_v8, %v1606_v42 }
 0x158   :  { %2202 = vrot.lane.b32.xlu1 %v1608_v47, %s4938_s0  ;;  %v1384_v48 = vpop.f32.mrb[3].mxu0  ;;  %v1610_v50 = vpop.f32.mrb[3].mxu1  ;;  %v2735_v49 = vmul.f32 %v5894_v22, %v1382_v44  ;;  %v2737_v26 = vmul.f32 %v5894_v22, %v1608_v47 }
 0x159   :  { %v2736_v15 = vmul.f32 %v5894_v22, %v1384_v48  ;;  %v2738_v33 = vmul.f32 %v5894_v22, %v1610_v50 }
 0x15a   :  { %2200 = vrot.lane.b32.xlu0 %v1604_v41, %s4938_s0 }
 0x15c   :  { %2170 = vrot.lane.b32.xlu1 %v1384_v48, %s4938_s0 }
 0x15d   :  { %v5849_v57 = vpop.f32.mrb[4].mxu0  ;;  %v5851_v55 = vpop.f32.mrb[4].mxu1 }
 0x15e   :  { %v5853_v60 = vpop.f32.mrb[5].mxu1  ;;  %2168 = vrot.lane.b32.xlu0 %v1380_v43, %s4938_s0  ;;  %v5856_v63 = vpop.f32.mrb[5].mxu0 }
 0x15f   :  { %v5858_v2 = vpop.f32.mrb[6].mxu0  ;;  %v5860_v3 = vpop.f32.mrb[6].mxu1 }
 0x160   :  { %v5862_v6 = vpop.f32.mrb[7].mxu1  ;;  %2234 = vrot.lane.b32.xlu1 %v1610_v50, %s4938_s0  ;;  %v5865_v59 = vpop.f32.mrb[7].mxu0 }
 0x162   :  { %2232 = vrot.lane.b32.xlu0 %v1606_v42, %s4938_s0 }
 0x164   :  { %2954 = vrot.lane.b32.xlu1 %v2729_v9, %s4939_s16 }
 0x165   :  { %v5874_v11 = vpop.f32.mrb[8].mxu0  ;;  %v5876_v61 = vpop.f32.mrb[8].mxu1 }
 0x166   :  { %v5879_v0 = vpop.f32.mrb[9].mxu1  ;;  %2123 = vrot.lane.b32.xlu0 %v1382_v44, %s4938_s0  ;;  %v5882_v13 = vpop.f32.mrb[9].mxu0 }
 0x167   :  { %v5884_v16 = vpop.f32.mrb[10].mxu0  ;;  %v5886_v18 = vpop.f32.mrb[10].mxu1 }
 0x168   :  { %v5889_v20 = vpop.f32.mrb[11].mxu1  ;;  %2958 = vrot.lane.b32.xlu1 %v2731_v12, %s4939_s16  ;;  %v5892_v21 = vpop.f32.mrb[11].mxu0 }
 0x16a   :  { %2952 = vrot.lane.b32.xlu0 %v2728_v19, %s4939_s16  ;;  %v5969_v19 = vpop.permute.xlu1 %2673 }
 0x16b   :  { %8831 = vst [vmem:[#allocation20_spill] sm:$0xff] %v5969_v19 }
 0x16c   :  { %2966 = vrot.lane.b32.xlu1 %v2735_v49, %s4939_s16  ;;  %v2742_v49 = vmul.f32 %v5969_v19, %v5849_v57 }
 0x16d   :  { %v5900_v4 = vpop.f32.mrb[12].mxu0  ;;  %v5902_v7 = vpop.f32.mrb[12].mxu1 }
 0x16e   :  { %v5905_v28 = vpop.f32.mrb[13].mxu1  ;;  %2956 = vrot.lane.b32.xlu0 %v2730_v23, %s4939_s16  ;;  %v5908_v29 = vpop.f32.mrb[13].mxu0 }
 0x16f   :  { %v5910_v30 = vpop.f32.mrb[14].mxu0  ;;  %v5912_v14 = vpop.f32.mrb[14].mxu1 }
 0x170   :  { %v5915_v31 = vpop.f32.mrb[15].mxu1  ;;  %2970 = vrot.lane.b32.xlu1 %v2737_v26, %s4939_s16  ;;  %v5918_v32 = vpop.f32.mrb[15].mxu0 }
 0x172   :  { %2968 = vrot.lane.b32.xlu0 %v2736_v15, %s4939_s16  ;;  %v2743_v15 = vmul.f32 %v5969_v19, %v5856_v63 }
 0x174   :  { %2126 = vrot.lane.b32.xlu1 %v5849_v57, %s4938_s0  ;;  %v2744_v57 = vmul.f32 %v5969_v19, %v5851_v55 }
 0x175   :  { %v5924_v36 = vpop.f32.mrb[16].mxu0  ;;  %v5926_v24 = vpop.f32.mrb[16].mxu1 }
 0x176   :  { %v5928_v25 = vpop.f32.mrb[17].mxu1  ;;  %2972 = vrot.lane.b32.xlu0 %v2738_v33, %s4939_s16  ;;  %v5931_v38 = vpop.f32.mrb[17].mxu0 }
 0x177   :  { %v5933_v39 = vpop.f32.mrb[18].mxu0  ;;  %v5935_v40 = vpop.f32.mrb[18].mxu1 }
 0x178   :  { %v5937_v37 = vpop.f32.mrb[19].mxu1  ;;  %2129 = vrot.lane.b32.xlu1 %v5858_v2, %s4938_s0  ;;  %v5941_v41 = vpop.f32.mrb[19].mxu0 }
 0x17a   :  { %2204 = vrot.lane.b32.xlu0 %v5851_v55, %s4938_s0 }
 0x17c   :  { %2206 = vrot.lane.b32.xlu1 %v5860_v3, %s4938_s0 }
 0x17d   :  { %v5947_v42 = vpop.f32.mrb[20].mxu0  ;;  %v5949_v43 = vpop.f32.mrb[20].mxu1 }
 0x17e   :  { %v5951_v44 = vpop.f32.mrb[21].mxu1  ;;  %2172 = vrot.lane.b32.xlu0 %v5856_v63, %s4938_s0  ;;  %v5955_v47 = vpop.f32.mrb[21].mxu0  ;;  %v2745_v63 = vmul.f32 %v5969_v19, %v5853_v60 }
 0x17f   :  { %v5957_v48 = vpop.f32.mrb[22].mxu0  ;;  %v5959_v50 = vpop.f32.mrb[22].mxu1 }
 0x180   :  { %v5961_v9 = vpop.f32.mrb[23].mxu1  ;;  %2174 = vrot.lane.b32.xlu1 %v5865_v59, %s4938_s0  ;;  %v5965_v12 = vpop.f32.mrb[23].mxu0 }
 0x182   :  { %2236 = vrot.lane.b32.xlu0 %v5853_v60, %s4938_s0 }
 0x184   :  { %2238 = vrot.lane.b32.xlu1 %v5862_v6, %s4938_s0 }
 0x185   :  { %v5975_v23 = vpop.f32.mrb[24].mxu0  ;;  %v5977_v26 = vpop.f32.mrb[24].mxu1 }
 0x186   :  { %v5981_v33 = vpop.f32.mrb[25].mxu1  ;;  %2980 = vrot.lane.b32.xlu0 %v2742_v49, %s4939_s16  ;;  %v5984_v10 = vpop.f32.mrb[25].mxu0 }
 0x187   :  { %v5986_v53 = vpop.f32.mrb[26].mxu0  ;;  %v5988_v54 = vpop.f32.mrb[26].mxu1 }
 0x188   :  { %v5992_v17 = vpop.f32.mrb[27].mxu1  ;;  %2982 = vrot.lane.b32.xlu1 %v2743_v15, %s4939_s16  ;;  %v5995_v27 = vpop.f32.mrb[27].mxu0 }
 0x189   :  { %v6000_v49 = vpop.permute.xlu1 %2677 }
 0x18a   :  { %2984 = vrot.lane.b32.xlu0 %v2744_v57, %s4939_s16  ;;  %8832 = vst [vmem:[#allocation21_spill] sm:$0xff] %v6000_v49  ;;  %v2750_v5 = vmul.f32 %v6000_v49, %v5865_v59  ;;  %v2749_v15 = vmul.f32 %v6000_v49, %v5858_v2  ;;  %v2752_v59 = vmul.f32 %v6000_v49, %v5862_v6 }
 0x18b   :  { %v2751_v2 = vmul.f32 %v6000_v49, %v5860_v3 }
 0x18c   :  { %2986 = vrot.lane.b32.xlu1 %v2745_v63, %s4939_s16 }
 0x18d   :  { %v6005_v1 = vpop.f32.mrb[28].mxu0  ;;  %v6007_v55 = vpop.f32.mrb[28].mxu1 }
 0x18e   :  { %8833 = vst [vmem:[#allocation22_spill] sm:$0xff] %v6007_v55  ;;  %v6011_v58 = vpop.f32.mrb[29].mxu1  ;;  %2996 = vrot.lane.b32.xlu0 %v2750_v5, %s4939_s16  ;;  %v6014_v60 = vpop.f32.mrb[29].mxu0 }
 0x18f   :  { %8834 = vst [vmem:[#allocation23_spill] sm:$0xff] %v6011_v58  ;;  %8835 = vst [vmem:[#allocation24_spill] sm:$0xff] %v6014_v60  ;;  %v6016_v57 = vpop.f32.mrb[30].mxu0  ;;  %v6018_v62 = vpop.f32.mrb[30].mxu1 }
 0x190   :  { %8836 = vst [vmem:[#allocation25_spill] sm:$0xff] %v6018_v62  ;;  %v6022_v63 = vpop.f32.mrb[31].mxu1  ;;  %2994 = vrot.lane.b32.xlu1 %v2749_v15, %s4939_s16  ;;  %v6025_v52 = vpop.f32.mrb[31].mxu0 }
 0x191   :  { %8837 = vst [vmem:[#allocation26_spill] sm:$0xff] %v6022_v63  ;;  %8838 = vst [vmem:[#allocation27_spill] sm:$0xff] %v6025_v52  ;;  %v6064_v19 = vpop.permute.xlu1 %2685 }
 0x192   :  { %3000 = vrot.lane.b32.xlu0 %v2752_v59, %s4939_s16  ;;  %8840 = vst [vmem:[#allocation29_spill] sm:$0xff] %v6064_v19 }
 0x194   :  { %2998 = vrot.lane.b32.xlu1 %v2751_v2, %s4939_s16 }
 0x195   :  { %v4463_v5 = vpop.f32.mrb[32].mxu1 }
 0x196   :  { %2132 = vrot.lane.b32.xlu0 %v5874_v11, %s4938_s0  ;;  %v4464_v56 = vpop.f32.mrb[33].mxu1 }
 0x197   :  { %v6033_v46 = vadd.f32 %v4464_v56, %v4463_v5  ;;  %v4466_v6 = vpop.f32.mrb[34].mxu1 }
 0x198   :  { %2135 = vrot.lane.b32.xlu1 %v5884_v16, %s4938_s0  ;;  %v4467_v15 = vpop.f32.mrb[35].mxu1 }
 0x199   :  { %v6037_v51 = vadd.f32 %v4467_v15, %v4466_v6  ;;  %v6053_v15 = vpop.permute.xlu0 %2681 }
 0x19a   :  { %2208 = vrot.lane.b32.xlu0 %v5876_v61, %s4938_s0  ;;  %8839 = vst [vmem:[#allocation28_spill] sm:$0xff] %v6053_v15  ;;  %v2756_v35 = vmul.f32 %v6053_v15, %v5874_v11  ;;  %v2758_v22 = vmul.f32 %v6053_v15, %v5876_v61  ;;  %v2759_v34 = vmul.f32 %v6053_v15, %v5879_v0 }
 0x19b   :  { %v2763_v61 = vmul.f32 %v6064_v19, %v5884_v16 }
 0x19c   :  { %2210 = vrot.lane.b32.xlu1 %v5886_v18, %s4938_s0 }
 0x19d   :  { %v4469_v3 = vpop.f32.mrb[36].mxu1 }
 0x19e   :  { %2176 = vrot.lane.b32.xlu0 %v5882_v13, %s4938_s0  ;;  %v4470_v59 = vpop.f32.mrb[37].mxu1 }
 0x19f   :  { %v6045_v56 = vadd.f32 %v4470_v59, %v4469_v3  ;;  %v4472_v2 = vpop.f32.mrb[38].mxu1  ;;  %v2757_v59 = vmul.f32 %v6053_v15, %v5882_v13  ;;  %v2764_v13 = vmul.f32 %v6064_v19, %v5892_v21  ;;  %v2765_v15 = vmul.f32 %v6064_v19, %v5886_v18 }
 0x1a0   :  { %2178 = vrot.lane.b32.xlu1 %v5892_v21, %s4938_s0  ;;  %v4473_v5 = vpop.f32.mrb[39].mxu1 }
 0x1a1   :  { %v6049_v6 = vadd.f32 %v4473_v5, %v4472_v2 }
 0x1a2   :  { %2240 = vrot.lane.b32.xlu0 %v5879_v0, %s4938_s0 }
 0x1a4   :  { %2242 = vrot.lane.b32.xlu1 %v5889_v20, %s4938_s0 }
 0x1a5   :  { %v4475_v3 = vpop.f32.mrb[40].mxu1 }
 0x1a6   :  { %3008 = vrot.lane.b32.xlu0 %v2756_v35, %s4939_s16  ;;  %v4476_v49 = vpop.f32.mrb[41].mxu1  ;;  %v6074_v35 = vpop.permute.xlu0 %2689 }
 0x1a7   :  { %v6062_v2 = vadd.f32 %v4476_v49, %v4475_v3  ;;  %v4478_v5 = vpop.f32.mrb[42].mxu1  ;;  %8841 = vst [vmem:[#allocation30_spill] sm:$0xff] %v6074_v35  ;;  %v6079_v3 = vpop.permute.xlu1 %2693  ;;  %v2770_v58 = vmul.f32 %v6074_v35, %v5900_v4  ;;  %v2771_v52 = vmul.f32 %v6074_v35, %v5908_v29 }
 0x1a8   :  { %3010 = vrot.lane.b32.xlu1 %v2757_v59, %s4939_s16  ;;  %v4479_v11 = vpop.f32.mrb[43].mxu1  ;;  %8842 = vst [vmem:[#allocation31_spill] sm:$0xff] %v6079_v3 }
 0x1a9   :  { %v6069_v8 = vadd.f32 %v4479_v11, %v4478_v5 }
 0x1aa   :  { %3012 = vrot.lane.b32.xlu0 %v2758_v22, %s4939_s16  ;;  %v2766_v22 = vmul.f32 %v6064_v19, %v5889_v20 }
 0x1ab   :  { %v6096_v16 = vpop.permute.xlu1 %2701 }
 0x1ac   :  { %3014 = vrot.lane.b32.xlu1 %v2759_v34, %s4939_s16  ;;  %v6091_v34 = vpop.permute.xlu0 %2697 }
 0x1ad   :  { %v4481_v49 = vpop.f32.mrb[44].mxu1  ;;  %8843 = vst [vmem:[#allocation32_spill] sm:$0xff] %v6091_v34 }
 0x1ae   :  { %3024 = vrot.lane.b32.xlu0 %v2764_v13, %s4939_s16  ;;  %v4482_v59 = vpop.f32.mrb[45].mxu1 }
 0x1af   :  { %v6084_v5 = vadd.f32 %v4482_v59, %v4481_v49  ;;  %v4484_v0 = vpop.f32.mrb[46].mxu1 }
 0x1b0   :  { %3022 = vrot.lane.b32.xlu1 %v2763_v61, %s4939_s16  ;;  %v4485_v21 = vpop.f32.mrb[47].mxu1  ;;  %v6103_v59 = vpop.permute.xlu0 %2705 }
 0x1b1   :  { %v6089_v11 = vadd.f32 %v4485_v21, %v4484_v0 }
 0x1b2   :  { %3028 = vrot.lane.b32.xlu0 %v2766_v22, %s4939_s16  ;;  %v6109_v22 = vpop.permute.xlu1 %2709 }
 0x1b4   :  { %3026 = vrot.lane.b32.xlu1 %v2765_v15, %s4939_s16  ;;  %v6115_v21 = vpop.permute.xlu0 %2713 }
 0x1b5   :  { %v4487_v13 = vpop.f32.mrb[48].mxu1 }
 0x1b6   :  { %2138 = vrot.lane.b32.xlu0 %v5900_v4, %s4938_s0  ;;  %v4488_v20 = vpop.f32.mrb[49].mxu1 }
 0x1b7   :  { %v6101_v49 = vadd.f32 %v4488_v20, %v4487_v13  ;;  %v4490_v61 = vpop.f32.mrb[50].mxu1 }
 0x1b8   :  { %2141 = vrot.lane.b32.xlu1 %v5910_v30, %s4938_s0  ;;  %v4491_v18 = vpop.f32.mrb[51].mxu1  ;;  %v6129_v63 = vpop.permute.xlu0 %2721 }
 0x1b9   :  { %v6107_v0 = vadd.f32 %v4491_v18, %v4490_v61  ;;  %v6121_v61 = vpop.permute.xlu1 %2717  ;;  %8844 = vst [vmem:[#allocation33_spill] sm:$0xff] %v6129_v63  ;;  %v2772_v63 = vmul.f32 %v6074_v35, %v5902_v7 }
 0x1ba   :  { %2212 = vrot.lane.b32.xlu0 %v5902_v7, %s4938_s0 }
 0x1bc   :  { %2214 = vrot.lane.b32.xlu1 %v5912_v14, %s4938_s0 }
 0x1bd   :  { %v4493_v15 = vpop.f32.mrb[52].mxu1 }
 0x1be   :  { %2180 = vrot.lane.b32.xlu0 %v5908_v29, %s4938_s0  ;;  %v4494_v13 = vpop.f32.mrb[53].mxu1 }
 0x1bf   :  { %v6119_v20 = vadd.f32 %v4494_v13, %v4493_v15  ;;  %v4496_v19 = vpop.f32.mrb[54].mxu1  ;;  %v6135_v13 = vpop.permute.xlu1 %2725 }
 0x1c0   :  { %2182 = vrot.lane.b32.xlu1 %v5918_v32, %s4938_s0  ;;  %v4497_v18 = vpop.f32.mrb[55].mxu1  ;;  %8845 = vst [vmem:[#allocation34_spill] sm:$0xff] %v6135_v13  ;;  %v2773_v13 = vmul.f32 %v6074_v35, %v5905_v28 }
 0x1c1   :  { %v6125_v45 = vadd.f32 %v4497_v18, %v4496_v19 }
 0x1c2   :  { %2244 = vrot.lane.b32.xlu0 %v5905_v28, %s4938_s0 }
 0x1c4   :  { %2246 = vrot.lane.b32.xlu1 %v5915_v31, %s4938_s0 }
 0x1c5   :  { %v4499_v15 = vpop.f32.mrb[56].mxu1 }
 0x1c6   :  { %3036 = vrot.lane.b32.xlu0 %v2770_v58, %s4939_s16  ;;  %v4500_v19 = vpop.f32.mrb[57].mxu1  ;;  %v2778_v58 = vmul.f32 %v6079_v3, %v5918_v32 }
 0x1c7   :  { %v6140_v18 = vadd.f32 %v4500_v19, %v4499_v15  ;;  %v4502_v60 = vpop.f32.mrb[58].mxu1 }
 0x1c8   :  { %v6144_v62 = vpop.permute.xlu0 %2120  ;;  %3038 = vrot.lane.b32.xlu1 %v2771_v52, %s4939_s16  ;;  %v4503_v4 = vpop.f32.mrb[59].mxu1  ;;  %v2777_v52 = vmul.f32 %v6079_v3, %v5910_v30  ;;  %v2779_v30 = vmul.f32 %v6079_v3, %v5912_v14 }
 0x1c9   :  { %v6147_v55 = vadd.f32 %v4503_v4, %v4502_v60 }
 0x1ca   :  { %v6151_v29 = vpop.permute.xlu1 %2202  ;;  %3040 = vrot.lane.b32.xlu0 %v2772_v63, %s4939_s16  ;;  %v2780_v63 = vmul.f32 %v6079_v3, %v5915_v31 }
 0x1cb   :  { %8846 = vst [vmem:[#allocation35_spill] sm:$0xff] %v6151_v29 }
 0x1cc   :  { %v6156_v15 = vpop.permute.xlu0 %2200  ;;  %3042 = vrot.lane.b32.xlu1 %v2773_v13, %s4939_s16 }
 0x1cd   :  { %8847 = vst [vmem:[#allocation36_spill] sm:$0xff] %v6156_v15  ;;  %v4505_v7 = vpop.f32.mrb[60].mxu1 }
 0x1ce   :  { %v6161_v60 = vpop.permute.xlu1 %2170  ;;  %3052 = vrot.lane.b32.xlu0 %v2778_v58, %s4939_s16  ;;  %v4506_v28 = vpop.f32.mrb[61].mxu1 }
 0x1cf   :  { %v6164_v19 = vadd.f32 %v4506_v28, %v4505_v7  ;;  %v4508_v4 = vpop.f32.mrb[62].mxu1 }
 0x1d0   :  { %v6168_v32 = vpop.permute.xlu0 %2168  ;;  %3050 = vrot.lane.b32.xlu1 %v2777_v52, %s4939_s16  ;;  %v4509_v13 = vpop.f32.mrb[63].mxu1 }
 0x1d1   :  { %v6171_v35 = vadd.f32 %v4509_v13, %v4508_v4 }
 0x1d2   :  { %v6175_v29 = vpop.permute.xlu1 %2234  ;;  %3056 = vrot.lane.b32.xlu0 %v2780_v63, %s4939_s16 }
 0x1d3   :  { %8848 = vst [vmem:[#allocation37_spill] sm:$0xff] %v6175_v29 }
 0x1d4   :  { %v6178_v58 = vpop.permute.xlu0 %2232  ;;  %3054 = vrot.lane.b32.xlu1 %v2779_v30, %s4939_s16 }
 0x1d5   :  { %8849 = vst [vmem:[#allocation38_spill] sm:$0xff] %v6178_v58  ;;  %v6181_v7 = vpop.f32.mrb[32].mxu0  ;;  %v4545_v31 = vpop.f32.mrb[64].mxu1 }
 0x1d6   :  { %v6184_v28 = vadd.f32 %v4545_v31, %v6045_v56  ;;  %v2040_v52 = vpop.f32.mrb[65].mxu1  ;;  %v6186_v4 = vpop.permute.xlu1 %2954  ;;  %2144 = vrot.lane.b32.xlu0 %v5924_v36, %s4938_s0 }
 0x1d7   :  { %v6191_v14 = vadd.f32 %v6033_v46, %v2040_v52  ;;  %v6193_v63 = vpop.f32.mrb[33].mxu0  ;;  %v4546_v13 = vpop.f32.mrb[66].mxu1 }
 0x1d8   :  { %8850 = vst [vmem:[#allocation39_spill] sm:$0xff] %v6184_v28  ;;  %v6195_v29 = vpop.f32.mrb[34].mxu0  ;;  %v6198_v30 = vadd.f32 %v4546_v13, %v6049_v6  ;;  %v2043_v58 = vpop.f32.mrb[67].mxu1  ;;  %2147 = vrot.lane.b32.xlu1 %v5933_v39, %s4938_s0 }
 0x1d9   :  { %8851 = vst [vmem:[#allocation40_spill] sm:$0xff] %v6191_v14  ;;  %v6203_v56 = vadd.f32 %v6037_v51, %v2043_v58  ;;  %v6205_v31 = vpop.permute.xlu0 %2123  ;;  %v6207_v3 = vpop.f32.mrb[35].mxu0 }
 0x1da   :  { %8852 = vst [vmem:[#allocation41_spill] sm:$0xff] %v6198_v30  ;;  %8854 = vst [vmem:[#allocation43_spill] sm:$0xff] %v6207_v3  ;;  %v6209_v46 = vpop.permute.xlu1 %2958  ;;  %2216 = vrot.lane.b32.xlu0 %v5926_v24, %s4938_s0 }
 0x1db   :  { %8853 = vst [vmem:[#allocation42_spill] sm:$0xff] %v6203_v56 }
 0x1dc   :  { %2218 = vrot.lane.b32.xlu1 %v5935_v40, %s4938_s0 }
 0x1dd   :  { %v6215_v6 = vpop.permute.xlu0 %2952  ;;  %v6217_v52 = vpop.f32.mrb[36].mxu0 }
 0x1de   :  { %8855 = vst [vmem:[#allocation44_spill] sm:$0xff] %v6215_v6  ;;  %8856 = vst [vmem:[#allocation45_spill] sm:$0xff] %v6217_v52  ;;  %v4549_v13 = vpop.f32.mrb[68].mxu1  ;;  %v6219_v30 = vpop.permute.xlu1 %2966  ;;  %2184 = vrot.lane.b32.xlu0 %v5931_v38, %s4938_s0 }
 0x1df   :  { %8857 = vst [vmem:[#allocation46_spill] sm:$0xff] %v6219_v30  ;;  %v6224_v51 = vadd.f32 %v4549_v13, %v6084_v5  ;;  %v2056_v58 = vpop.f32.mrb[69].mxu1  ;;  %v6226_v56 = vpop.f32.mrb[37].mxu0 }
 0x1e0   :  { %8859 = vst [vmem:[#allocation48_spill] sm:$0xff] %v6226_v56  ;;  %v6229_v14 = vadd.f32 %v6062_v2, %v2056_v58  ;;  %v6231_v28 = vpop.f32.mrb[38].mxu0  ;;  %v4550_v6 = vpop.f32.mrb[70].mxu1  ;;  %2186 = vrot.lane.b32.xlu1 %v5941_v41, %s4938_s0  ;;  %v2784_v2 = vmul.f32 %v6091_v34, %v5924_v36 }
 0x1e1   :  { %8858 = vst [vmem:[#allocation47_spill] sm:$0xff] %v6224_v51  ;;  %v6236_v52 = vadd.f32 %v4550_v6, %v6089_v11  ;;  %v2059_v30 = vpop.f32.mrb[71].mxu1  ;;  %v6238_v3 = vpop.permute.xlu0 %2956 }
 0x1e2   :  { %8860 = vst [vmem:[#allocation49_spill] sm:$0xff] %v6229_v14  ;;  %v6241_v5 = vadd.f32 %v6069_v8, %v2059_v30  ;;  %v6243_v13 = vpop.f32.mrb[39].mxu0  ;;  %v6245_v51 = vpop.permute.xlu1 %2970  ;;  %2248 = vrot.lane.b32.xlu0 %v5928_v25, %s4938_s0  ;;  %v2785_v8 = vmul.f32 %v6091_v34, %v5931_v38  ;;  %v2786_v14 = vmul.f32 %v6091_v34, %v5926_v24 }
 0x1e3   :  { %8861 = vst [vmem:[#allocation50_spill] sm:$0xff] %v6236_v52  ;;  %8863 = vst [vmem:[#allocation52_spill] sm:$0xff] %v6243_v13 }
 0x1e4   :  { %8862 = vst [vmem:[#allocation51_spill] sm:$0xff] %v6241_v5  ;;  %2250 = vrot.lane.b32.xlu1 %v5937_v37, %s4938_s0 }
 0x1e5   :  { %v6253_v11 = vpop.permute.xlu0 %2968  ;;  %v6255_v6 = vpop.f32.mrb[40].mxu0 }
 0x1e6   :  { %8864 = vst [vmem:[#allocation53_spill] sm:$0xff] %v6255_v6  ;;  %v4553_v30 = vpop.f32.mrb[72].mxu1  ;;  %v6259_v58 = vpop.permute.xlu1 %2126  ;;  %3064 = vrot.lane.b32.xlu0 %v2784_v2, %s4939_s16 }
 0x1e7   :  { %v6263_v52 = vadd.f32 %v4553_v30, %v6119_v20  ;;  %v2072_v5 = vpop.f32.mrb[73].mxu1  ;;  %v6265_v36 = vpop.f32.mrb[41].mxu0  ;;  %v2787_v30 = vmul.f32 %v6091_v34, %v5928_v25  ;;  %v2791_v25 = vmul.f32 %v6096_v16, %v5933_v39 }
 0x1e8   :  { %v6270_v13 = vadd.f32 %v6101_v49, %v2072_v5  ;;  %v6272_v6 = vpop.f32.mrb[42].mxu0  ;;  %v4554_v38 = vpop.f32.mrb[74].mxu1  ;;  %3066 = vrot.lane.b32.xlu1 %v2785_v8, %s4939_s16  ;;  %v2792_v5 = vmul.f32 %v6096_v16, %v5941_v41  ;;  %v2794_v41 = vmul.f32 %v6096_v16, %v5937_v37 }
 0x1e9   :  { %8865 = vst [vmem:[#allocation54_spill] sm:$0xff] %v6263_v52  ;;  %v6276_v56 = vadd.f32 %v4554_v38, %v6125_v45  ;;  %v2075_v2 = vpop.f32.mrb[75].mxu1  ;;  %v6278_v20 = vpop.permute.xlu0 %2972 }
 0x1ea   :  { %8866 = vst [vmem:[#allocation55_spill] sm:$0xff] %v6278_v20  ;;  %v6283_v52 = vadd.f32 %v6107_v0, %v2075_v2  ;;  %v6285_v24 = vpop.f32.mrb[43].mxu0  ;;  %v6287_v49 = vpop.permute.xlu1 %2129  ;;  %3068 = vrot.lane.b32.xlu0 %v2786_v14, %s4939_s16 }
 0x1ec   :  { %3070 = vrot.lane.b32.xlu1 %v2787_v30, %s4939_s16 }
 0x1ed   :  { %v6293_v45 = vpop.permute.xlu0 %2204  ;;  %v6295_v8 = vpop.f32.mrb[44].mxu0 }
 0x1ee   :  { %8867 = vst [vmem:[#allocation56_spill] sm:$0xff] %v6293_v45  ;;  %v4557_v0 = vpop.f32.mrb[76].mxu1  ;;  %v6299_v38 = vpop.permute.xlu1 %2206  ;;  %3080 = vrot.lane.b32.xlu0 %v2792_v5, %s4939_s16 }
 0x1ef   :  { %8868 = vst [vmem:[#allocation57_spill] sm:$0xff] %v6299_v38  ;;  %v6303_v2 = vadd.f32 %v4557_v0, %v6164_v19  ;;  %v2088_v14 = vpop.f32.mrb[77].mxu1  ;;  %v6305_v34 = vpop.f32.mrb[45].mxu0  ;;  %v2793_v0 = vmul.f32 %v6096_v16, %v5935_v40 }
 0x1f0   :  { %8870 = vst [vmem:[#allocation59_spill] sm:$0xff] %v6305_v34  ;;  %v6310_v30 = vadd.f32 %v6140_v18, %v2088_v14  ;;  %v6312_v45 = vpop.f32.mrb[46].mxu0  ;;  %v4558_v39 = vpop.f32.mrb[78].mxu1  ;;  %3078 = vrot.lane.b32.xlu1 %v2791_v25, %s4939_s16 }
 0x1f1   :  { %8869 = vst [vmem:[#allocation58_spill] sm:$0xff] %v6303_v2  ;;  %v6316_v38 = vadd.f32 %v4558_v39, %v6171_v35  ;;  %v2091_v5 = vpop.f32.mrb[79].mxu1  ;;  %v6318_v19 = vpop.permute.xlu0 %2172 }
 0x1f2   :  { %8871 = vst [vmem:[#allocation60_spill] sm:$0xff] %v6318_v19  ;;  %v6323_v2 = vadd.f32 %v6147_v55, %v2091_v5  ;;  %v6325_v37 = vpop.f32.mrb[47].mxu0  ;;  %v6327_v18 = vpop.permute.xlu1 %2174  ;;  %3084 = vrot.lane.b32.xlu0 %v2794_v41, %s4939_s16 }
 0x1f3   :  { %8872 = vst [vmem:[#allocation61_spill] sm:$0xff] %v6325_v37  ;;  %8873 = vst [vmem:[#allocation62_spill] sm:$0xff] %v6327_v18 }
 0x1f4   :  { %3082 = vrot.lane.b32.xlu1 %v2793_v0, %s4939_s16 }
 0x1f5   :  { %v6331_v25 = vpop.permute.xlu0 %2236  ;;  %v6333_v35 = vpop.f32.mrb[48].mxu0 }
 0x1f6   :  { %8874 = vst [vmem:[#allocation63_spill] sm:$0xff] %v6331_v25  ;;  %v6335_v14 = vpop.permute.xlu1 %2238  ;;  %2150 = vrot.lane.b32.xlu0 %v5947_v42, %s4938_s0  ;;  %v6339_v40 = vpop.f32.mrb[49].mxu0 }
 0x1f7   :  { %8875 = vst [vmem:[#allocation64_spill] sm:$0xff] %v6335_v14  ;;  %8876 = vst [vmem:[#allocation65_spill] sm:$0xff] %v6339_v40  ;;  %v6341_v55 = vpop.f32.mrb[50].mxu0 }
 0x1f8   :  { %8877 = vst [vmem:[#allocation66_spill] sm:$0xff] %v6341_v55  ;;  %2153 = vrot.lane.b32.xlu1 %v5957_v48, %s4938_s0  ;;  %v6345_v39 = vpop.f32.mrb[51].mxu0 }
 0x1f9   :  { %8878 = vst [vmem:[#allocation67_spill] sm:$0xff] %v6345_v39  ;;  %v6347_v41 = vpop.permute.xlu0 %2980 }
 0x1fa   :  { %v6349_v5 = vpop.permute.xlu1 %2982  ;;  %2220 = vrot.lane.b32.xlu0 %v5949_v43, %s4938_s0 }
 0x1fc   :  { %2222 = vrot.lane.b32.xlu1 %v5959_v50, %s4938_s0 }
 0x1fd   :  { %v6355_v0 = vpop.permute.xlu0 %2984  ;;  %v6357_v14 = vpop.f32.mrb[52].mxu0 }
 0x1fe   :  { %8879 = vst [vmem:[#allocation68_spill] sm:$0xff] %v6355_v0  ;;  %8880 = vst [vmem:[#allocation69_spill] sm:$0xff] %v6357_v14  ;;  %v6359_v25 = vpop.permute.xlu1 %2986  ;;  %2188 = vrot.lane.b32.xlu0 %v5955_v47, %s4938_s0  ;;  %v6363_v18 = vpop.f32.mrb[53].mxu0 }
 0x1ff   :  { %8881 = vst [vmem:[#allocation70_spill] sm:$0xff] %v6359_v25  ;;  %8882 = vst [vmem:[#allocation71_spill] sm:$0xff] %v6363_v18  ;;  %v6365_v19 = vpop.f32.mrb[54].mxu0  ;;  %v2798_v25 = vmul.f32 %v6103_v59, %v5947_v42  ;;  %v2800_v42 = vmul.f32 %v6103_v59, %v5949_v43 }
 0x200   :  { %8883 = vst [vmem:[#allocation72_spill] sm:$0xff] %v6365_v19  ;;  %2190 = vrot.lane.b32.xlu1 %v5965_v12, %s4938_s0  ;;  %v6369_v39 = vpop.f32.mrb[55].mxu0 }
 0x201   :  { %8884 = vst [vmem:[#allocation73_spill] sm:$0xff] %v6369_v39  ;;  %v6371_v40 = vpop.permute.xlu0 %2996  ;;  %v2799_v39 = vmul.f32 %v6103_v59, %v5955_v47  ;;  %v2801_v47 = vmul.f32 %v6103_v59, %v5951_v44 }
 0x202   :  { %8885 = vst [vmem:[#allocation74_spill] sm:$0xff] %v6371_v40  ;;  %v6373_v55 = vpop.permute.xlu1 %2994  ;;  %2252 = vrot.lane.b32.xlu0 %v5951_v44, %s4938_s0 }
 0x203   :  { %8886 = vst [vmem:[#allocation75_spill] sm:$0xff] %v6373_v55 }
 0x204   :  { %2254 = vrot.lane.b32.xlu1 %v5961_v9, %s4938_s0 }
 0x205   :  { %v6381_v0 = vpop.permute.xlu0 %3000  ;;  %v6383_v18 = vpop.f32.mrb[56].mxu0 }
 0x206   :  { %8887 = vst [vmem:[#allocation76_spill] sm:$0xff] %v6381_v0  ;;  %8888 = vst [vmem:[#allocation77_spill] sm:$0xff] %v6383_v18  ;;  %v6387_v19 = vpop.permute.xlu1 %2998  ;;  %3092 = vrot.lane.b32.xlu0 %v2798_v25, %s4939_s16  ;;  %v6390_v55 = vpop.f32.mrb[57].mxu0  ;;  %v2806_v25 = vmul.f32 %v6109_v22, %v5965_v12  ;;  %v2808_v12 = vmul.f32 %v6109_v22, %v5961_v9 }
 0x207   :  { %8889 = vst [vmem:[#allocation78_spill] sm:$0xff] %v6387_v19  ;;  %8890 = vst [vmem:[#allocation79_spill] sm:$0xff] %v6390_v55  ;;  %v6392_v40 = vpop.f32.mrb[58].mxu0 }
 0x208   :  { %3094 = vrot.lane.b32.xlu1 %v2799_v39, %s4939_s16  ;;  %v6397_v14 = vpop.f32.mrb[59].mxu0  ;;  %v2805_v39 = vmul.f32 %v6109_v22, %v5957_v48  ;;  %v2807_v48 = vmul.f32 %v6109_v22, %v5959_v50 }
 0x209   :  { %8891 = vst [vmem:[#allocation80_spill] sm:$0xff] %v6397_v14  ;;  %v6399_v0 = vpop.permute.xlu0 %2132 }
 0x20a   :  { %v6403_v18 = vpop.permute.xlu1 %2135  ;;  %3096 = vrot.lane.b32.xlu0 %v2800_v42, %s4939_s16 }
 0x20c   :  { %3098 = vrot.lane.b32.xlu1 %v2801_v47, %s4939_s16 }
 0x20d   :  { %v6409_v19 = vpop.permute.xlu0 %2208  ;;  %v6411_v43 = vpop.f32.mrb[60].mxu0 }
 0x20e   :  { %8892 = vst [vmem:[#allocation81_spill] sm:$0xff] %v6409_v19  ;;  %v6415_v14 = vpop.permute.xlu1 %2210  ;;  %3108 = vrot.lane.b32.xlu0 %v2806_v25, %s4939_s16  ;;  %v6418_v44 = vpop.f32.mrb[61].mxu0 }
 0x20f   :  { %8893 = vst [vmem:[#allocation82_spill] sm:$0xff] %v6415_v14  ;;  %8894 = vst [vmem:[#allocation83_spill] sm:$0xff] %v6418_v44  ;;  %v6420_v55 = vpop.f32.mrb[62].mxu0 }
 0x210   :  { %3106 = vrot.lane.b32.xlu1 %v2805_v39, %s4939_s16  ;;  %v6425_v42 = vpop.f32.mrb[63].mxu0 }
 0x211   :  { %8895 = vst [vmem:[#allocation84_spill] sm:$0xff] %v6425_v42  ;;  %v6427_v47 = vpop.permute.xlu0 %2176 }
 0x212   :  { %8896 = vst [vmem:[#allocation85_spill] sm:$0xff] %v6427_v47  ;;  %v6431_v19 = vpop.permute.xlu1 %2178  ;;  %3112 = vrot.lane.b32.xlu0 %v2808_v12, %s4939_s16 }
 0x213   :  { %8897 = vst [vmem:[#allocation86_spill] sm:$0xff] %v6431_v19 }
 0x214   :  { %3110 = vrot.lane.b32.xlu1 %v2807_v48, %s4939_s16 }
 0x215   :  { %v6435_v25 = vpop.permute.xlu0 %2240 }
 0x216   :  { %8898 = vst [vmem:[#allocation87_spill] sm:$0xff] %v6435_v25  ;;  %v6437_v14 = vpop.permute.xlu1 %2242  ;;  %2156 = vrot.lane.b32.xlu0 %v5975_v23, %s4938_s0  ;;  %v2812_v25 = vmul.f32 %v6115_v21, %v5975_v23  ;;  %v2815_v23 = vmul.f32 %v6115_v21, %v5981_v33 }
 0x217   :  { %8899 = vst [vmem:[#allocation88_spill] sm:$0xff] %v6437_v14 }
 0x218   :  { %2159 = vrot.lane.b32.xlu1 %v5986_v53, %s4938_s0 }
 0x219   :  { %v6443_v9 = vpop.permute.xlu0 %3008 }
 0x21a   :  { %8900 = vst [vmem:[#allocation89_spill] sm:$0xff] %v6443_v9  ;;  %v6445_v39 = vpop.permute.xlu1 %3010  ;;  %2224 = vrot.lane.b32.xlu0 %v5977_v26, %s4938_s0 }
 0x21b   :  { %8901 = vst [vmem:[#allocation90_spill] sm:$0xff] %v6445_v39 }
 0x21c   :  { %2226 = vrot.lane.b32.xlu1 %v5988_v54, %s4938_s0 }
 0x21d   :  { %v6451_v50 = vpop.permute.xlu0 %3012 }
 0x21e   :  { %8902 = vst [vmem:[#allocation91_spill] sm:$0xff] %v6451_v50  ;;  %v6453_v12 = vpop.permute.xlu1 %3014  ;;  %2192 = vrot.lane.b32.xlu0 %v5984_v10, %s4938_s0 }
 0x21f   :  { %8903 = vst [vmem:[#allocation92_spill] sm:$0xff] %v6453_v12  ;;  %v2813_v12 = vmul.f32 %v6115_v21, %v5984_v10  ;;  %v2820_v10 = vmul.f32 %v6121_v61, %v5995_v27 }
 0x220   :  { %2194 = vrot.lane.b32.xlu1 %v5995_v27, %s4938_s0  ;;  %v2821_v27 = vmul.f32 %v6121_v61, %v5988_v54  ;;  %v8918_v54 = vld [vmem:[#allocation22_spill] sm:$0xff] }
 0x221   :  { %v6459_v48 = vpop.permute.xlu0 %3024 }
 0x222   :  { %8904 = vst [vmem:[#allocation93_spill] sm:$0xff] %v6459_v48  ;;  %v6461_v14 = vpop.permute.xlu1 %3022  ;;  %2256 = vrot.lane.b32.xlu0 %v5981_v33, %s4938_s0  ;;  %v2822_v33 = vmul.f32 %v6121_v61, %v5992_v17 }
 0x223   :  { %8905 = vst [vmem:[#allocation94_spill] sm:$0xff] %v6461_v14  ;;  %v2814_v14 = vmul.f32 %v6115_v21, %v5977_v26  ;;  %v2819_v26 = vmul.f32 %v6121_v61, %v5986_v53 }
 0x224   :  { %2258 = vrot.lane.b32.xlu1 %v5992_v17, %s4938_s0 }
 0x225   :  { %v6469_v19 = vpop.permute.xlu0 %3028 }
 0x226   :  { %8906 = vst [vmem:[#allocation95_spill] sm:$0xff] %v6469_v19  ;;  %v6473_v50 = vpop.permute.xlu1 %3026  ;;  %3120 = vrot.lane.b32.xlu0 %v2812_v25, %s4939_s16 }
 0x227   :  { %8907 = vst [vmem:[#allocation96_spill] sm:$0xff] %v6473_v50 }
 0x228   :  { %3122 = vrot.lane.b32.xlu1 %v2813_v12, %s4939_s16 }
 0x229   :  { %v6479_v48 = vpop.permute.xlu0 %2138 }
 0x22a   :  { %8908 = vst [vmem:[#allocation97_spill] sm:$0xff] %v6479_v48  ;;  %v6483_v9 = vpop.permute.xlu1 %2141  ;;  %3124 = vrot.lane.b32.xlu0 %v2814_v14, %s4939_s16 }
 0x22b   :  { %8909 = vst [vmem:[#allocation98_spill] sm:$0xff] %v6483_v9 }
 0x22c   :  { %3126 = vrot.lane.b32.xlu1 %v2815_v23, %s4939_s16 }
 0x22d   :  { %v6489_v25 = vpop.permute.xlu0 %2212 }
 0x22e   :  { %8910 = vst [vmem:[#allocation99_spill] sm:$0xff] %v6489_v25  ;;  %v6493_v12 = vpop.permute.xlu1 %2214  ;;  %3136 = vrot.lane.b32.xlu0 %v2820_v10, %s4939_s16 }
 0x22f   :  { %8911 = vst [vmem:[#allocation100_spill] sm:$0xff] %v6493_v12 }
 0x230   :  { %3134 = vrot.lane.b32.xlu1 %v2819_v26, %s4939_s16  ;;  %v8919_v26 = vld [vmem:[#allocation25_spill] sm:$0xff] }
 0x231   :  { %v6499_v14 = vpop.permute.xlu0 %2180 }
 0x232   :  { %8912 = vst [vmem:[#allocation101_spill] sm:$0xff] %v6499_v14  ;;  %v6503_v23 = vpop.permute.xlu1 %2182  ;;  %3140 = vrot.lane.b32.xlu0 %v2822_v33, %s4939_s16 }
 0x233   :  { %8913 = vst [vmem:[#allocation102_spill] sm:$0xff] %v6503_v23  ;;  %v8923_v23 = vld [vmem:[#allocation27_spill] sm:$0xff] }
 0x234   :  { %3138 = vrot.lane.b32.xlu1 %v2821_v27, %s4939_s16 }
 0x235   :  { %v6507_v53 = vpop.permute.xlu0 %2244 }
 0x236   :  { %8914 = vst [vmem:[#allocation103_spill] sm:$0xff] %v6507_v53  ;;  %v6509_v12 = vpop.permute.xlu1 %2246  ;;  %2162 = vrot.lane.b32.xlu0 %v6005_v1, %s4938_s0 }
 0x237   :  { %8915 = vst [vmem:[#allocation104_spill] sm:$0xff] %v6509_v12  ;;  %v8922_v12 = vld [vmem:[#allocation24_spill] sm:$0xff] }
 0x238   :  { %2165 = vrot.lane.b32.xlu1 %v6016_v57, %s4938_s0 }
 0x239   :  { %v6515_v17 = vpop.permute.xlu0 %3036 }
 0x23a   :  { %8916 = vst [vmem:[#allocation105_spill] sm:$0xff] %v6515_v17  ;;  %v6517_v10 = vpop.permute.xlu1 %3038  ;;  %2228 = vrot.lane.b32.xlu0 %v8918_v54, %s4938_s0  ;;  %v8926_v17 = vld [vmem:[#allocation23_spill] sm:$0xff] }
 0x23b   :  { %8917 = vst [vmem:[#allocation106_spill] sm:$0xff] %v6517_v10  ;;  %v8927_v10 = vld [vmem:[#allocation33_spill] sm:$0xff] }
 0x23c   :  { %2230 = vrot.lane.b32.xlu1 %v8919_v26, %s4938_s0  ;;  %v2826_v14 = vmul.f32 %v8927_v10, %v6005_v1  ;;  %v2827_v19 = vmul.f32 %v8927_v10, %v8922_v12  ;;  %v2829_v1 = vmul.f32 %v8927_v10, %v8926_v17 }
 0x23d   :  { %v6523_v33 = vpop.permute.xlu0 %3040 }
 0x23e   :  { %8920 = vst [vmem:[#allocation22_spill] sm:$0xff] %v6523_v33  ;;  %v6525_v27 = vpop.permute.xlu1 %3042  ;;  %2196 = vrot.lane.b32.xlu0 %v8922_v12, %s4938_s0  ;;  %v8928_v33 = vld [vmem:[#allocation26_spill] sm:$0xff] }
 0x23f   :  { %8921 = vst [vmem:[#allocation25_spill] sm:$0xff] %v6525_v27  ;;  %v8933_v12 = vld [vmem:[#allocation34_spill] sm:$0xff] }
 0x240   :  { %2198 = vrot.lane.b32.xlu1 %v8923_v23, %s4938_s0 }
 0x241   :  { %v6531_v53 = vpop.permute.xlu0 %3052 }
 0x242   :  { %8924 = vst [vmem:[#allocation24_spill] sm:$0xff] %v6531_v53  ;;  %v6533_v25 = vpop.permute.xlu1 %3050  ;;  %2260 = vrot.lane.b32.xlu0 %v8926_v17, %s4938_s0  ;;  %v2360_v17 = vsel %vm2119_vm0, %v6168_v32, %v6144_v62 }
 0x243   :  { %8925 = vst [vmem:[#allocation27_spill] sm:$0xff] %v6533_v25  ;;  %v2828_v25 = vmul.f32 %v8927_v10, %v8918_v54  ;;  %v2833_v54 = vmul.f32 %v8933_v12, %v6016_v57  ;;  %v3178_v57 = vsel %vm3176_vm1, %v6186_v4, %v6238_v3 }
 0x244   :  { %2262 = vrot.lane.b32.xlu1 %v8928_v33, %s4938_s0 }
 0x245   :  { %v6541_v27 = vpop.permute.xlu0 %3056 }
 0x246   :  { %8929 = vst [vmem:[#allocation23_spill] sm:$0xff] %v6541_v27  ;;  %v6545_v50 = vpop.permute.xlu1 %3054  ;;  %3148 = vrot.lane.b32.xlu0 %v2826_v14, %s4939_s16  ;;  %v2834_v27 = vmul.f32 %v8933_v12, %v8923_v23  ;;  %v2376_v23 = vsel %vm2119_vm0, %v6156_v15, %v6168_v32  ;;  %v3179_v32 = vsel %vm3176_vm1, %v6238_v3, %v6209_v46  ;;  %v8941_v15 = vld [vmem:[#allocation2_spill] sm:$0xff] }
 0x247   :  { %8930 = vst [vmem:[#allocation33_spill] sm:$0xff] %v6545_v50  ;;  %v3185_v3 = vsel %vm3176_vm1, %v6245_v51, %v6278_v20 }
 0x248   :  { %3150 = vrot.lane.b32.xlu1 %v2827_v19, %s4939_s16 }
 0x249   :  { %v6551_v53 = vpop.permute.xlu0 %2144 }
 0x24a   :  { %8931 = vst [vmem:[#allocation26_spill] sm:$0xff] %v6551_v53  ;;  %v6555_v39 = vpop.permute.xlu1 %2147  ;;  %3152 = vrot.lane.b32.xlu0 %v2828_v25, %s4939_s16  ;;  %v2836_v25 = vmul.f32 %v8933_v12, %v8928_v33  ;;  %v2361_v33 = vsel %vm2119_vm0, %v6161_v60, %v6205_v31 }
 0x24b   :  { %8932 = vst [vmem:[#allocation107_spill] sm:$0xff] %v6555_v39  ;;  %v2546_v47 = vmul.f32 %v8941_v15, %v2361_v33 }
 0x24c   :  { %3154 = vrot.lane.b32.xlu1 %v2829_v1, %s4939_s16 }
 0x24d   :  { %v6561_v14 = vpop.permute.xlu0 %2216 }
 0x24e   :  { %8934 = vst [vmem:[#allocation34_spill] sm:$0xff] %v6561_v14  ;;  %v6565_v19 = vpop.permute.xlu1 %2218  ;;  %3164 = vrot.lane.b32.xlu0 %v2834_v27, %s4939_s16  ;;  %v2835_v27 = vmul.f32 %v8933_v12, %v8919_v26  ;;  %v8939_v26 = vld [vmem:[#allocation35_spill] sm:$0xff] }
 0x24f   :  { %8935 = vst [vmem:[#allocation108_spill] sm:$0xff] %v6565_v19  ;;  %v8937_v19 = vld [vmem:[#allocation4_spill] sm:$0xff] }
 0x250   :  { %3162 = vrot.lane.b32.xlu1 %v2833_v54, %s4939_s16  ;;  %v2538_v14 = vmul.f32 %v8937_v19, %v2360_v17  ;;  %v2539_v54 = vmul.f32 %v8937_v19, %v2376_v23  ;;  %v2377_v17 = vsel %vm2119_vm0, %v8939_v26, %v6161_v60 }
 0x251   :  { %v6580_v1 = vpop.permute.xlu0 %2184  ;;  %v2547_v60 = vmul.f32 %v8941_v15, %v2377_v17 }
 0x252   :  { %8936 = vst [vmem:[#allocation109_spill] sm:$0xff] %v6580_v1  ;;  %v6585_v50 = vpop.permute.xlu1 %2186  ;;  %3168 = vrot.lane.b32.xlu0 %v2836_v25, %s4939_s16  ;;  %v3403_v1 = vadd.f32 %v3178_v57, %v2538_v14  ;;  %v3184_v25 = vsel %vm3176_vm1, %v6253_v11, %v6245_v51  ;;  %v3404_v42 = vadd.f32 %v3179_v32, %v2539_v54  ;;  %v8950_v54 = vld [vmem:[#allocation43_spill] sm:$0xff] }
 0x253   :  { %8938 = vst [vmem:[#allocation4_spill] sm:$0xff] %v6585_v50  ;;  %v3411_v14 = vadd.f32 %v3184_v25, %v2546_v47  ;;  %v3412_v57 = vadd.f32 %v3185_v3, %v2547_v60  ;;  %v8949_v47 = vld [vmem:[#allocation17_spill] sm:$0xff] }
 0x254   :  { %3166 = vrot.lane.b32.xlu1 %v2835_v27, %s4939_s16  ;;  %v2732_v32 = vmul.f32 %v8949_v47, %v6181_v7  ;;  %v2733_v25 = vmul.f32 %v8949_v47, %v6193_v63 }
 0x255   :  { %v6602_v50 = vpop.permute.xlu0 %2248 }
 0x256   :  { %8940 = vst [vmem:[#allocation35_spill] sm:$0xff] %v6602_v50  ;;  %v6605_v44 = vpop.permute.xlu1 %2250  ;;  %3661 = vrot.lane.b32.xlu0 %v3403_v1, %s4940_s17 }
 0x257   :  { %8942 = vst [vmem:[#allocation2_spill] sm:$0xff] %v6605_v44 }
 0x258   :  { %3663 = vrot.lane.b32.xlu1 %v3404_v42, %s4940_s17 }
 0x259   :  { %v6613_v23 = vpop.permute.xlu0 %3064 }
 0x25a   :  { %8943 = vst [vmem:[#allocation110_spill] sm:$0xff] %v6613_v23  ;;  %v6615_v27 = vpop.permute.xlu1 %3066  ;;  %3677 = vrot.lane.b32.xlu0 %v3411_v14, %s4940_s17  ;;  %v8954_v14 = vld [vmem:[#allocation39_spill] sm:$0xff] }
 0x25b   :  { %8944 = vst [vmem:[#allocation111_spill] sm:$0xff] %v6615_v27 }
 0x25c   :  { %3679 = vrot.lane.b32.xlu1 %v3412_v57, %s4940_s17  ;;  %v8955_v57 = vld [vmem:[#allocation19_spill] sm:$0xff] }
 0x25d   :  { %v6619_v33 = vpop.permute.xlu0 %3068  ;;  %v2739_v44 = vmul.f32 %v8955_v57, %v6195_v29 }
 0x25e   :  { %8945 = vst [vmem:[#allocation112_spill] sm:$0xff] %v6619_v33  ;;  %v6621_v1 = vpop.permute.xlu1 %3070  ;;  %2264 = vrot.lane.b32.xlu0 %v6181_v7, %s4938_s0  ;;  %v2128_v7 = vsel %vm2119_vm0, %v6259_v58, %v8954_v14 }
 0x25f   :  { %8946 = vst [vmem:[#allocation113_spill] sm:$0xff] %v6621_v1  ;;  %v8961_v1 = vld [vmem:[#allocation20_spill] sm:$0xff] }
 0x260   :  { %2266 = vrot.lane.b32.xlu1 %v6195_v29, %s4938_s0  ;;  %v2748_v50 = vmul.f32 %v8961_v1, %v8954_v14  ;;  %v8966_v14 = vld [vmem:[#allocation21_spill] sm:$0xff] }
 0x261   :  { %v6627_v51 = vpop.permute.xlu0 %3080 }
 0x262   :  { %8947 = vst [vmem:[#allocation114_spill] sm:$0xff] %v6627_v51  ;;  %v6629_v42 = vpop.permute.xlu1 %3078  ;;  %2296 = vrot.lane.b32.xlu0 %v6193_v63, %s4938_s0  ;;  %v8960_v51 = vld [vmem:[#allocation41_spill] sm:$0xff] }
 0x263   :  { %8948 = vst [vmem:[#allocation115_spill] sm:$0xff] %v6629_v42  ;;  %v6667_v29 = vsel %vm2119_vm0, %v6287_v49, %v8960_v51  ;;  %v2755_v27 = vmul.f32 %v8966_v14, %v8960_v51  ;;  %v8970_v51 = vld [vmem:[#allocation44_spill] sm:$0xff] }
 0x264   :  { %2298 = vrot.lane.b32.xlu1 %v8950_v54, %s4938_s0 }
 0x265   :  { %v6637_v17 = vpop.permute.xlu0 %3084 }
 0x266   :  { %8951 = vst [vmem:[#allocation17_spill] sm:$0xff] %v6637_v17  ;;  %v6641_v3 = vpop.permute.xlu1 %3082  ;;  %2960 = vrot.lane.b32.xlu0 %v2732_v32, %s4939_s16  ;;  %v8958_v32 = vld [vmem:[#allocation40_spill] sm:$0xff] }
 0x267   :  { %8952 = vst [vmem:[#allocation43_spill] sm:$0xff] %v6641_v3  ;;  %v2734_v33 = vmul.f32 %v8949_v47, %v8958_v32  ;;  %v2536_v47 = vmul.f32 %v8937_v19, %v6193_v63  ;;  %v2544_v63 = vmul.f32 %v8941_v15, %v8950_v54 }
 0x268   :  { %2962 = vrot.lane.b32.xlu1 %v2733_v25, %s4939_s16  ;;  %v2122_v25 = vsel %vm2119_vm0, %v6144_v62, %v8958_v32  ;;  %v8964_v62 = vld [vmem:[#allocation42_spill] sm:$0xff] }
 0x269   :  { %v6645_v60 = vpop.permute.xlu0 %2150  ;;  %v2741_v32 = vmul.f32 %v8955_v57, %v8964_v62 }
 0x26a   :  { %8953 = vst [vmem:[#allocation116_spill] sm:$0xff] %v6645_v60  ;;  %v6652_v42 = vpop.permute.xlu1 %2153  ;;  %2332 = vrot.lane.b32.xlu0 %v2128_v7, %s4938_s0 }
 0x26b   :  { %8956 = vst [vmem:[#allocation39_spill] sm:$0xff] %v6652_v42 }
 0x26c   :  { %2974 = vrot.lane.b32.xlu1 %v2739_v44, %s4939_s16 }
 0x26d   :  { %v6656_v17 = vpop.permute.xlu0 %2220 }
 0x26e   :  { %8957 = vst [vmem:[#allocation19_spill] sm:$0xff] %v6656_v17  ;;  %v6661_v3 = vpop.permute.xlu1 %2222  ;;  %2328 = vrot.lane.b32.xlu0 %v2122_v25, %s4938_s0 }
 0x26f   :  { %8959 = vst [vmem:[#allocation40_spill] sm:$0xff] %v6661_v3  ;;  %v2125_v3 = vsel %vm2119_vm0, %v6205_v31, %v8964_v62 }
 0x270   :  { %2334 = vrot.lane.b32.xlu1 %v6667_v29, %s4938_s0 }
 0x271   :  { %v6673_v44 = vpop.permute.xlu0 %2188 }
 0x272   :  { %8962 = vst [vmem:[#allocation41_spill] sm:$0xff] %v6673_v44  ;;  %v6675_v17 = vpop.permute.xlu1 %2190  ;;  %2992 = vrot.lane.b32.xlu0 %v2748_v50, %s4939_s16  ;;  %v2740_v50 = vmul.f32 %v8955_v57, %v8950_v54 }
 0x273   :  { %8963 = vst [vmem:[#allocation20_spill] sm:$0xff] %v6675_v17 }
 0x274   :  { %2330 = vrot.lane.b32.xlu1 %v2125_v3, %s4938_s0 }
 0x275   :  { %v6684_v23 = vpop.permute.xlu0 %2252 }
 0x276   :  { %8965 = vst [vmem:[#allocation42_spill] sm:$0xff] %v6684_v23  ;;  %v6688_v20 = vpop.permute.xlu1 %2254  ;;  %2964 = vrot.lane.b32.xlu0 %v2734_v33, %s4939_s16  ;;  %v3189_v33 = vsel %vm3176_vm1, %v6347_v41, %v6349_v5  ;;  %v8971_v23 = vld [vmem:[#allocation3_spill] sm:$0xff] }
 0x277   :  { %8967 = vst [vmem:[#allocation21_spill] sm:$0xff] %v6688_v20  ;;  %v3401_v20 = vadd.f32 %v8970_v51, %v2536_v47 }
 0x278   :  { %3006 = vrot.lane.b32.xlu1 %v2755_v27, %s4939_s16  ;;  %v2553_v27 = vmul.f32 %v8971_v23, %v2128_v7  ;;  %v2537_v7 = vmul.f32 %v8937_v19, %v2122_v25 }
 0x279   :  { %v6694_v31 = vpop.permute.xlu0 %3092 }
 0x27a   :  { %8968 = vst [vmem:[#allocation117_spill] sm:$0xff] %v6694_v31  ;;  %v6700_v17 = vpop.permute.xlu1 %3094  ;;  %2976 = vrot.lane.b32.xlu0 %v2740_v50, %s4939_s16  ;;  %v3418_v57 = vadd.f32 %v3189_v33, %v2553_v27  ;;  %v3177_v50 = vsel %vm3176_vm1, %v8970_v51, %v6186_v4  ;;  %v8979_v4 = vld [vmem:[#allocation45_spill] sm:$0xff]  ;;  %v2545_v33 = vmul.f32 %v8941_v15, %v2125_v3 }
 0x27b   :  { %8969 = vst [vmem:[#allocation118_spill] sm:$0xff] %v6700_v17  ;;  %v8974_v17 = vld [vmem:[#allocation46_spill] sm:$0xff] }
 0x27c   :  { %2978 = vrot.lane.b32.xlu1 %v2741_v32, %s4939_s16  ;;  %v3409_v47 = vadd.f32 %v8974_v17, %v2544_v63  ;;  %v3183_v25 = vsel %vm3176_vm1, %v8974_v17, %v6253_v11  ;;  %v8982_v63 = vld [vmem:[#allocation48_spill] sm:$0xff] }
 0x27d   :  { %v6709_v31 = vpop.permute.xlu0 %3096  ;;  %v3410_v27 = vadd.f32 %v3183_v25, %v2545_v33  ;;  %v8985_v17 = vld [vmem:[#allocation52_spill] sm:$0xff] }
 0x27e   :  { %8972 = vst [vmem:[#allocation44_spill] sm:$0xff] %v6709_v31  ;;  %v6713_v62 = vpop.permute.xlu1 %3098  ;;  %3657 = vrot.lane.b32.xlu0 %v3401_v20, %s4940_s17  ;;  %v3402_v31 = vadd.f32 %v3177_v50, %v2537_v7 }
 0x27f   :  { %8973 = vst [vmem:[#allocation3_spill] sm:$0xff] %v6713_v62 }
 0x280   :  { %3691 = vrot.lane.b32.xlu1 %v3418_v57, %s4940_s17  ;;  %v2746_v57 = vmul.f32 %v8961_v1, %v8979_v4 }
 0x281   :  { %v6722_v32 = vpop.permute.xlu0 %3108 }
 0x282   :  { %8975 = vst [vmem:[#allocation46_spill] sm:$0xff] %v6722_v32  ;;  %v6724_v44 = vpop.permute.xlu1 %3106  ;;  %3673 = vrot.lane.b32.xlu0 %v3409_v47, %s4940_s17  ;;  %v8987_v47 = vld [vmem:[#allocation49_spill] sm:$0xff] }
 0x283   :  { %8976 = vst [vmem:[#allocation119_spill] sm:$0xff] %v6724_v44  ;;  %v6761_v7 = vsel %vm2119_vm0, %v6399_v0, %v8987_v47  ;;  %v9006_v32 = vld [vmem:[#allocation29_spill] sm:$0xff] }
 0x284   :  { %3659 = vrot.lane.b32.xlu1 %v3402_v31, %s4940_s17 }
 0x285   :  { %v6728_v20 = vpop.permute.xlu0 %3112 }
 0x286   :  { %8977 = vst [vmem:[#allocation120_spill] sm:$0xff] %v6728_v20  ;;  %v6730_v54 = vpop.permute.xlu1 %3110  ;;  %2268 = vrot.lane.b32.xlu0 %v8979_v4, %s4938_s0  ;;  %v2747_v4 = vmul.f32 %v8961_v1, %v8982_v63  ;;  %v8993_v1 = vld [vmem:[#allocation30_spill] sm:$0xff] }
 0x287   :  { %8978 = vst [vmem:[#allocation121_spill] sm:$0xff] %v6730_v54 }
 0x288   :  { %2270 = vrot.lane.b32.xlu1 %v6231_v28, %s4938_s0 }
 0x289   :  { %v6740_v51 = vpop.permute.xlu0 %2156 }
 0x28a   :  { %8980 = vst [vmem:[#allocation45_spill] sm:$0xff] %v6740_v51  ;;  %v6742_v31 = vpop.permute.xlu1 %2159  ;;  %2300 = vrot.lane.b32.xlu0 %v8982_v63, %s4938_s0 }
 0x28b   :  { %8981 = vst [vmem:[#allocation122_spill] sm:$0xff] %v6742_v31 }
 0x28c   :  { %3675 = vrot.lane.b32.xlu1 %v3410_v27, %s4940_s17  ;;  %v8990_v27 = vld [vmem:[#allocation47_spill] sm:$0xff] }
 0x28d   :  { %v6749_v50 = vpop.permute.xlu0 %2224 }
 0x28e   :  { %8983 = vst [vmem:[#allocation48_spill] sm:$0xff] %v6749_v50  ;;  %v6751_v11 = vpop.permute.xlu1 %2226  ;;  %2988 = vrot.lane.b32.xlu0 %v2746_v57, %s4939_s16  ;;  %v6775_v57 = vsel %vm2119_vm0, %v6479_v48, %v8990_v27 }
 0x28f   :  { %8984 = vst [vmem:[#allocation123_spill] sm:$0xff] %v6751_v11  ;;  %8991 = vst [vmem:[#allocation47_spill] sm:$0xff] %v6775_v57  ;;  %v2753_v11 = vmul.f32 %v8966_v14, %v6231_v28 }
 0x290   :  { %2302 = vrot.lane.b32.xlu1 %v8985_v17, %s4938_s0 }
 0x291   :  { %v6756_v3 = vpop.permute.xlu0 %2192 }
 0x292   :  { %8986 = vst [vmem:[#allocation52_spill] sm:$0xff] %v6756_v3  ;;  %v6765_v25 = vpop.permute.xlu1 %2194  ;;  %2336 = vrot.lane.b32.xlu0 %v6761_v7, %s4938_s0  ;;  %v8996_v3 = vld [vmem:[#allocation51_spill] sm:$0xff] }
 0x293   :  { %8988 = vst [vmem:[#allocation49_spill] sm:$0xff] %v6765_v25  ;;  %v2776_v25 = vmul.f32 %v8993_v1, %v8990_v27  ;;  %v6794_v28 = vsel %vm2119_vm0, %v6403_v18, %v8996_v3  ;;  %v2769_v62 = vmul.f32 %v9006_v32, %v8996_v3 }
 0x294   :  { %2990 = vrot.lane.b32.xlu1 %v2747_v4, %s4939_s16 }
 0x295   :  { %v6770_v33 = vpop.permute.xlu0 %2256 }
 0x296   :  { %8989 = vst [vmem:[#allocation124_spill] sm:$0xff] %v6770_v33  ;;  %v6779_v50 = vpop.permute.xlu1 %2258  ;;  %2340 = vrot.lane.b32.xlu0 %v6775_v57, %s4938_s0 }
 0x297   :  { %8992 = vst [vmem:[#allocation125_spill] sm:$0xff] %v6779_v50  ;;  %v2754_v50 = vmul.f32 %v8966_v14, %v8985_v17 }
 0x298   :  { %3002 = vrot.lane.b32.xlu1 %v2753_v11, %s4939_s16 }
 0x299   :  { %v6786_v4 = vpop.permute.xlu0 %3120 }
 0x29a   :  { %8994 = vst [vmem:[#allocation30_spill] sm:$0xff] %v6786_v4  ;;  %v6788_v33 = vpop.permute.xlu1 %3122  ;;  %3048 = vrot.lane.b32.xlu0 %v2776_v25, %s4939_s16  ;;  %v8999_v4 = vld [vmem:[#allocation50_spill] sm:$0xff] }
 0x29b   :  { %8995 = vst [vmem:[#allocation126_spill] sm:$0xff] %v6788_v33  ;;  %v6808_v25 = vsel %vm2119_vm0, %v6483_v9, %v8999_v4  ;;  %v9001_v33 = vld [vmem:[#allocation28_spill] sm:$0xff] }
 0x29c   :  { %2338 = vrot.lane.b32.xlu1 %v6794_v28, %s4938_s0  ;;  %9000 = vst [vmem:[#allocation50_spill] sm:$0xff] %v6808_v25  ;;  %v2762_v20 = vmul.f32 %v9001_v33, %v8987_v47  ;;  %v2761_v3 = vmul.f32 %v9001_v33, %v6265_v36 }
 0x29d   :  { %v6800_v27 = vpop.permute.xlu0 %3124 }
 0x29e   :  { %8997 = vst [vmem:[#allocation51_spill] sm:$0xff] %v6800_v27  ;;  %v6802_v11 = vpop.permute.xlu1 %3126  ;;  %3004 = vrot.lane.b32.xlu0 %v2754_v50, %s4939_s16  ;;  %v2552_v27 = vmul.f32 %v8971_v23, %v8982_v63 }
 0x29f   :  { %8998 = vst [vmem:[#allocation127_spill] sm:$0xff] %v6802_v11  ;;  %v9003_v11 = vld [vmem:[#allocation31_spill] sm:$0xff] }
 0x2a0   :  { %2342 = vrot.lane.b32.xlu1 %v6808_v25, %s4938_s0  ;;  %v2783_v54 = vmul.f32 %v9003_v11, %v8999_v4  ;;  %v3417_v44 = vadd.f32 %v6347_v41, %v2552_v27 }
 0x2a1   :  { %v6814_v14 = vpop.permute.xlu0 %3136 }
 0x2a2   :  { %9002 = vst [vmem:[#allocation28_spill] sm:$0xff] %v6814_v14  ;;  %v6820_v50 = vpop.permute.xlu1 %3134  ;;  %3020 = vrot.lane.b32.xlu0 %v2762_v20, %s4939_s16  ;;  %v9010_v20 = vld [vmem:[#allocation53_spill] sm:$0xff] }
 0x2a3   :  { %9004 = vst [vmem:[#allocation31_spill] sm:$0xff] %v6820_v50 }
 0x2a4   :  { %3062 = vrot.lane.b32.xlu1 %v2783_v54, %s4939_s16 }
 0x2a5   :  { %v6825_v47 = vpop.permute.xlu0 %3140 }
 0x2a6   :  { %9005 = vst [vmem:[#allocation128_spill] sm:$0xff] %v6825_v47  ;;  %v6829_v14 = vpop.permute.xlu1 %3138  ;;  %3689 = vrot.lane.b32.xlu0 %v3417_v44, %s4940_s17  ;;  %v2760_v44 = vmul.f32 %v9001_v33, %v9010_v20  ;;  %v9018_v33 = vld [vmem:[#allocation54_spill] sm:$0xff] }
 0x2a7   :  { %9007 = vst [vmem:[#allocation29_spill] sm:$0xff] %v6829_v14 }
 0x2a8   :  { %3034 = vrot.lane.b32.xlu1 %v2769_v62, %s4939_s16 }
 0x2a9   :  { %v6833_v63 = vpop.permute.xlu0 %2162 }
 0x2aa   :  { %9008 = vst [vmem:[#allocation129_spill] sm:$0xff] %v6833_v63  ;;  %v6835_v4 = vpop.permute.xlu1 %2165  ;;  %2272 = vrot.lane.b32.xlu0 %v9010_v20, %s4938_s0  ;;  %v6864_v20 = vsel %vm2119_vm0, %v6551_v53, %v6270_v13 }
 0x2ab   :  { %9009 = vst [vmem:[#allocation130_spill] sm:$0xff] %v6835_v4  ;;  %9016 = vst [vmem:[#allocation135_spill] sm:$0xff] %v6864_v20 }
 0x2ac   :  { %2274 = vrot.lane.b32.xlu1 %v6272_v6, %s4938_s0 }
 0x2ad   :  { %v6841_v41 = vpop.permute.xlu0 %2228 }
 0x2ae   :  { %9011 = vst [vmem:[#allocation53_spill] sm:$0xff] %v6841_v41  ;;  %v6843_v54 = vpop.permute.xlu1 %2230  ;;  %2304 = vrot.lane.b32.xlu0 %v6265_v36, %s4938_s0  ;;  %v2767_v41 = vmul.f32 %v9006_v32, %v6272_v6  ;;  %v6883_v6 = vsel %vm2119_vm0, %v6555_v39, %v6283_v52 }
 0x2af   :  { %9012 = vst [vmem:[#allocation131_spill] sm:$0xff] %v6843_v54  ;;  %9021 = vst [vmem:[#allocation138_spill] sm:$0xff] %v6883_v6 }
 0x2b0   :  { %2306 = vrot.lane.b32.xlu1 %v6285_v24, %s4938_s0 }
 0x2b1   :  { %v6851_v62 = vpop.permute.xlu0 %2196 }
 0x2b2   :  { %9013 = vst [vmem:[#allocation132_spill] sm:$0xff] %v6851_v62  ;;  %v6855_v27 = vpop.permute.xlu1 %2198  ;;  %3016 = vrot.lane.b32.xlu0 %v2760_v44, %s4939_s16  ;;  %v2804_v44 = vmul.f32 %v6103_v59, %v9018_v33 }
 0x2b3   :  { %9014 = vst [vmem:[#allocation133_spill] sm:$0xff] %v6855_v27 }
 0x2b4   :  { %3018 = vrot.lane.b32.xlu1 %v2761_v3, %s4939_s16 }
 0x2b5   :  { %v6859_v54 = vpop.permute.xlu0 %2260 }
 0x2b6   :  { %9015 = vst [vmem:[#allocation134_spill] sm:$0xff] %v6859_v54  ;;  %v6868_v62 = vpop.permute.xlu1 %2262  ;;  %2344 = vrot.lane.b32.xlu0 %v6864_v20, %s4938_s0 }
 0x2b7   :  { %9017 = vst [vmem:[#allocation136_spill] sm:$0xff] %v6868_v62  ;;  %v2768_v62 = vmul.f32 %v9006_v32, %v6285_v24  ;;  %v2797_v32 = vmul.f32 %v6096_v16, %v6283_v52 }
 0x2b8   :  { %3030 = vrot.lane.b32.xlu1 %v2767_v41, %s4939_s16  ;;  %v2811_v41 = vmul.f32 %v6109_v22, %v6276_v56 }
 0x2b9   :  { %v6875_v3 = vpop.permute.xlu0 %3148 }
 0x2ba   :  { %9019 = vst [vmem:[#allocation54_spill] sm:$0xff] %v6875_v3  ;;  %v6877_v27 = vpop.permute.xlu1 %3150  ;;  %3104 = vrot.lane.b32.xlu0 %v2804_v44, %s4939_s16  ;;  %v9024_v44 = vld [vmem:[#allocation32_spill] sm:$0xff] }
 0x2bb   :  { %9020 = vst [vmem:[#allocation137_spill] sm:$0xff] %v6877_v27  ;;  %v2790_v27 = vmul.f32 %v9024_v44, %v6270_v13 }
 0x2bc   :  { %2346 = vrot.lane.b32.xlu1 %v6883_v6, %s4938_s0 }
 0x2bd   :  { %v6889_v54 = vpop.permute.xlu0 %3152 }
 0x2be   :  { %9022 = vst [vmem:[#allocation139_spill] sm:$0xff] %v6889_v54  ;;  %v6893_v3 = vpop.permute.xlu1 %3154  ;;  %3032 = vrot.lane.b32.xlu0 %v2768_v62, %s4939_s16 }
 0x2bf   :  { %9023 = vst [vmem:[#allocation140_spill] sm:$0xff] %v6893_v3 }
 0x2c0   :  { %3118 = vrot.lane.b32.xlu1 %v2811_v41, %s4939_s16 }
 0x2c1   :  { %v6899_v47 = vpop.permute.xlu0 %3164 }
 0x2c2   :  { %9025 = vst [vmem:[#allocation32_spill] sm:$0xff] %v6899_v47  ;;  %v6903_v14 = vpop.permute.xlu1 %3162  ;;  %3076 = vrot.lane.b32.xlu0 %v2790_v27, %s4939_s16  ;;  %v2774_v27 = vmul.f32 %v8993_v1, %v6295_v8 }
 0x2c3   :  { %9026 = vst [vmem:[#allocation141_spill] sm:$0xff] %v6903_v14  ;;  %v9032_v14 = vld [vmem:[#allocation58_spill] sm:$0xff] }
 0x2c4   :  { %3090 = vrot.lane.b32.xlu1 %v2797_v32, %s4939_s16  ;;  %v2775_v32 = vmul.f32 %v8993_v1, %v6305_v34  ;;  %v6950_v1 = vsel %vm2119_vm0, %v6645_v60, %v9018_v33  ;;  %v2782_v33 = vmul.f32 %v9003_v11, %v6325_v37  ;;  %v9035_v60 = vld [vmem:[#allocation65_spill] sm:$0xff] }
 0x2c5   :  { %v6907_v54 = vpop.permute.xlu0 %3168  ;;  %9031 = vst [vmem:[#allocation146_spill] sm:$0xff] %v6950_v1  ;;  %v2789_v39 = vmul.f32 %v9024_v44, %v9035_v60 }
 0x2c6   :  { %9027 = vst [vmem:[#allocation142_spill] sm:$0xff] %v6907_v54  ;;  %v6909_v3 = vpop.permute.xlu1 %3166  ;;  %2276 = vrot.lane.b32.xlu0 %v6295_v8, %s4938_s0 }
 0x2c7   :  { %9028 = vst [vmem:[#allocation143_spill] sm:$0xff] %v6909_v3 }
 0x2c8   :  { %2278 = vrot.lane.b32.xlu1 %v6312_v45, %s4938_s0 }
 0x2c9   :  { %v6915_v13 = vpop.permute.xlu0 %3661 }
 0x2ca   :  { %v6917_v52 = vpop.permute.xlu1 %3663  ;;  %2308 = vrot.lane.b32.xlu0 %v6305_v34, %s4938_s0 }
 0x2cb   :  { %9029 = vst [vmem:[#allocation144_spill] sm:$0xff] %v6917_v52  ;;  %v3916_v62 = vsel %vm3913_vm2, %v6915_v13, %v6917_v52 }
 0x2cc   :  { %4140 = vst [vmem:[%s8594_s3 + $0x10] sm:$0xff] %v3916_v62  ;;  %2310 = vrot.lane.b32.xlu1 %v6325_v37, %s4938_s0 }
 0x2cd   :  { %v6931_v41 = vpop.permute.xlu0 %3677 }
 0x2ce   :  { %v6935_v54 = vpop.permute.xlu1 %3679  ;;  %3044 = vrot.lane.b32.xlu0 %v2774_v27, %s4939_s16  ;;  %v2781_v27 = vmul.f32 %v9003_v11, %v6312_v45  ;;  %v6969_v45 = vsel %vm2119_vm0, %v6652_v42, %v6276_v56  ;;  %v2825_v11 = vmul.f32 %v6121_v61, %v6323_v2 }
 0x2cf   :  { %9030 = vst [vmem:[#allocation145_spill] sm:$0xff] %v6935_v54  ;;  %v3923_v8 = vsel %vm3913_vm2, %v6931_v41, %v6935_v54  ;;  %9033 = vst [vmem:[#allocation58_spill] sm:$0xff] %v6969_v45 }
 0x2d0   :  { %4148 = vst [vmem:[%s8594_s3 + $0x48] sm:$0xff] %v3923_v8  ;;  %3046 = vrot.lane.b32.xlu1 %v2775_v32, %s4939_s16  ;;  %v2832_v8 = vmul.f32 %v8927_v10, %v9032_v14 }
 0x2d1   :  { %v6945_v62 = vpop.permute.xlu0 %2264 }
 0x2d2   :  { %v6954_v3 = vpop.permute.xlu1 %2266  ;;  %2348 = vrot.lane.b32.xlu0 %v6950_v1, %s4938_s0 }
 0x2d4   :  { %3058 = vrot.lane.b32.xlu1 %v2781_v27, %s4939_s16  ;;  %v2839_v27 = vmul.f32 %v8933_v12, %v6316_v38 }
 0x2d5   :  { %v6961_v32 = vpop.permute.xlu0 %2296 }
 0x2d6   :  { %v6963_v47 = vpop.permute.xlu1 %2298  ;;  %3160 = vrot.lane.b32.xlu0 %v2832_v8, %s4939_s16  ;;  %v2818_v8 = vmul.f32 %v6115_v21, %v6310_v30 }
 0x2d8   :  { %2350 = vrot.lane.b32.xlu1 %v6969_v45, %s4938_s0 }
 0x2d9   :  { %v6975_v50 = vpop.permute.xlu0 %2960 }
 0x2da   :  { %v6979_v54 = vpop.permute.xlu1 %2962  ;;  %3060 = vrot.lane.b32.xlu0 %v2782_v33, %s4939_s16  ;;  %v9034_v33 = vld [vmem:[#allocation66_spill] sm:$0xff] }
 0x2db   :  { %v2795_v25 = vmul.f32 %v6096_v16, %v9034_v33 }
 0x2dc   :  { %3174 = vrot.lane.b32.xlu1 %v2839_v27, %s4939_s16 }
 0x2dd   :  { %v6985_v56 = vpop.permute.xlu0 %2332 }
 0x2de   :  { %v6989_v45 = vpop.permute.xlu1 %2974  ;;  %3132 = vrot.lane.b32.xlu0 %v2818_v8, %s4939_s16  ;;  %v2788_v8 = vmul.f32 %v9024_v44, %v6333_v35 }
 0x2e0   :  { %3146 = vrot.lane.b32.xlu1 %v2825_v11, %s4939_s16  ;;  %v9036_v11 = vld [vmem:[#allocation67_spill] sm:$0xff] }
 0x2e1   :  { %v6993_v42 = vpop.permute.xlu0 %2328  ;;  %v2796_v44 = vmul.f32 %v6096_v16, %v9036_v11 }
 0x2e2   :  { %v6995_v52 = vpop.permute.xlu1 %2334  ;;  %2280 = vrot.lane.b32.xlu0 %v6333_v35, %s4938_s0  ;;  %v7024_v35 = vsel %vm2119_vm0, %v6740_v51, %v6310_v30  ;;  %v7041_v30 = vsel %vm2119_vm0, %v6742_v31, %v6323_v2  ;;  %v9040_v51 = vld [vmem:[#allocation69_spill] sm:$0xff]  ;;  %v9041_v2 = vld [vmem:[#allocation72_spill] sm:$0xff] }
 0x2e3   :  { %9037 = vst [vmem:[#allocation66_spill] sm:$0xff] %v7024_v35  ;;  %9039 = vst [vmem:[#allocation148_spill] sm:$0xff] %v7041_v30 }
 0x2e4   :  { %2282 = vrot.lane.b32.xlu1 %v9034_v33, %s4938_s0 }
 0x2e5   :  { %v7001_v27 = vpop.permute.xlu0 %2992 }
 0x2e6   :  { %v7003_v1 = vpop.permute.xlu1 %2330  ;;  %2312 = vrot.lane.b32.xlu0 %v9035_v60, %s4938_s0 }
 0x2e8   :  { %2314 = vrot.lane.b32.xlu1 %v9036_v11, %s4938_s0 }
 0x2e9   :  { %v7011_v6 = vpop.permute.xlu0 %2964 }
 0x2ea   :  { %v7015_v20 = vpop.permute.xlu1 %3006  ;;  %3072 = vrot.lane.b32.xlu0 %v2788_v8, %s4939_s16 }
 0x2ec   :  { %3074 = vrot.lane.b32.xlu1 %v2789_v39, %s4939_s16 }
 0x2ed   :  { %v7019_v53 = vpop.permute.xlu0 %2976 }
 0x2ee   :  { %v7028_v9 = vpop.permute.xlu1 %2978  ;;  %2352 = vrot.lane.b32.xlu0 %v7024_v35, %s4938_s0 }
 0x2f0   :  { %3086 = vrot.lane.b32.xlu1 %v2795_v25, %s4939_s16 }
 0x2f1   :  { %v3658_v39 = vpop.permute.xlu0 %3657 }
 0x2f2   :  { %v7035_v8 = vpop.permute.xlu1 %3691  ;;  %3088 = vrot.lane.b32.xlu0 %v2796_v44, %s4939_s16 }
 0x2f3   :  { %9038 = vst [vmem:[#allocation147_spill] sm:$0xff] %v7035_v8 }
 0x2f4   :  { %2354 = vrot.lane.b32.xlu1 %v7041_v30, %s4938_s0 }
 0x2f5   :  { %v3674_v33 = vpop.permute.xlu0 %3673 }
 0x2f6   :  { %v3660_v35 = vpop.permute.xlu1 %3659  ;;  %2284 = vrot.lane.b32.xlu0 %v9040_v51, %s4938_s0 }
 0x2f7   :  { %v3914_v16 = vsel %vm3913_vm2, %v3658_v39, %v3660_v35  ;;  %v3915_v25 = vsel %vm3913_vm2, %v3660_v35, %v6915_v13  ;;  %v9042_v39 = vld [vmem:[#allocation71_spill] sm:$0xff]  ;;  %v2802_v13 = vmul.f32 %v6103_v59, %v9040_v51  ;;  %v9043_v35 = vld [vmem:[#allocation73_spill] sm:$0xff] }
 0x2f8   :  { %4138 = vst [vmem:[%s8594_s3] sm:$0xff] %v3914_v16  ;;  %4139 = vst [vmem:[%s8594_s3 + $0x8] sm:$0xff] %v3915_v25  ;;  %2286 = vrot.lane.b32.xlu1 %v9041_v2, %s4938_s0  ;;  %v2803_v25 = vmul.f32 %v6103_v59, %v9042_v39  ;;  %v7088_v59 = vsel %vm2119_vm0, %v6833_v63, %v9032_v14  ;;  %v7107_v14 = vsel %vm2119_vm0, %v6835_v4, %v6316_v38  ;;  %v9050_v38 = vld [vmem:[#allocation79_spill] sm:$0xff] }
 0x2f9   :  { %v7058_v44 = vpop.permute.xlu0 %2268  ;;  %9044 = vst [vmem:[#allocation69_spill] sm:$0xff] %v7088_v59  ;;  %9045 = vst [vmem:[#allocation72_spill] sm:$0xff] %v7107_v14 }
 0x2fa   :  { %v7060_v30 = vpop.permute.xlu1 %2270  ;;  %2316 = vrot.lane.b32.xlu0 %v9042_v39, %s4938_s0 }
 0x2fc   :  { %2318 = vrot.lane.b32.xlu1 %v9043_v35, %s4938_s0 }
 0x2fd   :  { %v7068_v16 = vpop.permute.xlu0 %2300 }
 0x2fe   :  { %v3676_v31 = vpop.permute.xlu1 %3675  ;;  %3100 = vrot.lane.b32.xlu0 %v2802_v13, %s4939_s16 }
 0x2ff   :  { %v3921_v11 = vsel %vm3913_vm2, %v3674_v33, %v3676_v31  ;;  %v3922_v60 = vsel %vm3913_vm2, %v3676_v31, %v6931_v41  ;;  %v2809_v31 = vmul.f32 %v6109_v22, %v9041_v2 }
 0x300   :  { %4146 = vst [vmem:[%s8594_s3 + $0x38] sm:$0xff] %v3921_v11  ;;  %4147 = vst [vmem:[%s8594_s3 + $0x40] sm:$0xff] %v3922_v60  ;;  %3102 = vrot.lane.b32.xlu1 %v2803_v25, %s4939_s16  ;;  %v2810_v60 = vmul.f32 %v6109_v22, %v9043_v35  ;;  %v9047_v22 = vld [vmem:[#allocation77_spill] sm:$0xff] }
 0x301   :  { %v7083_v51 = vpop.permute.xlu0 %2988 }
 0x302   :  { %v7092_v41 = vpop.permute.xlu1 %2302  ;;  %2356 = vrot.lane.b32.xlu0 %v7088_v59, %s4938_s0  ;;  %v2817_v59 = vmul.f32 %v6115_v21, %v9050_v38 }
 0x304   :  { %3114 = vrot.lane.b32.xlu1 %v2809_v31, %s4939_s16 }
 0x305   :  { %v7099_v11 = vpop.permute.xlu0 %2336 }
 0x306   :  { %v7101_v33 = vpop.permute.xlu1 %2990  ;;  %3116 = vrot.lane.b32.xlu0 %v2810_v60, %s4939_s16  ;;  %v2816_v60 = vmul.f32 %v6115_v21, %v9047_v22 }
 0x308   :  { %2358 = vrot.lane.b32.xlu1 %v7107_v14, %s4938_s0  ;;  %v9051_v14 = vld [vmem:[#allocation80_spill] sm:$0xff] }
 0x309   :  { %v7111_v2 = vpop.permute.xlu0 %2340  ;;  %v2824_v35 = vmul.f32 %v6121_v61, %v9051_v14 }
 0x30a   :  { %9046 = vst [vmem:[#allocation149_spill] sm:$0xff] %v7111_v2  ;;  %v7113_v13 = vpop.permute.xlu1 %3002  ;;  %2288 = vrot.lane.b32.xlu0 %v9047_v22, %s4938_s0  ;;  %v2823_v22 = vmul.f32 %v6121_v61, %v6392_v40  ;;  %v9060_v2 = vld [vmem:[#allocation68_spill] sm:$0xff] }
 0x30c   :  { %2290 = vrot.lane.b32.xlu1 %v6392_v40, %s4938_s0 }
 0x30d   :  { %v7119_v25 = vpop.permute.xlu0 %3048 }
 0x30e   :  { %9048 = vst [vmem:[#allocation77_spill] sm:$0xff] %v7119_v25  ;;  %v7121_v31 = vpop.permute.xlu1 %2338  ;;  %2320 = vrot.lane.b32.xlu0 %v9050_v38, %s4938_s0 }
 0x30f   :  { %9049 = vst [vmem:[#allocation150_spill] sm:$0xff] %v7121_v31  ;;  %v9067_v31 = vld [vmem:[#allocation75_spill] sm:$0xff] }
 0x310   :  { %2322 = vrot.lane.b32.xlu1 %v9051_v14, %s4938_s0 }
 0x311   :  { %v7129_v4 = vpop.permute.xlu0 %3004 }
 0x312   :  { %v7133_v63 = vpop.permute.xlu1 %2342  ;;  %3128 = vrot.lane.b32.xlu0 %v2816_v60, %s4939_s16 }
 0x313   :  { %9052 = vst [vmem:[#allocation151_spill] sm:$0xff] %v7133_v63 }
 0x314   :  { %3130 = vrot.lane.b32.xlu1 %v2817_v59, %s4939_s16  ;;  %v2830_v59 = vmul.f32 %v8927_v10, %v6411_v43 }
 0x315   :  { %v7139_v39 = vpop.permute.xlu0 %3020 }
 0x316   :  { %v7143_v37 = vpop.permute.xlu1 %3062  ;;  %3144 = vrot.lane.b32.xlu0 %v2824_v35, %s4939_s16  ;;  %v9055_v35 = vld [vmem:[#allocation83_spill] sm:$0xff] }
 0x317   :  { %9053 = vst [vmem:[#allocation152_spill] sm:$0xff] %v7143_v37 }
 0x318   :  { %3142 = vrot.lane.b32.xlu1 %v2823_v22, %s4939_s16  ;;  %v9056_v22 = vld [vmem:[#allocation84_spill] sm:$0xff] }
 0x319   :  { %v3690_v21 = vpop.permute.xlu0 %3689  ;;  %v2838_v63 = vmul.f32 %v8933_v12, %v9056_v22 }
 0x31a   :  { %v3928_v60 = vsel %vm3913_vm2, %v3690_v21, %v7035_v8  ;;  %v7149_v38 = vpop.permute.xlu1 %3034  ;;  %2292 = vrot.lane.b32.xlu0 %v6411_v43, %s4938_s0  ;;  %v9058_v8 = vld [vmem:[#allocation60_spill] sm:$0xff] }
 0x31b   :  { %9054 = vst [vmem:[#allocation153_spill] sm:$0xff] %v7149_v38  ;;  %4153 = vst [vmem:[%s8594_s3 + $0x70] sm:$0xff] %v3928_v60  ;;  %v2831_v60 = vmul.f32 %v8927_v10, %v9055_v35  ;;  %v2362_v37 = vsel %vm2119_vm0, %v9058_v8, %v6259_v58  ;;  %v9059_v43 = vld [vmem:[#allocation56_spill] sm:$0xff]  ;;  %v3190_v10 = vsel %vm3176_vm1, %v6349_v5, %v9060_v2 }
 0x31c   :  { %2294 = vrot.lane.b32.xlu1 %v6420_v55, %s4938_s0  ;;  %v2378_v25 = vsel %vm2119_vm0, %v9059_v43, %v9058_v8  ;;  %v2837_v58 = vmul.f32 %v8933_v12, %v6420_v55  ;;  %v9065_v12 = vld [vmem:[#allocation62_spill] sm:$0xff] }
 0x31d   :  { %v7158_v61 = vpop.permute.xlu0 %2272  ;;  %v2555_v8 = vmul.f32 %v8971_v23, %v2378_v25 }
 0x31e   :  { %v7160_v40 = vpop.permute.xlu1 %2274  ;;  %2324 = vrot.lane.b32.xlu0 %v9055_v35, %s4938_s0 }
 0x320   :  { %2326 = vrot.lane.b32.xlu1 %v9056_v22, %s4938_s0 }
 0x321   :  { %v7168_v21 = vpop.permute.xlu0 %2304 }
 0x322   :  { %v7172_v14 = vpop.permute.xlu1 %2306  ;;  %3156 = vrot.lane.b32.xlu0 %v2830_v59, %s4939_s16  ;;  %v2554_v59 = vmul.f32 %v8971_v23, %v2362_v37  ;;  %v9063_v37 = vld [vmem:[#allocation6_spill] sm:$0xff] }
 0x323   :  { %9057 = vst [vmem:[#allocation154_spill] sm:$0xff] %v7172_v14  ;;  %v2560_v34 = vmul.f32 %v9063_v37, %v8985_v17  ;;  %v9068_v17 = vld [vmem:[#allocation57_spill] sm:$0xff] }
 0x324   :  { %3158 = vrot.lane.b32.xlu1 %v2831_v60, %s4939_s16  ;;  %v9061_v60 = vld [vmem:[#allocation70_spill] sm:$0xff]  ;;  %v3419_v48 = vadd.f32 %v3190_v10, %v2554_v59  ;;  %v2561_v59 = vmul.f32 %v9063_v37, %v6667_v29 }
 0x325   :  { %v7187_v35 = vpop.permute.xlu0 %3016  ;;  %v3191_v22 = vsel %vm3176_vm1, %v9060_v2, %v9061_v60  ;;  %v9066_v2 = vld [vmem:[#allocation74_spill] sm:$0xff]  ;;  %v3425_v10 = vadd.f32 %v9067_v31, %v2560_v34  ;;  %v9072_v34 = vld [vmem:[#allocation76_spill] sm:$0xff] }
 0x326   :  { %v7192_v57 = vpop.permute.xlu1 %3018  ;;  %3172 = vrot.lane.b32.xlu0 %v2838_v63, %s4939_s16  ;;  %v3420_v38 = vadd.f32 %v3191_v22, %v2555_v8  ;;  %v2363_v63 = vsel %vm2119_vm0, %v9065_v12, %v6287_v49  ;;  %v3195_v25 = vsel %vm3176_vm1, %v9067_v31, %v9066_v2  ;;  %v2379_v22 = vsel %vm2119_vm0, %v9068_v17, %v9065_v12 }
 0x327   :  { %v2562_v8 = vmul.f32 %v9063_v37, %v2363_v63  ;;  %v2563_v31 = vmul.f32 %v9063_v37, %v2379_v22 }
 0x328   :  { %3170 = vrot.lane.b32.xlu1 %v2837_v58, %s4939_s16 }
 0x329   :  { %v7200_v5 = vpop.permute.xlu0 %2344 }
 0x32a   :  { %9062 = vst [vmem:[#allocation60_spill] sm:$0xff] %v7200_v5  ;;  %v7204_v55 = vpop.permute.xlu1 %3030  ;;  %3693 = vrot.lane.b32.xlu0 %v3419_v48, %s4940_s17  ;;  %v9069_v48 = vld [vmem:[#allocation78_spill] sm:$0xff]  ;;  %v3426_v5 = vadd.f32 %v3195_v25, %v2561_v59 }
 0x32b   :  { %9064 = vst [vmem:[#allocation56_spill] sm:$0xff] %v7204_v55  ;;  %v3196_v58 = vsel %vm3176_vm1, %v9066_v2, %v9069_v48  ;;  %v3197_v29 = vsel %vm3176_vm1, %v9069_v48, %v9072_v34  ;;  %v9074_v2 = vld [vmem:[#allocation5_spill] sm:$0xff]  ;;  %v9077_v48 = vld [vmem:[#allocation90_spill] sm:$0xff] }
 0x32c   :  { %3695 = vrot.lane.b32.xlu1 %v3420_v38, %s4940_s17  ;;  %v3427_v38 = vadd.f32 %v3196_v58, %v2562_v8  ;;  %v3428_v63 = vadd.f32 %v3197_v29, %v2563_v31  ;;  %v2569_v58 = vmul.f32 %v9074_v2, %v6761_v7  ;;  %v9080_v29 = vld [vmem:[#allocation91_spill] sm:$0xff]  ;;  %v9083_v7 = vld [vmem:[#allocation92_spill] sm:$0xff] }
 0x32d   :  { %v7223_v49 = vpop.permute.xlu0 %3104  ;;  %v3202_v31 = vsel %vm3176_vm1, %v9077_v48, %v9080_v29 }
 0x32e   :  { %9070 = vst [vmem:[#allocation68_spill] sm:$0xff] %v7223_v49  ;;  %v7226_v14 = vpop.permute.xlu1 %2346  ;;  %3705 = vrot.lane.b32.xlu0 %v3425_v10, %s4940_s17  ;;  %v2568_v49 = vmul.f32 %v9074_v2, %v6265_v36  ;;  %v9076_v10 = vld [vmem:[#allocation85_spill] sm:$0xff] }
 0x32f   :  { %9071 = vst [vmem:[#allocation70_spill] sm:$0xff] %v7226_v14  ;;  %v2364_v59 = vsel %vm2119_vm0, %v9076_v10, %v6399_v0  ;;  %v9078_v14 = vld [vmem:[#allocation89_spill] sm:$0xff] }
 0x330   :  { %3707 = vrot.lane.b32.xlu1 %v3426_v5, %s4940_s17  ;;  %v3201_v22 = vsel %vm3176_vm1, %v9078_v14, %v9077_v48  ;;  %v3433_v5 = vadd.f32 %v9078_v14, %v2568_v49  ;;  %v9079_v36 = vld [vmem:[#allocation81_spill] sm:$0xff]  ;;  %v3203_v14 = vsel %vm3176_vm1, %v9080_v29, %v9083_v7  ;;  %v9085_v48 = vld [vmem:[#allocation8_spill] sm:$0xff] }
 0x331   :  { %v7234_v12 = vpop.permute.xlu0 %3032  ;;  %v2380_v8 = vsel %vm2119_vm0, %v9079_v36, %v9076_v10  ;;  %v9088_v29 = vld [vmem:[#allocation93_spill] sm:$0xff] }
 0x332   :  { %9073 = vst [vmem:[#allocation6_spill] sm:$0xff] %v7234_v12  ;;  %v7238_v25 = vpop.permute.xlu1 %3118  ;;  %3709 = vrot.lane.b32.xlu0 %v3427_v38, %s4940_s17  ;;  %v2570_v38 = vmul.f32 %v9074_v2, %v2364_v59  ;;  %v2571_v49 = vmul.f32 %v9074_v2, %v2380_v8 }
 0x333   :  { %9075 = vst [vmem:[#allocation62_spill] sm:$0xff] %v7238_v25  ;;  %v3434_v25 = vadd.f32 %v3201_v22, %v2569_v58 }
 0x334   :  { %3711 = vrot.lane.b32.xlu1 %v3428_v63, %s4940_s17  ;;  %v3435_v63 = vadd.f32 %v3202_v31, %v2570_v38  ;;  %v3436_v59 = vadd.f32 %v3203_v14, %v2571_v49  ;;  %v2577_v31 = vmul.f32 %v9085_v48, %v6794_v28  ;;  %v9091_v14 = vld [vmem:[#allocation96_spill] sm:$0xff] }
 0x335   :  { %v7257_v0 = vpop.permute.xlu0 %3076  ;;  %v3208_v49 = vsel %vm3176_vm1, %v9088_v29, %v9091_v14  ;;  %v9093_v28 = vld [vmem:[#allocation36_spill] sm:$0xff] }
 0x336   :  { %9081 = vst [vmem:[#allocation74_spill] sm:$0xff] %v7257_v0  ;;  %v7260_v12 = vpop.permute.xlu1 %3090  ;;  %3721 = vrot.lane.b32.xlu0 %v3433_v5, %s4940_s17  ;;  %v2576_v0 = vmul.f32 %v9085_v48, %v6285_v24  ;;  %v9087_v5 = vld [vmem:[#allocation86_spill] sm:$0xff] }
 0x337   :  { %9082 = vst [vmem:[#allocation75_spill] sm:$0xff] %v7260_v12  ;;  %v2365_v58 = vsel %vm2119_vm0, %v9087_v5, %v6403_v18  ;;  %v9089_v12 = vld [vmem:[#allocation94_spill] sm:$0xff] }
 0x338   :  { %3723 = vrot.lane.b32.xlu1 %v3434_v25, %s4940_s17  ;;  %v3207_v8 = vsel %vm3176_vm1, %v9089_v12, %v9088_v29  ;;  %v3441_v25 = vadd.f32 %v9089_v12, %v2576_v0  ;;  %v9090_v24 = vld [vmem:[#allocation82_spill] sm:$0xff] }
 0x339   :  { %v7268_v10 = vpop.permute.xlu0 %2276  ;;  %v2381_v38 = vsel %vm2119_vm0, %v9090_v24, %v9087_v5  ;;  %v9094_v12 = vld [vmem:[#allocation38_spill] sm:$0xff] }
 0x33a   :  { %9084 = vst [vmem:[#allocation57_spill] sm:$0xff] %v7268_v10  ;;  %v7272_v22 = vpop.permute.xlu1 %2278  ;;  %3725 = vrot.lane.b32.xlu0 %v3435_v63, %s4940_s17  ;;  %v2578_v63 = vmul.f32 %v9085_v48, %v2365_v58  ;;  %v2392_v0 = vsel %vm2119_vm0, %v9094_v12, %v9093_v28  ;;  %v2579_v55 = vmul.f32 %v9085_v48, %v2381_v38  ;;  %v9096_v38 = vld [vmem:[#allocation37_spill] sm:$0xff] }
 0x33b   :  { %9086 = vst [vmem:[#allocation78_spill] sm:$0xff] %v7272_v22  ;;  %v3442_v22 = vadd.f32 %v3207_v8, %v2577_v31  ;;  %v2408_v58 = vsel %vm2119_vm0, %v6945_v62, %v9094_v12  ;;  %v3180_v8 = vsel %vm3176_vm1, %v6209_v46, %v6975_v50  ;;  %v2540_v31 = vmul.f32 %v8937_v19, %v2392_v0 }
 0x33c   :  { %3727 = vrot.lane.b32.xlu1 %v3436_v59, %s4940_s17  ;;  %v9095_v59 = vld [vmem:[#allocation95_spill] sm:$0xff]  ;;  %v3443_v29 = vadd.f32 %v3208_v49, %v2578_v63  ;;  %v2541_v49 = vmul.f32 %v8937_v19, %v2408_v58  ;;  %v3187_v58 = vsel %vm3176_vm1, %v6989_v45, %v7019_v53 }
 0x33d   :  { %v7291_v18 = vpop.permute.xlu0 %2308  ;;  %v3209_v5 = vsel %vm3176_vm1, %v9091_v14, %v9095_v59  ;;  %v3181_v14 = vsel %vm3176_vm1, %v6975_v50, %v6979_v54  ;;  %v3405_v46 = vadd.f32 %v3180_v8, %v2540_v31  ;;  %v9097_v63 = vld [vmem:[#allocation55_spill] sm:$0xff]  ;;  %v2424_v50 = vsel %vm2119_vm0, %v6961_v32, %v6945_v62 }
 0x33e   :  { %v7294_v10 = vpop.permute.xlu1 %2310  ;;  %3737 = vrot.lane.b32.xlu0 %v3441_v25, %s4940_s17  ;;  %v3444_v28 = vadd.f32 %v3209_v5, %v2579_v55  ;;  %v2409_v55 = vsel %vm2119_vm0, %v6954_v3, %v9096_v38  ;;  %v3186_v12 = vsel %vm3176_vm1, %v9097_v63, %v6989_v45  ;;  %v3406_v5 = vadd.f32 %v3181_v14, %v2541_v49 }
 0x33f   :  { %9092 = vst [vmem:[#allocation76_spill] sm:$0xff] %v7294_v10  ;;  %v2549_v8 = vmul.f32 %v8941_v15, %v2409_v55  ;;  %v2542_v62 = vmul.f32 %v8937_v19, %v2424_v50  ;;  %v2425_v45 = vsel %vm2119_vm0, %v6963_v47, %v6954_v3 }
 0x340   :  { %3739 = vrot.lane.b32.xlu1 %v3442_v22, %s4940_s17  ;;  %v2393_v22 = vsel %vm2119_vm0, %v9096_v38, %v8939_v26  ;;  %v3182_v38 = vsel %vm3176_vm1, %v6979_v54, %v7011_v6  ;;  %v2441_v54 = vsel %vm2119_vm0, %v7003_v1, %v6963_v47  ;;  %v2550_v63 = vmul.f32 %v8941_v15, %v2425_v45 }
 0x341   :  { %v7311_v25 = vpop.permute.xlu0 %3044  ;;  %v2548_v26 = vmul.f32 %v8941_v15, %v2393_v22  ;;  %v3414_v14 = vadd.f32 %v3187_v58, %v2549_v8  ;;  %v2551_v47 = vmul.f32 %v8941_v15, %v2441_v54  ;;  %v2426_v15 = vsel %vm2119_vm0, %v7068_v16, %v7058_v44 }
 0x342   :  { %v7314_v10 = vpop.permute.xlu1 %3046  ;;  %3741 = vrot.lane.b32.xlu0 %v3443_v29, %s4940_s17  ;;  %v2442_v8 = vsel %vm2119_vm0, %v6985_v56, %v7068_v16 }
 0x343   :  { %v3413_v31 = vadd.f32 %v3186_v12, %v2548_v26  ;;  %v3416_v58 = vadd.f32 %v7028_v9, %v2551_v47 }
 0x344   :  { %3743 = vrot.lane.b32.xlu1 %v3444_v28, %s4940_s17  ;;  %v2440_v28 = vsel %vm2119_vm0, %v6993_v42, %v6961_v32  ;;  %v3407_v42 = vadd.f32 %v3182_v38, %v2542_v62  ;;  %v3188_v32 = vsel %vm3176_vm1, %v7019_v53, %v7028_v9  ;;  %v3194_v9 = vsel %vm3176_vm1, %v7101_v33, %v7001_v27 }
 0x345   :  { %v7331_v0 = vpop.permute.xlu0 %2348  ;;  %v3415_v1 = vadd.f32 %v3188_v32, %v2550_v63  ;;  %v2559_v62 = vmul.f32 %v8971_v23, %v2442_v8  ;;  %v2443_v63 = vsel %vm2119_vm0, %v6995_v52, %v7092_v41  ;;  %v2444_v8 = vsel %vm2119_vm0, %v7099_v11, %v7168_v21 }
 0x346   :  { %v7334_v29 = vpop.permute.xlu1 %3058  ;;  %3665 = vrot.lane.b32.xlu0 %v3405_v46, %s4940_s17  ;;  %v2543_v46 = vmul.f32 %v8937_v19, %v2440_v28  ;;  %v9098_v19 = vld [vmem:[#allocation63_spill] sm:$0xff]  ;;  %v2567_v47 = vmul.f32 %v9063_v37, %v2443_v63 }
 0x347   :  { %v2394_v26 = vsel %vm2119_vm0, %v9098_v19, %v9059_v43  ;;  %v2410_v53 = vsel %vm2119_vm0, %v7058_v44, %v9098_v19  ;;  %v2558_v44 = vmul.f32 %v8971_v23, %v2426_v15  ;;  %v3424_v54 = vadd.f32 %v7001_v27, %v2559_v62 }
 0x348   :  { %3667 = vrot.lane.b32.xlu1 %v3406_v5, %s4940_s17  ;;  %v3408_v12 = vadd.f32 %v7011_v6, %v2543_v46  ;;  %v3192_v6 = vsel %vm3176_vm1, %v9061_v60, %v7083_v51  ;;  %v2556_v50 = vmul.f32 %v8971_v23, %v2394_v26  ;;  %v3193_v60 = vsel %vm3176_vm1, %v7083_v51, %v7101_v33  ;;  %v9099_v51 = vld [vmem:[#allocation64_spill] sm:$0xff] }
 0x349   :  { %v7351_v22 = vpop.permute.xlu0 %3160  ;;  %v3423_v45 = vadd.f32 %v3194_v9, %v2558_v44  ;;  %v2411_v33 = vsel %vm2119_vm0, %v7060_v30, %v9099_v51  ;;  %v3200_v27 = vsel %vm3176_vm1, %v7129_v4, %v7015_v20  ;;  %v2575_v9 = vmul.f32 %v9074_v2, %v2444_v8  ;;  %v9111_v8 = vld [vmem:[#allocation106_spill] sm:$0xff] }
 0x34a   :  { %v7354_v49 = vpop.permute.xlu1 %2350  ;;  %3681 = vrot.lane.b32.xlu0 %v3413_v31, %s4940_s17  ;;  %v2557_v31 = vmul.f32 %v8971_v23, %v2410_v53  ;;  %v3421_v28 = vadd.f32 %v3192_v6, %v2556_v50  ;;  %v3198_v23 = vsel %vm3176_vm1, %v9072_v34, %v7113_v13  ;;  %v3199_v34 = vsel %vm3176_vm1, %v7113_v13, %v7129_v4  ;;  %v9100_v13 = vld [vmem:[#allocation87_spill] sm:$0xff] }
 0x34b   :  { %v2412_v4 = vsel %vm2119_vm0, %v7158_v61, %v9100_v13 }
 0x34c   :  { %3683 = vrot.lane.b32.xlu1 %v3414_v14, %s4940_s17  ;;  %v3422_v56 = vadd.f32 %v3193_v60, %v2557_v31  ;;  %v2395_v14 = vsel %vm2119_vm0, %v9099_v51, %v9068_v17  ;;  %v2427_v17 = vsel %vm2119_vm0, %v7092_v41, %v7060_v30  ;;  %v2573_v60 = vmul.f32 %v9074_v2, %v2412_v4 }
 0x34d   :  { %v7368_v55 = vpop.permute.xlu0 %3060  ;;  %v2566_v30 = vmul.f32 %v9063_v37, %v2427_v17  ;;  %v9105_v17 = vld [vmem:[#allocation6_spill] sm:$0xff] }
 0x34e   :  { %v7372_v3 = vpop.permute.xlu1 %3174  ;;  %3669 = vrot.lane.b32.xlu0 %v3407_v42, %s4940_s17  ;;  %v2564_v42 = vmul.f32 %v9063_v37, %v2395_v14 }
 0x34f   :  { %v3431_v53 = vadd.f32 %v3200_v27, %v2566_v30 }
 0x350   :  { %3671 = vrot.lane.b32.xlu1 %v3408_v12, %s4940_s17  ;;  %v2565_v12 = vmul.f32 %v9063_v37, %v2411_v33  ;;  %v3429_v19 = vadd.f32 %v3198_v23, %v2564_v42  ;;  %v3204_v37 = vsel %vm3176_vm1, %v9083_v7, %v7187_v35  ;;  %v3205_v7 = vsel %vm3176_vm1, %v7187_v35, %v7192_v57  ;;  %v9101_v35 = vld [vmem:[#allocation88_spill] sm:$0xff]  ;;  %v9104_v42 = vld [vmem:[#allocation150_spill] sm:$0xff] }
 0x351   :  { %v7386_v5 = vpop.permute.xlu0 %3132  ;;  %v3438_v11 = vadd.f32 %v3205_v7, %v2573_v60  ;;  %v2397_v44 = vsel %vm2119_vm0, %v9101_v35, %v9090_v24  ;;  %v9103_v24 = vld [vmem:[#allocation154_spill] sm:$0xff]  ;;  %v9112_v7 = vld [vmem:[#allocation105_spill] sm:$0xff] }
 0x352   :  { %v7390_v43 = vpop.permute.xlu1 %3146  ;;  %3685 = vrot.lane.b32.xlu0 %v3415_v1, %s4940_s17  ;;  %v3430_v52 = vadd.f32 %v3199_v34, %v2565_v12  ;;  %v2396_v1 = vsel %vm2119_vm0, %v9100_v13, %v9079_v36  ;;  %v2428_v36 = vsel %vm2119_vm0, %v7168_v21, %v7158_v61  ;;  %v2580_v14 = vmul.f32 %v9085_v48, %v2397_v44 }
 0x353   :  { %v2572_v50 = vmul.f32 %v9074_v2, %v2396_v1  ;;  %v2574_v61 = vmul.f32 %v9074_v2, %v2428_v36  ;;  %v2429_v23 = vsel %vm2119_vm0, %v9103_v24, %v7160_v40  ;;  %v9107_v1 = vld [vmem:[#allocation59_spill] sm:$0xff]  ;;  %v3213_v60 = vsel %vm3176_vm1, %v9112_v7, %v9111_v8 }
 0x354   :  { %3687 = vrot.lane.b32.xlu1 %v3416_v58, %s4940_s17  ;;  %v3432_v58 = vadd.f32 %v7015_v20, %v2567_v47  ;;  %v3206_v20 = vsel %vm3176_vm1, %v7192_v57, %v7139_v39  ;;  %v2413_v57 = vsel %vm2119_vm0, %v7160_v40, %v9101_v35  ;;  %v2582_v40 = vmul.f32 %v9085_v48, %v2429_v23  ;;  %v9115_v35 = vld [vmem:[#allocation22_spill] sm:$0xff] }
 0x355   :  { %v7407_v38 = vpop.permute.xlu0 %2280  ;;  %v3437_v31 = vadd.f32 %v3204_v37, %v2572_v50  ;;  %v3439_v62 = vadd.f32 %v3206_v20, %v2574_v61  ;;  %v2581_v63 = vmul.f32 %v9085_v48, %v2413_v57  ;;  %v9113_v20 = vld [vmem:[#allocation47_spill] sm:$0xff]  ;;  %v3214_v44 = vsel %vm3176_vm1, %v9111_v8, %v9115_v35 }
 0x356   :  { %v7411_v16 = vpop.permute.xlu1 %2282  ;;  %3697 = vrot.lane.b32.xlu0 %v3421_v28, %s4940_s17 }
 0x358   :  { %3699 = vrot.lane.b32.xlu1 %v3422_v56, %s4940_s17  ;;  %v9102_v56 = vld [vmem:[#allocation56_spill] sm:$0xff] }
 0x359   :  { %v7424_v46 = vpop.permute.xlu0 %2312  ;;  %v3210_v2 = vsel %vm3176_vm1, %v9095_v59, %v9102_v56  ;;  %v3211_v59 = vsel %vm3176_vm1, %v9102_v56, %v9105_v17 }
 0x35a   :  { %v7428_v32 = vpop.permute.xlu1 %2314  ;;  %3701 = vrot.lane.b32.xlu0 %v3423_v45, %s4940_s17  ;;  %v3440_v45 = vadd.f32 %v7139_v39, %v2575_v9  ;;  %v3445_v34 = vadd.f32 %v3210_v2, %v2580_v14  ;;  %v9106_v39 = vld [vmem:[#allocation153_spill] sm:$0xff]  ;;  %v3446_v30 = vadd.f32 %v3211_v59, %v2581_v63  ;;  %v9114_v9 = vld [vmem:[#allocation99_spill] sm:$0xff] }
 0x35b   :  { %v3212_v12 = vsel %vm3176_vm1, %v9105_v17, %v9106_v39  ;;  %v9116_v14 = vld [vmem:[#allocation103_spill] sm:$0xff]  ;;  %v9118_v17 = vld [vmem:[#allocation57_spill] sm:$0xff] }
 0x35c   :  { %3703 = vrot.lane.b32.xlu1 %v3424_v54, %s4940_s17  ;;  %v2445_v54 = vsel %vm2119_vm0, %v9104_v42, %v9103_v24  ;;  %v9117_v24 = vld [vmem:[#allocation25_spill] sm:$0xff]  ;;  %v2414_v59 = vsel %vm2119_vm0, %v9118_v17, %v9116_v14 }
 0x35d   :  { %v7445_v26 = vpop.permute.xlu0 %3072  ;;  %v2583_v27 = vmul.f32 %v9085_v48, %v2445_v54  ;;  %v9109_v48 = vld [vmem:[#allocation97_spill] sm:$0xff]  ;;  %v3215_v23 = vsel %vm3176_vm1, %v9115_v35, %v9117_v24  ;;  %v3216_v63 = vsel %vm3176_vm1, %v9117_v24, %v7311_v25  ;;  %v9124_v35 = vld [vmem:[#allocation102_spill] sm:$0xff] }
 0x35e   :  { %v7449_v41 = vpop.permute.xlu1 %3074  ;;  %3713 = vrot.lane.b32.xlu0 %v3429_v19, %s4940_s17  ;;  %v9127_v24 = vld [vmem:[#allocation50_spill] sm:$0xff] }
 0x35f   :  { %v3448_v37 = vadd.f32 %v9106_v39, %v2583_v27  ;;  %v2430_v27 = vsel %vm2119_vm0, %v7291_v18, %v9118_v17  ;;  %v9129_v17 = vld [vmem:[#allocation33_spill] sm:$0xff] }
 0x360   :  { %3715 = vrot.lane.b32.xlu1 %v3430_v52, %s4940_s17  ;;  %v3447_v52 = vadd.f32 %v3212_v12, %v2582_v40 }
 0x361   :  { %v7462_v6 = vpop.permute.xlu0 %2352 }
 0x362   :  { %v7466_v15 = vpop.permute.xlu1 %3086  ;;  %3717 = vrot.lane.b32.xlu0 %v3431_v53, %s4940_s17  ;;  %v9108_v53 = vld [vmem:[#allocation7_spill] sm:$0xff] }
 0x363   :  { %v2584_v4 = vmul.f32 %v9108_v53, %v9107_v1  ;;  %v2585_v61 = vmul.f32 %v9108_v53, %v9113_v20  ;;  %v3217_v1 = vsel %vm3176_vm1, %v7311_v25, %v7314_v10  ;;  %v2590_v8 = vmul.f32 %v9108_v53, %v2430_v27  ;;  %v9121_v20 = vld [vmem:[#allocation61_spill] sm:$0xff] }
 0x364   :  { %3719 = vrot.lane.b32.xlu1 %v3432_v58, %s4940_s17  ;;  %v9110_v58 = vld [vmem:[#allocation101_spill] sm:$0xff] }
 0x365   :  { %v7483_v28 = vpop.permute.xlu0 %3088  ;;  %v2366_v36 = vsel %vm2119_vm0, %v9110_v58, %v9109_v48  ;;  %v3450_v56 = vadd.f32 %v3213_v60, %v2585_v61  ;;  %v9120_v48 = vld [vmem:[#allocation77_spill] sm:$0xff]  ;;  %v9122_v61 = vld [vmem:[#allocation10_spill] sm:$0xff] }
 0x366   :  { %v7487_v21 = vpop.permute.xlu1 %2354  ;;  %3729 = vrot.lane.b32.xlu0 %v3437_v31, %s4940_s17  ;;  %v3449_v31 = vadd.f32 %v9112_v7, %v2584_v4  ;;  %v2586_v57 = vmul.f32 %v9108_v53, %v2366_v36  ;;  %v2589_v4 = vmul.f32 %v9108_v53, %v2414_v59 }
 0x368   :  { %3731 = vrot.lane.b32.xlu1 %v3438_v11, %s4940_s17  ;;  %v2382_v11 = vsel %vm2119_vm0, %v9114_v9, %v9110_v58  ;;  %v3451_v54 = vadd.f32 %v3214_v44, %v2586_v57  ;;  %v3218_v58 = vsel %vm3176_vm1, %v7314_v10, %v9120_v48  ;;  %v9125_v57 = vld [vmem:[#allocation24_spill] sm:$0xff] }
 0x369   :  { %v7500_v51 = vpop.permute.xlu0 %2284  ;;  %v2587_v42 = vmul.f32 %v9108_v53, %v2382_v11  ;;  %v3455_v25 = vadd.f32 %v3218_v58, %v2590_v8  ;;  %v3220_v59 = vsel %vm3176_vm1, %v9125_v57, %v9129_v17  ;;  %v9132_v58 = vld [vmem:[#allocation78_spill] sm:$0xff] }
 0x36a   :  { %v7504_v33 = vpop.permute.xlu1 %2286  ;;  %3733 = vrot.lane.b32.xlu0 %v3439_v62, %s4940_s17 }
 0x36b   :  { %v3452_v12 = vadd.f32 %v3215_v23, %v2587_v42  ;;  %v2593_v23 = vmul.f32 %v9122_v61, %v9127_v24  ;;  %v9128_v42 = vld [vmem:[#allocation100_spill] sm:$0xff] }
 0x36c   :  { %3735 = vrot.lane.b32.xlu1 %v3440_v45, %s4940_s17  ;;  %v2398_v45 = vsel %vm2119_vm0, %v9116_v14, %v9114_v9  ;;  %v2592_v9 = vmul.f32 %v9122_v61, %v9121_v20 }
 0x36d   :  { %v7521_v19 = vpop.permute.xlu0 %2316  ;;  %v2588_v39 = vmul.f32 %v9108_v53, %v2398_v45 }
 0x36e   :  { %v7525_v47 = vpop.permute.xlu1 %2318  ;;  %3745 = vrot.lane.b32.xlu0 %v3445_v34, %s4940_s17 }
 0x370   :  { %3747 = vrot.lane.b32.xlu1 %v3446_v30, %s4940_s17  ;;  %v9119_v30 = vld [vmem:[#allocation149_spill] sm:$0xff] }
 0x371   :  { %v7529_v13 = vpop.permute.xlu0 %3100 }
 0x372   :  { %v7534_v50 = vpop.permute.xlu1 %3102  ;;  %3749 = vrot.lane.b32.xlu0 %v3447_v52, %s4940_s17  ;;  %v2446_v52 = vsel %vm2119_vm0, %v9119_v30, %v7291_v18  ;;  %v3454_v18 = vadd.f32 %v3217_v1, %v2589_v4  ;;  %v9130_v30 = vld [vmem:[#allocation104_spill] sm:$0xff]  ;;  %v9131_v1 = vld [vmem:[#allocation23_spill] sm:$0xff] }
 0x373   :  { %v2591_v7 = vmul.f32 %v9108_v53, %v2446_v52  ;;  %v9123_v53 = vld [vmem:[#allocation98_spill] sm:$0xff]  ;;  %v2399_v52 = vsel %vm2119_vm0, %v9130_v30, %v9128_v42  ;;  %v3221_v4 = vsel %vm3176_vm1, %v9129_v17, %v9131_v1  ;;  %v2415_v8 = vsel %vm2119_vm0, %v9132_v58, %v9130_v30  ;;  %v9137_v30 = vld [vmem:[#allocation9_spill] sm:$0xff] }
 0x374   :  { %3751 = vrot.lane.b32.xlu1 %v3448_v37, %s4940_s17  ;;  %v3453_v37 = vadd.f32 %v3216_v63, %v2588_v39  ;;  %v2367_v44 = vsel %vm2119_vm0, %v9124_v35, %v9123_v53 }
 0x375   :  { %v7553_v62 = vpop.permute.xlu0 %2356  ;;  %v3456_v10 = vadd.f32 %v9120_v48, %v2591_v7  ;;  %v2594_v39 = vmul.f32 %v9122_v61, %v2367_v44  ;;  %v3222_v7 = vsel %vm3176_vm1, %v9131_v1, %v7334_v29 }
 0x376   :  { %v7556_v2 = vpop.permute.xlu1 %3114  ;;  %3753 = vrot.lane.b32.xlu0 %v3449_v31, %s4940_s17 }
 0x377   :  { %v3459_v48 = vadd.f32 %v3220_v59, %v2594_v39 }
 0x378   :  { %3755 = vrot.lane.b32.xlu1 %v3450_v56, %s4940_s17  ;;  %v9126_v56 = vld [vmem:[#allocation27_spill] sm:$0xff] }
 0x379   :  { %v7573_v34 = vpop.permute.xlu0 %3116  ;;  %v3219_v14 = vsel %vm3176_vm1, %v9126_v56, %v9125_v57  ;;  %v3457_v45 = vadd.f32 %v9126_v56, %v2592_v9  ;;  %v3223_v57 = vsel %vm3176_vm1, %v7334_v29, %v7368_v55  ;;  %v2597_v56 = vmul.f32 %v9122_v61, %v2415_v8 }
 0x37a   :  { %v7576_v40 = vpop.permute.xlu1 %2358  ;;  %3757 = vrot.lane.b32.xlu0 %v3451_v54, %s4940_s17  ;;  %v2383_v54 = vsel %vm2119_vm0, %v9128_v42, %v9124_v35  ;;  %v9134_v35 = vld [vmem:[#allocation151_spill] sm:$0xff] }
 0x37b   :  { %v3462_v17 = vadd.f32 %v3223_v57, %v2597_v56 }
 0x37c   :  { %3759 = vrot.lane.b32.xlu1 %v3452_v12, %s4940_s17  ;;  %v3458_v12 = vadd.f32 %v3219_v14, %v2593_v23 }
 0x37d   :  { %v7593_v36 = vpop.permute.xlu0 %2288 }
 0x37e   :  { %v7597_v60 = vpop.permute.xlu1 %2290  ;;  %3761 = vrot.lane.b32.xlu0 %v3453_v37, %s4940_s17  ;;  %v2595_v37 = vmul.f32 %v9122_v61, %v2383_v54 }
 0x380   :  { %3763 = vrot.lane.b32.xlu1 %v3454_v18, %s4940_s17  ;;  %v3460_v20 = vadd.f32 %v3221_v4, %v2595_v37  ;;  %v9139_v4 = vld [vmem:[#allocation109_spill] sm:$0xff] }
 0x381   :  { %v7601_v31 = vpop.permute.xlu0 %2320 }
 0x382   :  { %v7606_v11 = vpop.permute.xlu1 %2322  ;;  %3765 = vrot.lane.b32.xlu0 %v3455_v25, %s4940_s17  ;;  %v2596_v25 = vmul.f32 %v9122_v61, %v2399_v52 }
 0x384   :  { %3767 = vrot.lane.b32.xlu1 %v3456_v10, %s4940_s17  ;;  %v9133_v10 = vld [vmem:[#allocation76_spill] sm:$0xff]  ;;  %v3461_v14 = vadd.f32 %v3222_v7, %v2596_v25  ;;  %v9142_v25 = vld [vmem:[#allocation135_spill] sm:$0xff] }
 0x385   :  { %v7625_v63 = vpop.permute.xlu0 %3128  ;;  %v2431_v53 = vsel %vm2119_vm0, %v9133_v10, %v9132_v58  ;;  %v2447_v44 = vsel %vm2119_vm0, %v9134_v35, %v9133_v10  ;;  %v9141_v58 = vld [vmem:[#allocation110_spill] sm:$0xff]  ;;  %v9144_v35 = vld [vmem:[#allocation112_spill] sm:$0xff] }
 0x386   :  { %v7628_v27 = vpop.permute.xlu1 %3130  ;;  %3769 = vrot.lane.b32.xlu0 %v3457_v45, %s4940_s17  ;;  %v9135_v45 = vld [vmem:[#allocation152_spill] sm:$0xff]  ;;  %v2598_v42 = vmul.f32 %v9122_v61, %v2431_v53  ;;  %v2599_v54 = vmul.f32 %v9122_v61, %v2447_v44  ;;  %v9138_v61 = vld [vmem:[#allocation26_spill] sm:$0xff] }
 0x387   :  { %v3224_v24 = vsel %vm3176_vm1, %v7368_v55, %v9135_v45  ;;  %v2368_v37 = vsel %vm2119_vm0, %v9139_v4, %v9138_v61  ;;  %v9143_v10 = vld [vmem:[#allocation34_spill] sm:$0xff] }
 0x388   :  { %3771 = vrot.lane.b32.xlu1 %v3458_v12, %s4940_s17  ;;  %v3463_v29 = vadd.f32 %v3224_v24, %v2598_v42  ;;  %v9136_v12 = vld [vmem:[#allocation65_spill] sm:$0xff]  ;;  %v3464_v55 = vadd.f32 %v9135_v45, %v2599_v54  ;;  %v2384_v53 = vsel %vm2119_vm0, %v9143_v10, %v9139_v4  ;;  %v2602_v56 = vmul.f32 %v9137_v30, %v2368_v37  ;;  %v9145_v24 = vld [vmem:[#allocation35_spill] sm:$0xff] }
 0x389   :  { %v7645_v18 = vpop.permute.xlu0 %3144  ;;  %v2600_v52 = vmul.f32 %v9137_v30, %v9136_v12  ;;  %v2400_v42 = vsel %vm2119_vm0, %v9145_v24, %v9143_v10  ;;  %v9146_v54 = vld [vmem:[#allocation113_spill] sm:$0xff] }
 0x38a   :  { %v7648_v9 = vpop.permute.xlu1 %3142  ;;  %3773 = vrot.lane.b32.xlu0 %v3459_v48, %s4940_s17  ;;  %v9140_v48 = vld [vmem:[#allocation111_spill] sm:$0xff]  ;;  %v2604_v4 = vmul.f32 %v9137_v30, %v2400_v42 }
 0x38b   :  { %v3225_v8 = vsel %vm3176_vm1, %v9141_v58, %v9140_v48  ;;  %v3465_v7 = vadd.f32 %v9141_v58, %v2600_v52  ;;  %v3226_v44 = vsel %vm3176_vm1, %v9140_v48, %v9144_v35  ;;  %v2416_v52 = vsel %vm2119_vm0, %v7407_v38, %v9145_v24 }
 0x38c   :  { %3775 = vrot.lane.b32.xlu1 %v3460_v20, %s4940_s17  ;;  %v2601_v20 = vmul.f32 %v9137_v30, %v9142_v25  ;;  %v3467_v12 = vadd.f32 %v3226_v44, %v2602_v56  ;;  %v2432_v58 = vsel %vm2119_vm0, %v7424_v46, %v7407_v38  ;;  %v3229_v25 = vsel %vm3176_vm1, %v7445_v26, %v7449_v41 }
 0x38d   :  { %v7665_v23 = vpop.permute.xlu0 %2292  ;;  %v2606_v38 = vmul.f32 %v9137_v30, %v2432_v58  ;;  %v9154_v58 = vld [vmem:[#allocation114_spill] sm:$0xff] }
 0x38e   :  { %v7669_v59 = vpop.permute.xlu1 %2294  ;;  %3777 = vrot.lane.b32.xlu0 %v3461_v14, %s4940_s17  ;;  %v3466_v14 = vadd.f32 %v3225_v8, %v2601_v20  ;;  %v9147_v8 = vld [vmem:[#allocation60_spill] sm:$0xff]  ;;  %v2605_v20 = vmul.f32 %v9137_v30, %v2416_v52 }
 0x390   :  { %3779 = vrot.lane.b32.xlu1 %v3462_v17, %s4940_s17  ;;  %v3227_v17 = vsel %vm3176_vm1, %v9144_v35, %v9146_v54 }
 0x391   :  { %v7673_v39 = vpop.permute.xlu0 %2324 }
 0x392   :  { %v7678_v1 = vpop.permute.xlu1 %2326  ;;  %3781 = vrot.lane.b32.xlu0 %v3463_v29, %s4940_s17  ;;  %v2603_v29 = vmul.f32 %v9137_v30, %v2384_v53  ;;  %v9148_v53 = vld [vmem:[#allocation74_spill] sm:$0xff] }
 0x393   :  { %v3230_v35 = vsel %vm3176_vm1, %v7449_v41, %v9148_v53 }
 0x394   :  { %3783 = vrot.lane.b32.xlu1 %v3464_v55, %s4940_s17  ;;  %v3228_v55 = vsel %vm3176_vm1, %v9146_v54, %v7445_v26  ;;  %v3468_v37 = vadd.f32 %v3227_v17, %v2603_v29  ;;  %v3471_v41 = vadd.f32 %v3230_v35, %v2606_v38  ;;  %v9150_v54 = vld [vmem:[#allocation67_spill] sm:$0xff]  ;;  %v9151_v17 = vld [vmem:[#allocation12_spill] sm:$0xff] }
 0x395   :  { %v7697_v57 = vpop.permute.xlu0 %3156  ;;  %v3469_v10 = vadd.f32 %v3228_v55, %v2604_v4  ;;  %v2608_v29 = vmul.f32 %v9151_v17, %v9150_v54  ;;  %v9152_v55 = vld [vmem:[#allocation107_spill] sm:$0xff]  ;;  %v9153_v4 = vld [vmem:[#allocation4_spill] sm:$0xff] }
 0x396   :  { %v7700_v45 = vpop.permute.xlu1 %3158  ;;  %3785 = vrot.lane.b32.xlu0 %v3465_v7, %s4940_s17  ;;  %v2448_v7 = vsel %vm2119_vm0, %v9147_v8, %v7424_v46  ;;  %v9149_v46 = vld [vmem:[#allocation147_spill] sm:$0xff] }
 0x397   :  { %v2607_v56 = vmul.f32 %v9137_v30, %v2448_v7  ;;  %v9155_v8 = vld [vmem:[#allocation115_spill] sm:$0xff] }
 0x398   :  { %3787 = vrot.lane.b32.xlu1 %v3466_v14, %s4940_s17  ;;  %v3470_v14 = vadd.f32 %v3229_v25, %v2605_v20  ;;  %v3231_v7 = vsel %vm3176_vm1, %v9155_v8, %v9154_v58  ;;  %v3473_v20 = vadd.f32 %v9155_v8, %v2608_v29  ;;  %v9158_v38 = vld [vmem:[#allocation43_spill] sm:$0xff]  ;;  %v9160_v29 = vld [vmem:[#allocation17_spill] sm:$0xff] }
 0x399   :  { %v7717_v61 = vpop.permute.xlu0 %3172 }
 0x39a   :  { %v7720_v48 = vpop.permute.xlu1 %3170  ;;  %3789 = vrot.lane.b32.xlu0 %v3467_v12, %s4940_s17  ;;  %v3472_v12 = vadd.f32 %v9148_v53, %v2607_v56  ;;  %v9157_v53 = vld [vmem:[#allocation108_spill] sm:$0xff]  ;;  %v3232_v56 = vsel %vm3176_vm1, %v9154_v58, %v9158_v38  ;;  %v3234_v58 = vsel %vm3176_vm1, %v9160_v29, %v7466_v15 }
 0x39c   :  { %3791 = vrot.lane.b32.xlu1 %v3468_v37, %s4940_s17  ;;  %v2369_v37 = vsel %vm2119_vm0, %v9153_v4, %v9152_v55 }
 0x39d   :  { %v3694_v44 = vpop.permute.xlu0 %3693 }
 0x39e   :  { %v3929_v24 = vsel %vm3913_vm2, %v9149_v46, %v3694_v44  ;;  %v7741_v42 = vpop.permute.xlu1 %3695  ;;  %3793 = vrot.lane.b32.xlu0 %v3469_v10, %s4940_s17  ;;  %v9156_v10 = vld [vmem:[#allocation138_spill] sm:$0xff]  ;;  %v2610_v46 = vmul.f32 %v9151_v17, %v2369_v37 }
 0x39f   :  { %4154 = vst [vmem:[%s8594_s3 + $0x78] sm:$0xff] %v3929_v24  ;;  %v3930_v26 = vsel %vm3913_vm2, %v3694_v44, %v7741_v42  ;;  %v2609_v35 = vmul.f32 %v9151_v17, %v9156_v10  ;;  %v2385_v44 = vsel %vm2119_vm0, %v9157_v53, %v9153_v4  ;;  %v2433_v10 = vsel %vm2119_vm0, %v7428_v32, %v7411_v16 }
 0x3a0   :  { %4155 = vst [vmem:[%s8594_s3 + $0x80] sm:$0xff] %v3930_v26  ;;  %3795 = vrot.lane.b32.xlu1 %v3470_v14, %s4940_s17  ;;  %v3475_v4 = vadd.f32 %v3232_v56, %v2610_v46 }
 0x3a1   :  { %v3706_v30 = vpop.permute.xlu0 %3705  ;;  %v3474_v24 = vadd.f32 %v3231_v7, %v2609_v35  ;;  %v9161_v35 = vld [vmem:[#allocation70_spill] sm:$0xff] }
 0x3a2   :  { %v3708_v52 = vpop.permute.xlu1 %3707  ;;  %3797 = vrot.lane.b32.xlu0 %v3471_v41, %s4940_s17 }
 0x3a3   :  { %v3935_v25 = vsel %vm3913_vm2, %v3706_v30, %v3708_v52  ;;  %v9159_v30 = vld [vmem:[#allocation2_spill] sm:$0xff] }
 0x3a4   :  { %4160 = vst [vmem:[%s8594_s3 + $0xa8] sm:$0xff] %v3935_v25  ;;  %3799 = vrot.lane.b32.xlu1 %v3472_v12, %s4940_s17  ;;  %v2401_v54 = vsel %vm2119_vm0, %v9159_v30, %v9157_v53  ;;  %v3233_v12 = vsel %vm3176_vm1, %v9158_v38, %v9160_v29  ;;  %v2417_v37 = vsel %vm2119_vm0, %v7411_v16, %v9159_v30  ;;  %v9162_v16 = vld [vmem:[#allocation75_spill] sm:$0xff] }
 0x3a5   :  { %v3710_v14 = vpop.permute.xlu0 %3709  ;;  %v2612_v7 = vmul.f32 %v9151_v17, %v2401_v54  ;;  %v2449_v53 = vsel %vm2119_vm0, %v9161_v35, %v7428_v32  ;;  %v2613_v56 = vmul.f32 %v9151_v17, %v2417_v37  ;;  %v3236_v46 = vsel %vm3176_vm1, %v7483_v28, %v9162_v16 }
 0x3a6   :  { %v3936_v26 = vsel %vm3913_vm2, %v3708_v52, %v3710_v14  ;;  %v7779_v41 = vpop.permute.xlu1 %3711  ;;  %3801 = vrot.lane.b32.xlu0 %v3473_v20, %s4940_s17  ;;  %v2611_v52 = vmul.f32 %v9151_v17, %v2385_v44  ;;  %v3235_v44 = vsel %vm3176_vm1, %v7466_v15, %v7483_v28  ;;  %v2615_v15 = vmul.f32 %v9151_v17, %v2449_v53 }
 0x3a7   :  { %4161 = vst [vmem:[%s8594_s3 + $0xb0] sm:$0xff] %v3936_v26  ;;  %v3937_v55 = vsel %vm3913_vm2, %v3710_v14, %v7779_v41  ;;  %v3477_v14 = vadd.f32 %v3234_v58, %v2612_v7  ;;  %v3478_v26 = vadd.f32 %v3235_v44, %v2613_v56  ;;  %v9165_v58 = vld [vmem:[#allocation116_spill] sm:$0xff]  ;;  %v9169_v44 = vld [vmem:[#allocation146_spill] sm:$0xff]  ;;  %v9170_v56 = vld [vmem:[#allocation19_spill] sm:$0xff] }
 0x3a8   :  { %4162 = vst [vmem:[%s8594_s3 + $0xb8] sm:$0xff] %v3937_v55  ;;  %3803 = vrot.lane.b32.xlu1 %v3474_v24, %s4940_s17  ;;  %v3476_v25 = vadd.f32 %v3233_v12, %v2611_v52  ;;  %v2614_v24 = vmul.f32 %v9151_v17, %v2433_v10  ;;  %v9163_v12 = vld [vmem:[#allocation71_spill] sm:$0xff] }
 0x3a9   :  { %v3722_v8 = vpop.permute.xlu0 %3721  ;;  %v9164_v55 = vld [vmem:[#allocation11_spill] sm:$0xff] }
 0x3aa   :  { %v3724_v20 = vpop.permute.xlu1 %3723  ;;  %3805 = vrot.lane.b32.xlu0 %v3475_v4, %s4940_s17  ;;  %v3479_v28 = vadd.f32 %v3236_v46, %v2614_v24  ;;  %v2616_v52 = vmul.f32 %v9164_v55, %v9163_v12  ;;  %v3480_v4 = vadd.f32 %v9162_v16, %v2615_v15  ;;  %v9171_v16 = vld [vmem:[#allocation44_spill] sm:$0xff] }
 0x3ab   :  { %v3942_v38 = vsel %vm3913_vm2, %v3722_v8, %v3724_v20  ;;  %v9166_v8 = vld [vmem:[#allocation41_spill] sm:$0xff] }
 0x3ac   :  { %4167 = vst [vmem:[%s8594_s3 + $0xe0] sm:$0xff] %v3942_v38  ;;  %3807 = vrot.lane.b32.xlu1 %v3476_v25, %s4940_s17  ;;  %v2370_v7 = vsel %vm2119_vm0, %v9166_v8, %v9165_v58  ;;  %v9167_v25 = vld [vmem:[#allocation118_spill] sm:$0xff]  ;;  %v2617_v38 = vmul.f32 %v9164_v55, %v9169_v44  ;;  %v2434_v44 = vsel %vm2119_vm0, %v7521_v19, %v7500_v51 }
 0x3ad   :  { %v3726_v32 = vpop.permute.xlu0 %3725  ;;  %v3238_v46 = vsel %vm3176_vm1, %v9167_v25, %v9171_v16  ;;  %v2618_v24 = vmul.f32 %v9164_v55, %v2370_v7 }
 0x3ae   :  { %v3943_v30 = vsel %vm3913_vm2, %v3724_v20, %v3726_v32  ;;  %v7827_v54 = vpop.permute.xlu1 %3727  ;;  %3809 = vrot.lane.b32.xlu0 %v3477_v14, %s4940_s17  ;;  %v9168_v20 = vld [vmem:[#allocation117_spill] sm:$0xff]  ;;  %v2386_v14 = vsel %vm2119_vm0, %v9170_v56, %v9166_v8 }
 0x3af   :  { %4168 = vst [vmem:[%s8594_s3 + $0xe8] sm:$0xff] %v3943_v30  ;;  %v3944_v29 = vsel %vm3913_vm2, %v3726_v32, %v7827_v54  ;;  %v3237_v10 = vsel %vm3176_vm1, %v9168_v20, %v9167_v25  ;;  %v3481_v53 = vadd.f32 %v9168_v20, %v2616_v52 }
 0x3b0   :  { %4169 = vst [vmem:[%s8594_s3 + $0xf0] sm:$0xff] %v3944_v29  ;;  %3811 = vrot.lane.b32.xlu1 %v3478_v26, %s4940_s17  ;;  %v3482_v15 = vadd.f32 %v3237_v10, %v2617_v38  ;;  %v9172_v29 = vld [vmem:[#allocation42_spill] sm:$0xff]  ;;  %v9174_v10 = vld [vmem:[#allocation144_spill] sm:$0xff]  ;;  %v2450_v38 = vsel %vm2119_vm0, %v7331_v0, %v7521_v19 }
 0x3b1   :  { %v3738_v17 = vpop.permute.xlu0 %3737  ;;  %v2418_v58 = vsel %vm2119_vm0, %v7500_v51, %v9172_v29  ;;  %v9175_v0 = vld [vmem:[#allocation68_spill] sm:$0xff] }
 0x3b2   :  { %v3740_v37 = vpop.permute.xlu1 %3739  ;;  %3813 = vrot.lane.b32.xlu0 %v3479_v28, %s4940_s17  ;;  %v2402_v28 = vsel %vm2119_vm0, %v9172_v29, %v9170_v56  ;;  %v3241_v56 = vsel %vm3176_vm1, %v7529_v13, %v7534_v50  ;;  %v3242_v51 = vsel %vm3176_vm1, %v7534_v50, %v9175_v0 }
 0x3b3   :  { %v3949_v35 = vsel %vm3913_vm2, %v3738_v17, %v3740_v37  ;;  %v9173_v17 = vld [vmem:[#allocation3_spill] sm:$0xff]  ;;  %v2620_v25 = vmul.f32 %v9164_v55, %v2402_v28 }
 0x3b4   :  { %4174 = vst [vmem:[%s8594_s3 + $0x118] sm:$0xff] %v3949_v35  ;;  %3815 = vrot.lane.b32.xlu1 %v3480_v4, %s4940_s17  ;;  %v3239_v12 = vsel %vm3176_vm1, %v9171_v16, %v9173_v17  ;;  %v2619_v4 = vmul.f32 %v9164_v55, %v2386_v14  ;;  %v3240_v8 = vsel %vm3176_vm1, %v9173_v17, %v7529_v13 }
 0x3b5   :  { %v3742_v32 = vpop.permute.xlu0 %3741  ;;  %v2621_v16 = vmul.f32 %v9164_v55, %v2418_v58  ;;  %v2622_v13 = vmul.f32 %v9164_v55, %v2434_v44 }
 0x3b6   :  { %v3950_v26 = vsel %vm3913_vm2, %v3740_v37, %v3742_v32  ;;  %v7865_v30 = vpop.permute.xlu1 %3743  ;;  %3817 = vrot.lane.b32.xlu0 %v3481_v53, %s4940_s17  ;;  %v3483_v37 = vadd.f32 %v3238_v46, %v2618_v24  ;;  %v3484_v20 = vadd.f32 %v3239_v12, %v2619_v4  ;;  %v3485_v46 = vadd.f32 %v3240_v8, %v2620_v25  ;;  %v9178_v12 = vld [vmem:[#allocation14_spill] sm:$0xff]  ;;  %v9179_v8 = vld [vmem:[#allocation39_spill] sm:$0xff] }
 0x3b7   :  { %4175 = vst [vmem:[%s8594_s3 + $0x120] sm:$0xff] %v3950_v26  ;;  %v3951_v52 = vsel %vm3913_vm2, %v3742_v32, %v7865_v30  ;;  %v2623_v32 = vmul.f32 %v9164_v55, %v2450_v38  ;;  %v3486_v24 = vadd.f32 %v3241_v56, %v2621_v16  ;;  %v3487_v17 = vadd.f32 %v3242_v51, %v2622_v13  ;;  %v9177_v55 = vld [vmem:[#allocation73_spill] sm:$0xff] }
 0x3b8   :  { %4176 = vst [vmem:[%s8594_s3 + $0x128] sm:$0xff] %v3951_v52  ;;  %3819 = vrot.lane.b32.xlu1 %v3482_v15, %s4940_s17  ;;  %v9176_v15 = vld [vmem:[#allocation145_spill] sm:$0xff]  ;;  %v2624_v52 = vmul.f32 %v9178_v12, %v9177_v55 }
 0x3b9   :  { %v3666_v7 = vpop.permute.xlu0 %3665  ;;  %v3488_v4 = vadd.f32 %v9175_v0, %v2623_v32 }
 0x3ba   :  { %v3917_v35 = vsel %vm3913_vm2, %v9174_v10, %v3666_v7  ;;  %v3668_v53 = vpop.permute.xlu1 %3667  ;;  %3821 = vrot.lane.b32.xlu0 %v3483_v37, %s4940_s17  ;;  %v9182_v10 = vld [vmem:[#allocation119_spill] sm:$0xff] }
 0x3bb   :  { %4141 = vst [vmem:[%s8594_s3 + $0x18] sm:$0xff] %v3917_v35  ;;  %v3918_v14 = vsel %vm3913_vm2, %v3666_v7, %v3668_v53  ;;  %v9180_v7 = vld [vmem:[#allocation20_spill] sm:$0xff]  ;;  %v3489_v38 = vadd.f32 %v9182_v10, %v2624_v52 }
 0x3bc   :  { %4142 = vst [vmem:[%s8594_s3 + $0x20] sm:$0xff] %v3918_v14  ;;  %3823 = vrot.lane.b32.xlu1 %v3484_v20, %s4940_s17  ;;  %v2371_v25 = vsel %vm2119_vm0, %v9180_v7, %v9179_v8  ;;  %v9181_v20 = vld [vmem:[#allocation46_spill] sm:$0xff]  ;;  %v9184_v14 = vld [vmem:[#allocation40_spill] sm:$0xff] }
 0x3bd   :  { %v3682_v19 = vpop.permute.xlu0 %3681  ;;  %v3243_v35 = vsel %vm3176_vm1, %v9182_v10, %v9181_v20  ;;  %v2387_v16 = vsel %vm2119_vm0, %v9184_v14, %v9180_v7  ;;  %v2451_v10 = vsel %vm2119_vm0, %v7354_v49, %v7525_v47  ;;  %v9188_v49 = vld [vmem:[#allocation62_spill] sm:$0xff] }
 0x3be   :  { %v3924_v26 = vsel %vm3913_vm2, %v9176_v15, %v3682_v19  ;;  %v3684_v29 = vpop.permute.xlu1 %3683  ;;  %3825 = vrot.lane.b32.xlu0 %v3485_v46, %s4940_s17  ;;  %v9185_v46 = vld [vmem:[#allocation121_spill] sm:$0xff]  ;;  %v2627_v55 = vmul.f32 %v9178_v12, %v2387_v16 }
 0x3bf   :  { %4149 = vst [vmem:[%s8594_s3 + $0x50] sm:$0xff] %v3924_v26  ;;  %v3925_v28 = vsel %vm3913_vm2, %v3682_v19, %v3684_v29  ;;  %v3244_v0 = vsel %vm3176_vm1, %v9181_v20, %v9185_v46  ;;  %v2626_v19 = vmul.f32 %v9178_v12, %v2371_v25  ;;  %v9186_v15 = vld [vmem:[#allocation21_spill] sm:$0xff]  ;;  %v2435_v20 = vsel %vm2119_vm0, %v7525_v47, %v7504_v33 }
 0x3c0   :  { %4150 = vst [vmem:[%s8594_s3 + $0x58] sm:$0xff] %v3925_v28  ;;  %3827 = vrot.lane.b32.xlu1 %v3486_v24, %s4940_s17  ;;  %v2403_v26 = vsel %vm2119_vm0, %v9186_v15, %v9184_v14  ;;  %v9187_v28 = vld [vmem:[#allocation120_spill] sm:$0xff]  ;;  %v2419_v52 = vsel %vm2119_vm0, %v7504_v33, %v9186_v15  ;;  %v3248_v33 = vsel %vm3176_vm1, %v7573_v34, %v9188_v49  ;;  %v9191_v15 = vld [vmem:[#allocation45_spill] sm:$0xff] }
 0x3c1   :  { %v3670_v50 = vpop.permute.xlu0 %3669 }
 0x3c2   :  { %v3919_v37 = vsel %vm3913_vm2, %v3668_v53, %v3670_v50  ;;  %v3672_v58 = vpop.permute.xlu1 %3671  ;;  %3829 = vrot.lane.b32.xlu0 %v3487_v17, %s4940_s17  ;;  %v9183_v53 = vld [vmem:[#allocation58_spill] sm:$0xff]  ;;  %v3245_v17 = vsel %vm3176_vm1, %v9185_v46, %v9187_v28 }
 0x3c3   :  { %4143 = vst [vmem:[%s8594_s3 + $0x28] sm:$0xff] %v3919_v37  ;;  %v3920_v44 = vsel %vm3913_vm2, %v3670_v50, %v3672_v58  ;;  %v2625_v56 = vmul.f32 %v9178_v12, %v9183_v53  ;;  %v2628_v58 = vmul.f32 %v9178_v12, %v2403_v26  ;;  %v3492_v8 = vadd.f32 %v3245_v17, %v2627_v55  ;;  %v9192_v26 = vld [vmem:[#allocation52_spill] sm:$0xff]  ;;  %v9193_v17 = vld [vmem:[#allocation126_spill] sm:$0xff] }
 0x3c4   :  { %4145 = vst.msk [vmem:[%s8594_s3 + $0x30] sm:$0xff] %vm4144_vm3, %v3920_v44  ;;  %3831 = vrot.lane.b32.xlu1 %v3488_v4, %s4940_s17  ;;  %v3246_v4 = vsel %vm3176_vm1, %v9187_v28, %v7556_v2  ;;  %v2629_v44 = vmul.f32 %v9178_v12, %v2419_v52  ;;  %v2631_v53 = vmul.f32 %v9178_v12, %v2451_v10 }
 0x3c5   :  { %v3686_v51 = vpop.permute.xlu0 %3685  ;;  %v3490_v13 = vadd.f32 %v3243_v35, %v2625_v56  ;;  %v3247_v35 = vsel %vm3176_vm1, %v7556_v2, %v7573_v34  ;;  %v2630_v2 = vmul.f32 %v9178_v12, %v2435_v20  ;;  %v9189_v12 = vld [vmem:[#allocation79_spill] sm:$0xff]  ;;  %v2372_v28 = vsel %vm2119_vm0, %v9192_v26, %v9191_v15 }
 0x3c6   :  { %v3926_v32 = vsel %vm3913_vm2, %v3684_v29, %v3686_v51  ;;  %v3688_v24 = vpop.permute.xlu1 %3687  ;;  %3833 = vrot.lane.b32.xlu0 %v3489_v38, %s4940_s17  ;;  %v3491_v29 = vadd.f32 %v3244_v0, %v2626_v19  ;;  %v3493_v38 = vadd.f32 %v3246_v4, %v2628_v58  ;;  %v3494_v56 = vadd.f32 %v3247_v35, %v2629_v44  ;;  %v9198_v44 = vld [vmem:[#allocation124_spill] sm:$0xff] }
 0x3c7   :  { %4151 = vst [vmem:[%s8594_s3 + $0x60] sm:$0xff] %v3926_v32  ;;  %v3927_v50 = vsel %vm3913_vm2, %v3686_v51, %v3688_v24  ;;  %v3495_v0 = vadd.f32 %v3248_v33, %v2630_v2  ;;  %v9190_v51 = vld [vmem:[#allocation13_spill] sm:$0xff] }
 0x3c8   :  { %4152 = vst.msk [vmem:[%s8594_s3 + $0x68] sm:$0xff] %vm4144_vm3, %v3927_v50  ;;  %3835 = vrot.lane.b32.xlu1 %v3490_v13, %s4940_s17  ;;  %v2632_v19 = vmul.f32 %v9190_v51, %v9189_v12  ;;  %v3496_v13 = vadd.f32 %v9188_v49, %v2631_v53  ;;  %v9194_v50 = vld [vmem:[#allocation30_spill] sm:$0xff]  ;;  %v2634_v20 = vmul.f32 %v9190_v51, %v2372_v28  ;;  %v9199_v49 = vld [vmem:[#allocation127_spill] sm:$0xff] }
 0x3c9   :  { %v3698_v37 = vpop.permute.xlu0 %3697  ;;  %v3249_v55 = vsel %vm3176_vm1, %v9194_v50, %v9193_v17 }
 0x3ca   :  { %v3931_v7 = vsel %vm3913_vm2, %v7741_v42, %v3698_v37  ;;  %v3700_v25 = vpop.permute.xlu1 %3699  ;;  %3837 = vrot.lane.b32.xlu0 %v3491_v29, %s4940_s17  ;;  %v3497_v52 = vadd.f32 %v9194_v50, %v2632_v19  ;;  %v2436_v19 = vsel %vm2119_vm0, %v7601_v31, %v7593_v36 }
 0x3cb   :  { %4156 = vst [vmem:[%s8594_s3 + $0x88] sm:$0xff] %v3931_v7  ;;  %v3932_v42 = vsel %vm3913_vm2, %v3698_v37, %v3700_v25  ;;  %v9196_v37 = vld [vmem:[#allocation48_spill] sm:$0xff] }
 0x3cc   :  { %4157 = vst [vmem:[%s8594_s3 + $0x90] sm:$0xff] %v3932_v42  ;;  %3839 = vrot.lane.b32.xlu1 %v3492_v8, %s4940_s17  ;;  %v2388_v58 = vsel %vm2119_vm0, %v9196_v37, %v9192_v26  ;;  %v9197_v8 = vld [vmem:[#allocation51_spill] sm:$0xff] }
 0x3cd   :  { %v3702_v47 = vpop.permute.xlu0 %3701  ;;  %v3250_v7 = vsel %vm3176_vm1, %v9193_v17, %v9197_v8  ;;  %v3251_v33 = vsel %vm3176_vm1, %v9197_v8, %v9199_v49  ;;  %v2635_v2 = vmul.f32 %v9190_v51, %v2388_v58  ;;  %v9202_v58 = vld [vmem:[#allocation122_spill] sm:$0xff]  ;;  %v9203_v8 = vld [vmem:[#allocation49_spill] sm:$0xff] }
 0x3ce   :  { %v3933_v14 = vsel %vm3913_vm2, %v3700_v25, %v3702_v47  ;;  %v3704_v16 = vpop.permute.xlu1 %3703  ;;  %3841 = vrot.lane.b32.xlu0 %v3493_v38, %s4940_s17  ;;  %v2404_v38 = vsel %vm2119_vm0, %v9198_v44, %v9196_v37  ;;  %v3499_v53 = vadd.f32 %v3250_v7, %v2634_v20  ;;  %v2373_v7 = vsel %vm2119_vm0, %v9203_v8, %v9202_v58  ;;  %v9205_v20 = vld [vmem:[#allocation31_spill] sm:$0xff] }
 0x3cf   :  { %4158 = vst [vmem:[%s8594_s3 + $0x98] sm:$0xff] %v3933_v14  ;;  %v3934_v46 = vsel %vm3913_vm2, %v3702_v47, %v3704_v16  ;;  %v3252_v14 = vsel %vm3176_vm1, %v9199_v49, %v7625_v63  ;;  %v9208_v49 = vld [vmem:[#allocation29_spill] sm:$0xff] }
 0x3d0   :  { %4159 = vst.msk [vmem:[%s8594_s3 + $0xa0] sm:$0xff] %vm4144_vm3, %v3934_v46  ;;  %3843 = vrot.lane.b32.xlu1 %v3494_v56, %s4940_s17  ;;  %v2420_v56 = vsel %vm2119_vm0, %v7593_v36, %v9198_v44  ;;  %v2636_v46 = vmul.f32 %v9190_v51, %v2404_v38  ;;  %v9207_v44 = vld [vmem:[#allocation123_spill] sm:$0xff] }
 0x3d1   :  { %v3714_v34 = vpop.permute.xlu0 %3713  ;;  %v2389_v38 = vsel %vm2119_vm0, %v9207_v44, %v9203_v8 }
 0x3d2   :  { %v3938_v32 = vsel %vm3913_vm2, %v7779_v41, %v3714_v34  ;;  %v3716_v24 = vpop.permute.xlu1 %3715  ;;  %3845 = vrot.lane.b32.xlu0 %v3495_v0, %s4940_s17  ;;  %v9195_v41 = vld [vmem:[#allocation66_spill] sm:$0xff]  ;;  %v3500_v0 = vadd.f32 %v3251_v33, %v2635_v2  ;;  %v3501_v15 = vadd.f32 %v3252_v14, %v2636_v46 }
 0x3d3   :  { %4163 = vst [vmem:[%s8594_s3 + $0xc0] sm:$0xff] %v3938_v32  ;;  %v3939_v29 = vsel %vm3913_vm2, %v3714_v34, %v3716_v24  ;;  %v2633_v4 = vmul.f32 %v9190_v51, %v9195_v41  ;;  %v3253_v32 = vsel %vm3176_vm1, %v7625_v63, %v7628_v27 }
 0x3d4   :  { %4164 = vst [vmem:[%s8594_s3 + $0xc8] sm:$0xff] %v3939_v29  ;;  %3847 = vrot.lane.b32.xlu1 %v3496_v13, %s4940_s17  ;;  %v2452_v13 = vsel %vm2119_vm0, %v7462_v6, %v7601_v31  ;;  %v3254_v6 = vsel %vm3176_vm1, %v7628_v27, %v7386_v5  ;;  %v2638_v31 = vmul.f32 %v9190_v51, %v2436_v19  ;;  %v9201_v29 = vld [vmem:[#allocation16_spill] sm:$0xff] }
 0x3d5   :  { %v3718_v25 = vpop.permute.xlu0 %3717  ;;  %v3498_v10 = vadd.f32 %v3249_v55, %v2633_v4  ;;  %v2639_v63 = vmul.f32 %v9190_v51, %v2452_v13  ;;  %v2642_v2 = vmul.f32 %v9201_v29, %v2373_v7  ;;  %v2643_v19 = vmul.f32 %v9201_v29, %v2389_v38 }
 0x3d6   :  { %v3940_v35 = vsel %vm3913_vm2, %v3716_v24, %v3718_v25  ;;  %v3720_v42 = vpop.permute.xlu1 %3719  ;;  %3849 = vrot.lane.b32.xlu0 %v3497_v52, %s4940_s17  ;;  %v2637_v24 = vmul.f32 %v9190_v51, %v2420_v56  ;;  %v3503_v55 = vadd.f32 %v3254_v6, %v2638_v31  ;;  %v9200_v51 = vld [vmem:[#allocation80_spill] sm:$0xff]  ;;  %v2437_v31 = vsel %vm2119_vm0, %v7606_v11, %v7597_v60 }
 0x3d7   :  { %4165 = vst [vmem:[%s8594_s3 + $0xd0] sm:$0xff] %v3940_v35  ;;  %v3941_v47 = vsel %vm3913_vm2, %v3718_v25, %v3720_v42  ;;  %v2640_v52 = vmul.f32 %v9201_v29, %v9200_v51  ;;  %v3504_v41 = vadd.f32 %v7386_v5, %v2639_v63  ;;  %v9204_v25 = vld [vmem:[#allocation28_spill] sm:$0xff]  ;;  %v2453_v63 = vsel %vm2119_vm0, %v7487_v21, %v7606_v11 }
 0x3d8   :  { %4166 = vst.msk [vmem:[%s8594_s3 + $0xd8] sm:$0xff] %vm4144_vm3, %v3941_v47  ;;  %3851 = vrot.lane.b32.xlu1 %v3498_v10, %s4940_s17  ;;  %v3502_v26 = vadd.f32 %v3253_v32, %v2637_v24  ;;  %v3255_v10 = vsel %vm3176_vm1, %v9205_v20, %v9204_v25  ;;  %v3256_v33 = vsel %vm3176_vm1, %v9204_v25, %v9208_v49  ;;  %v9213_v25 = vld [vmem:[#allocation129_spill] sm:$0xff] }
 0x3d9   :  { %v3730_v16 = vpop.permute.xlu0 %3729  ;;  %v3505_v35 = vadd.f32 %v9205_v20, %v2640_v52  ;;  %v3507_v13 = vadd.f32 %v3256_v33, %v2642_v2  ;;  %v2646_v11 = vmul.f32 %v9201_v29, %v2437_v31  ;;  %v9214_v20 = vld [vmem:[#allocation132_spill] sm:$0xff] }
 0x3da   :  { %v3945_v34 = vsel %vm3913_vm2, %v7827_v54, %v3730_v16  ;;  %v3732_v12 = vpop.permute.xlu1 %3731  ;;  %3853 = vrot.lane.b32.xlu0 %v3499_v53, %s4940_s17 }
 0x3db   :  { %4170 = vst [vmem:[%s8594_s3 + $0xf8] sm:$0xff] %v3945_v34  ;;  %v3946_v54 = vsel %vm3913_vm2, %v3730_v16, %v3732_v12  ;;  %v9209_v16 = vld [vmem:[#allocation125_spill] sm:$0xff] }
 0x3dc   :  { %4171 = vst [vmem:[%s8594_s3 + $0x100] sm:$0xff] %v3946_v54  ;;  %3855 = vrot.lane.b32.xlu1 %v3500_v0, %s4940_s17  ;;  %v2405_v46 = vsel %vm2119_vm0, %v9209_v16, %v9207_v44  ;;  %v9210_v0 = vld [vmem:[#allocation128_spill] sm:$0xff]  ;;  %v2421_v32 = vsel %vm2119_vm0, %v7597_v60, %v9209_v16  ;;  %v3260_v60 = vsel %vm3176_vm1, %v7645_v18, %v7390_v43  ;;  %v9217_v44 = vld [vmem:[#allocation69_spill] sm:$0xff] }
 0x3dd   :  { %v3734_v36 = vpop.permute.xlu0 %3733  ;;  %v3257_v34 = vsel %vm3176_vm1, %v9208_v49, %v9210_v0  ;;  %v3258_v54 = vsel %vm3176_vm1, %v9210_v0, %v7648_v9  ;;  %v9218_v49 = vld [vmem:[#allocation53_spill] sm:$0xff]  ;;  %v9220_v0 = vld [vmem:[#allocation134_spill] sm:$0xff] }
 0x3de   :  { %v3947_v28 = vsel %vm3913_vm2, %v3732_v12, %v3734_v36  ;;  %v3736_v17 = vpop.permute.xlu1 %3735  ;;  %3857 = vrot.lane.b32.xlu0 %v3501_v15, %s4940_s17  ;;  %v2644_v15 = vmul.f32 %v9201_v29, %v2405_v46  ;;  %v3508_v6 = vadd.f32 %v3257_v34, %v2643_v19  ;;  %v2390_v33 = vsel %vm2119_vm0, %v9218_v49, %v9214_v20 }
 0x3df   :  { %4172 = vst [vmem:[%s8594_s3 + $0x108] sm:$0xff] %v3947_v28  ;;  %v3948_v50 = vsel %vm3913_vm2, %v3734_v36, %v3736_v17  ;;  %v2645_v17 = vmul.f32 %v9201_v29, %v2421_v32  ;;  %v2406_v34 = vsel %vm2119_vm0, %v9220_v0, %v9218_v49 }
 0x3e0   :  { %4173 = vst.msk [vmem:[%s8594_s3 + $0x110] sm:$0xff] %vm4144_vm3, %v3948_v50  ;;  %3859 = vrot.lane.b32.xlu1 %v3502_v26, %s4940_s17  ;;  %v3259_v26 = vsel %vm3176_vm1, %v7648_v9, %v7645_v18  ;;  %v3509_v50 = vadd.f32 %v3258_v54, %v2644_v15  ;;  %v2647_v9 = vmul.f32 %v9201_v29, %v2453_v63 }
 0x3e1   :  { %v3746_v27 = vpop.permute.xlu0 %3745 }
 0x3e2   :  { %v3952_v4 = vsel %vm3913_vm2, %v7865_v30, %v3746_v27  ;;  %v3748_v37 = vpop.permute.xlu1 %3747  ;;  %3861 = vrot.lane.b32.xlu0 %v3503_v55, %s4940_s17  ;;  %v9206_v30 = vld [vmem:[#allocation148_spill] sm:$0xff]  ;;  %v3510_v55 = vadd.f32 %v3259_v26, %v2645_v17  ;;  %v3512_v58 = vadd.f32 %v7390_v43, %v2647_v9  ;;  %v2438_v26 = vsel %vm2119_vm0, %v7673_v39, %v7665_v23 }
 0x3e3   :  { %4177 = vst [vmem:[%s8594_s3 + $0x130] sm:$0xff] %v3952_v4  ;;  %v3953_v5 = vsel %vm3913_vm2, %v3746_v27, %v3748_v37  ;;  %v2641_v42 = vmul.f32 %v9201_v29, %v9206_v30  ;;  %v9211_v29 = vld [vmem:[#allocation83_spill] sm:$0xff]  ;;  %v3265_v17 = vsel %vm3176_vm1, %v7697_v57, %v7700_v45 }
 0x3e4   :  { %4178 = vst [vmem:[%s8594_s3 + $0x138] sm:$0xff] %v3953_v5  ;;  %3863 = vrot.lane.b32.xlu1 %v3504_v41, %s4940_s17  ;;  %v3511_v41 = vadd.f32 %v3260_v60, %v2646_v11  ;;  %v9212_v4 = vld [vmem:[#allocation15_spill] sm:$0xff]  ;;  %v9215_v5 = vld [vmem:[#allocation137_spill] sm:$0xff] }
 0x3e5   :  { %v3750_v47 = vpop.permute.xlu0 %3749  ;;  %v3506_v53 = vadd.f32 %v3255_v10, %v2641_v42  ;;  %v2374_v10 = vsel %vm2119_vm0, %v9214_v20, %v9213_v25  ;;  %v2649_v38 = vmul.f32 %v9212_v4, %v9217_v44  ;;  %v2651_v32 = vmul.f32 %v9212_v4, %v2390_v33  ;;  %v9226_v25 = vld [vmem:[#allocation32_spill] sm:$0xff]  ;;  %v9227_v20 = vld [vmem:[#allocation141_spill] sm:$0xff]  ;;  %v9230_v44 = vld [vmem:[#allocation143_spill] sm:$0xff] }
 0x3e6   :  { %v3954_v56 = vsel %vm3913_vm2, %v3748_v37, %v3750_v47  ;;  %v3752_v14 = vpop.permute.xlu1 %3751  ;;  %3865 = vrot.lane.b32.xlu0 %v3505_v35, %s4940_s17  ;;  %v2648_v37 = vmul.f32 %v9212_v4, %v9211_v29  ;;  %v9216_v35 = vld [vmem:[#allocation54_spill] sm:$0xff] }
 0x3e7   :  { %4179 = vst [vmem:[%s8594_s3 + $0x140] sm:$0xff] %v3954_v56  ;;  %v3955_v12 = vsel %vm3913_vm2, %v3750_v47, %v3752_v14  ;;  %v3261_v30 = vsel %vm3176_vm1, %v9216_v35, %v9215_v5  ;;  %v9219_v47 = vld [vmem:[#allocation139_spill] sm:$0xff]  ;;  %v2650_v56 = vmul.f32 %v9212_v4, %v2374_v10  ;;  %v3267_v10 = vsel %vm3176_vm1, %v9227_v20, %v9226_v25 }
 0x3e8   :  { %4180 = vst.msk [vmem:[%s8594_s3 + $0x148] sm:$0xff] %vm4144_vm3, %v3955_v12  ;;  %3867 = vrot.lane.b32.xlu1 %v3506_v53, %s4940_s17  ;;  %v3513_v43 = vadd.f32 %v9216_v35, %v2648_v37  ;;  %v3262_v2 = vsel %vm3176_vm1, %v9215_v5, %v9219_v47  ;;  %v3514_v14 = vadd.f32 %v3261_v30, %v2649_v38  ;;  %v9221_v12 = vld [vmem:[#allocation140_spill] sm:$0xff] }
 0x3e9   :  { %v3754_v24 = vpop.permute.xlu0 %3753  ;;  %v3263_v19 = vsel %vm3176_vm1, %v9219_v47, %v9221_v12  ;;  %v3515_v54 = vadd.f32 %v3262_v2, %v2650_v56  ;;  %v3264_v15 = vsel %vm3176_vm1, %v9221_v12, %v7697_v57  ;;  %v9228_v35 = vld [vmem:[#allocation72_spill] sm:$0xff]  ;;  %v3268_v38 = vsel %vm3176_vm1, %v9226_v25, %v9230_v44 }
 0x3ea   :  { %v3756_v36 = vpop.permute.xlu1 %3755  ;;  %3869 = vrot.lane.b32.xlu0 %v3507_v13, %s4940_s17  ;;  %v3516_v31 = vadd.f32 %v3263_v19, %v2651_v32  ;;  %v9231_v56 = vld [vmem:[#allocation136_spill] sm:$0xff] }
 0x3eb   :  { %v3956_v28 = vsel %vm3913_vm2, %v3754_v24, %v3756_v36  ;;  %v2422_v24 = vsel %vm2119_vm0, %v7665_v23, %v9220_v0  ;;  %v3266_v23 = vsel %vm3176_vm1, %v7700_v45, %v7351_v22  ;;  %v2423_v19 = vsel %vm2119_vm0, %v7669_v59, %v9231_v56 }
 0x3ec   :  { %4181 = vst [vmem:[%s8594_s3 + $0x150] sm:$0xff] %v3956_v28  ;;  %3871 = vrot.lane.b32.xlu1 %v3508_v6, %s4940_s17  ;;  %v2454_v28 = vsel %vm2119_vm0, %v7553_v62, %v7673_v39  ;;  %v2653_v60 = vmul.f32 %v9212_v4, %v2422_v24  ;;  %v2654_v39 = vmul.f32 %v9212_v4, %v2438_v26 }
 0x3ed   :  { %v3758_v21 = vpop.permute.xlu0 %3757  ;;  %v2655_v57 = vmul.f32 %v9212_v4, %v2454_v28 }
 0x3ee   :  { %v3957_v27 = vsel %vm3913_vm2, %v3756_v36, %v3758_v21  ;;  %v3760_v51 = vpop.permute.xlu1 %3759  ;;  %3873 = vrot.lane.b32.xlu0 %v3509_v50, %s4940_s17  ;;  %v2652_v36 = vmul.f32 %v9212_v4, %v2406_v34  ;;  %v3518_v11 = vadd.f32 %v3265_v17, %v2653_v60 }
 0x3ef   :  { %4182 = vst [vmem:[%s8594_s3 + $0x158] sm:$0xff] %v3957_v27  ;;  %v3958_v52 = vsel %vm3913_vm2, %v3758_v21, %v3760_v51  ;;  %v3520_v29 = vadd.f32 %v7351_v22, %v2655_v57 }
 0x3f0   :  { %4183 = vst [vmem:[%s8594_s3 + $0x160] sm:$0xff] %v3958_v52  ;;  %3875 = vrot.lane.b32.xlu1 %v3510_v55, %s4940_s17  ;;  %v3517_v21 = vadd.f32 %v3264_v15, %v2652_v36  ;;  %v9222_v52 = vld [vmem:[#allocation84_spill] sm:$0xff]  ;;  %v2455_v36 = vsel %vm2119_vm0, %v7576_v40, %v7678_v1 }
 0x3f1   :  { %v3762_v18 = vpop.permute.xlu0 %3761 }
 0x3f2   :  { %v3959_v8 = vsel %vm3913_vm2, %v3760_v51, %v3762_v18  ;;  %v3764_v7 = vpop.permute.xlu1 %3763  ;;  %3877 = vrot.lane.b32.xlu0 %v3511_v41, %s4940_s17  ;;  %v3519_v51 = vadd.f32 %v3266_v23, %v2654_v39  ;;  %v9223_v41 = vld [vmem:[#allocation18_spill] sm:$0xff] }
 0x3f3   :  { %4184 = vst [vmem:[%s8594_s3 + $0x168] sm:$0xff] %v3959_v8  ;;  %v3960_v42 = vsel %vm3913_vm2, %v3762_v18, %v3764_v7  ;;  %v2656_v18 = vmul.f32 %v9223_v41, %v9222_v52  ;;  %v9225_v8 = vld [vmem:[#allocation133_spill] sm:$0xff]  ;;  %v2657_v30 = vmul.f32 %v9223_v41, %v9228_v35  ;;  %v2661_v26 = vmul.f32 %v9223_v41, %v2423_v19 }
 0x3f4   :  { %4185 = vst [vmem:[%s8594_s3 + $0x170] sm:$0xff] %v3960_v42  ;;  %3879 = vrot.lane.b32.xlu1 %v3512_v58, %s4940_s17  ;;  %v9224_v58 = vld [vmem:[#allocation130_spill] sm:$0xff]  ;;  %v9229_v42 = vld [vmem:[#allocation131_spill] sm:$0xff] }
 0x3f5   :  { %v3766_v53 = vpop.permute.xlu0 %3765  ;;  %v3521_v22 = vadd.f32 %v9227_v20, %v2656_v18  ;;  %v3522_v47 = vadd.f32 %v3267_v10, %v2657_v30 }
 0x3f6   :  { %v3961_v16 = vsel %vm3913_vm2, %v3764_v7, %v3766_v53  ;;  %v3768_v46 = vpop.permute.xlu1 %3767  ;;  %3881 = vrot.lane.b32.xlu0 %v3513_v43, %s4940_s17  ;;  %v2375_v7 = vsel %vm2119_vm0, %v9225_v8, %v9224_v58  ;;  %v2391_v43 = vsel %vm2119_vm0, %v9229_v42, %v9225_v8 }
 0x3f7   :  { %4186 = vst [vmem:[%s8594_s3 + $0x178] sm:$0xff] %v3961_v16  ;;  %v3962_v13 = vsel %vm3913_vm2, %v3766_v53, %v3768_v46  ;;  %v2658_v33 = vmul.f32 %v9223_v41, %v2375_v7  ;;  %v9232_v16 = vld [vmem:[#allocation142_spill] sm:$0xff]  ;;  %v2659_v34 = vmul.f32 %v9223_v41, %v2391_v43 }
 0x3f8   :  { %4187 = vst.msk [vmem:[%s8594_s3 + $0x180] sm:$0xff] %vm4144_vm3, %v3962_v13  ;;  %3883 = vrot.lane.b32.xlu1 %v3514_v14, %s4940_s17  ;;  %v2407_v14 = vsel %vm2119_vm0, %v9231_v56, %v9229_v42  ;;  %v3269_v46 = vsel %vm3176_vm1, %v9230_v44, %v9232_v16  ;;  %v3270_v13 = vsel %vm3176_vm1, %v9232_v16, %v7720_v48 }
 0x3f9   :  { %v3770_v6 = vpop.permute.xlu0 %3769  ;;  %v3523_v12 = vadd.f32 %v3268_v38, %v2658_v33  ;;  %v3524_v24 = vadd.f32 %v3269_v46, %v2659_v34 }
 0x3fa   :  { %v3772_v63 = vpop.permute.xlu1 %3771  ;;  %3885 = vrot.lane.b32.xlu0 %v3515_v54, %s4940_s17  ;;  %v2660_v54 = vmul.f32 %v9223_v41, %v2407_v14 }
 0x3fb   :  { %v3963_v50 = vsel %vm3913_vm2, %v3770_v6, %v3772_v63  ;;  %v2439_v6 = vsel %vm2119_vm0, %v7678_v1, %v7669_v59  ;;  %v3272_v59 = vsel %vm3176_vm1, %v7717_v61, %v7372_v3 }
 0x3fc   :  { %4188 = vst [vmem:[%s8594_s3 + $0x188] sm:$0xff] %v3963_v50  ;;  %3887 = vrot.lane.b32.xlu1 %v3516_v31, %s4940_s17  ;;  %v3271_v31 = vsel %vm3176_vm1, %v7720_v48, %v7717_v61  ;;  %v3525_v28 = vadd.f32 %v3270_v13, %v2660_v54  ;;  %v2662_v1 = vmul.f32 %v9223_v41, %v2439_v6 }
 0x3fd   :  { %v3774_v62 = vpop.permute.xlu0 %3773  ;;  %v2663_v48 = vmul.f32 %v9223_v41, %v2455_v36  ;;  %v3526_v17 = vadd.f32 %v3271_v31, %v2661_v26 }
 0x3fe   :  { %v3964_v9 = vsel %vm3913_vm2, %v3772_v63, %v3774_v62  ;;  %v3776_v55 = vpop.permute.xlu1 %3775  ;;  %3889 = vrot.lane.b32.xlu0 %v3517_v21, %s4940_s17  ;;  %v3527_v23 = vadd.f32 %v3272_v59, %v2662_v1 }
 0x3ff   :  { %4189 = vst [vmem:[%s8594_s3 + $0x190] sm:$0xff] %v3964_v9  ;;  %v3965_v27 = vsel %vm3913_vm2, %v3774_v62, %v3776_v55  ;;  %v3528_v62 = vadd.f32 %v7372_v3, %v2663_v48 }
 0x400   :  { %4190 = vst [vmem:[%s8594_s3 + $0x198] sm:$0xff] %v3965_v27  ;;  %3891 = vrot.lane.b32.xlu1 %v3518_v11, %s4940_s17 }
 0x401   :  { %v3778_v45 = vpop.permute.xlu0 %3777 }
 0x402   :  { %v3966_v4 = vsel %vm3913_vm2, %v3776_v55, %v3778_v45  ;;  %v3780_v37 = vpop.permute.xlu1 %3779  ;;  %3893 = vrot.lane.b32.xlu0 %v3519_v51, %s4940_s17 }
 0x403   :  { %4191 = vst [vmem:[%s8594_s3 + $0x1a0] sm:$0xff] %v3966_v4  ;;  %v3967_v5 = vsel %vm3913_vm2, %v3778_v45, %v3780_v37 }
 0x404   :  { %4192 = vst [vmem:[%s8594_s3 + $0x1a8] sm:$0xff] %v3967_v5  ;;  %3895 = vrot.lane.b32.xlu1 %v3520_v29, %s4940_s17 }
 0x405   :  { %v3782_v49 = vpop.permute.xlu0 %3781 }
 0x406   :  { %v3968_v2 = vsel %vm3913_vm2, %v3780_v37, %v3782_v49  ;;  %v3784_v53 = vpop.permute.xlu1 %3783  ;;  %3897 = vrot.lane.b32.xlu0 %v3521_v22, %s4940_s17 }
 0x407   :  { %4193 = vst [vmem:[%s8594_s3 + $0x1b0] sm:$0xff] %v3968_v2  ;;  %v3969_v0 = vsel %vm3913_vm2, %v3782_v49, %v3784_v53 }
 0x408   :  { %4194 = vst.msk [vmem:[%s8594_s3 + $0x1b8] sm:$0xff] %vm4144_vm3, %v3969_v0  ;;  %3899 = vrot.lane.b32.xlu1 %v3522_v47, %s4940_s17 }
 0x409   :  { %v3786_v32 = vpop.permute.xlu0 %3785 }
 0x40a   :  { %v3788_v15 = vpop.permute.xlu1 %3787  ;;  %3901 = vrot.lane.b32.xlu0 %v3523_v12, %s4940_s17 }
 0x40b   :  { %v3970_v63 = vsel %vm3913_vm2, %v3786_v32, %v3788_v15 }
 0x40c   :  { %4195 = vst [vmem:[%s8594_s3 + $0x1c0] sm:$0xff] %v3970_v63  ;;  %3903 = vrot.lane.b32.xlu1 %v3524_v24, %s4940_s17 }
 0x40d   :  { %v3790_v40 = vpop.permute.xlu0 %3789 }
 0x40e   :  { %v3971_v50 = vsel %vm3913_vm2, %v3788_v15, %v3790_v40  ;;  %v3792_v60 = vpop.permute.xlu1 %3791  ;;  %3905 = vrot.lane.b32.xlu0 %v3525_v28, %s4940_s17 }
 0x40f   :  { %4196 = vst [vmem:[%s8594_s3 + $0x1c8] sm:$0xff] %v3971_v50  ;;  %v3972_v21 = vsel %vm3913_vm2, %v3790_v40, %v3792_v60 }
 0x410   :  { %4197 = vst [vmem:[%s8594_s3 + $0x1d0] sm:$0xff] %v3972_v21  ;;  %3907 = vrot.lane.b32.xlu1 %v3526_v17, %s4940_s17 }
 0x411   :  { %v3794_v61 = vpop.permute.xlu0 %3793 }
 0x412   :  { %v3973_v39 = vsel %vm3913_vm2, %v3792_v60, %v3794_v61  ;;  %v3796_v57 = vpop.permute.xlu1 %3795  ;;  %3909 = vrot.lane.b32.xlu0 %v3527_v23, %s4940_s17 }
 0x413   :  { %4198 = vst [vmem:[%s8594_s3 + $0x1d8] sm:$0xff] %v3973_v39  ;;  %v3974_v11 = vsel %vm3913_vm2, %v3794_v61, %v3796_v57 }
 0x414   :  { %4199 = vst [vmem:[%s8594_s3 + $0x1e0] sm:$0xff] %v3974_v11  ;;  %3911 = vrot.lane.b32.xlu1 %v3528_v62, %s4940_s17 }
 0x415   :  { %v3798_v9 = vpop.permute.xlu0 %3797 }
 0x416   :  { %v3975_v3 = vsel %vm3913_vm2, %v3796_v57, %v3798_v9  ;;  %v3800_v55 = vpop.permute.xlu1 %3799 }
 0x417   :  { %4200 = vst [vmem:[%s8594_s3 + $0x1e8] sm:$0xff] %v3975_v3  ;;  %v3976_v27 = vsel %vm3913_vm2, %v3798_v9, %v3800_v55 }
 0x418   :  { %4201 = vst.msk [vmem:[%s8594_s3 + $0x1f0] sm:$0xff] %vm4144_vm3, %v3976_v27 }
 0x419   :  { %v3802_v51 = vpop.permute.xlu0 %3801 }
 0x41a   :  { %v3804_v45 = vpop.permute.xlu1 %3803 }
 0x41b   :  { %v3977_v52 = vsel %vm3913_vm2, %v3802_v51, %v3804_v45 }
 0x41c   :  { %4202 = vst [vmem:[%s8594_s3 + $0x1f8] sm:$0xff] %v3977_v52 }
 0x41d   :  { %v3806_v41 = vpop.permute.xlu0 %3805 }
 0x41e   :  { %v3978_v18 = vsel %vm3913_vm2, %v3804_v45, %v3806_v41  ;;  %v3808_v29 = vpop.permute.xlu1 %3807 }
 0x41f   :  { %4203 = vst [vmem:[%s8594_s3 + $0x200] sm:$0xff] %v3978_v18  ;;  %v3979_v4 = vsel %vm3913_vm2, %v3806_v41, %v3808_v29 }
 0x420   :  { %4204 = vst [vmem:[%s8594_s3 + $0x208] sm:$0xff] %v3979_v4 }
 0x421   :  { %v3810_v37 = vpop.permute.xlu0 %3809 }
 0x422   :  { %v3980_v58 = vsel %vm3913_vm2, %v3808_v29, %v3810_v37  ;;  %v3812_v8 = vpop.permute.xlu1 %3811 }
 0x423   :  { %4205 = vst [vmem:[%s8594_s3 + $0x210] sm:$0xff] %v3980_v58  ;;  %v3981_v7 = vsel %vm3913_vm2, %v3810_v37, %v3812_v8 }
 0x424   :  { %4206 = vst [vmem:[%s8594_s3 + $0x218] sm:$0xff] %v3981_v7 }
 0x425   :  { %v3814_v25 = vpop.permute.xlu0 %3813 }
 0x426   :  { %v3982_v20 = vsel %vm3913_vm2, %v3812_v8, %v3814_v25  ;;  %v3816_v10 = vpop.permute.xlu1 %3815 }
 0x427   :  { %4207 = vst [vmem:[%s8594_s3 + $0x220] sm:$0xff] %v3982_v20  ;;  %v3983_v5 = vsel %vm3913_vm2, %v3814_v25, %v3816_v10 }
 0x428   :  { %4208 = vst.msk [vmem:[%s8594_s3 + $0x228] sm:$0xff] %vm4144_vm3, %v3983_v5 }
 0x429   :  { %v3818_v22 = vpop.permute.xlu0 %3817 }
 0x42a   :  { %v3820_v35 = vpop.permute.xlu1 %3819 }
 0x42b   :  { %v3984_v30 = vsel %vm3913_vm2, %v3818_v22, %v3820_v35 }
 0x42c   :  { %4209 = vst [vmem:[%s8594_s3 + $0x230] sm:$0xff] %v3984_v30 }
 0x42d   :  { %v3822_v42 = vpop.permute.xlu0 %3821 }
 0x42e   :  { %v3985_v43 = vsel %vm3913_vm2, %v3820_v35, %v3822_v42  ;;  %v3824_v44 = vpop.permute.xlu1 %3823 }
 0x42f   :  { %4210 = vst [vmem:[%s8594_s3 + $0x238] sm:$0xff] %v3985_v43  ;;  %v3986_v38 = vsel %vm3913_vm2, %v3822_v42, %v3824_v44 }
 0x430   :  { %4211 = vst [vmem:[%s8594_s3 + $0x240] sm:$0xff] %v3986_v38 }
 0x431   :  { %v3826_v49 = vpop.permute.xlu0 %3825 }
 0x432   :  { %v3987_v33 = vsel %vm3913_vm2, %v3824_v44, %v3826_v49  ;;  %v3828_v47 = vpop.permute.xlu1 %3827 }
 0x433   :  { %4212 = vst [vmem:[%s8594_s3 + $0x248] sm:$0xff] %v3987_v33  ;;  %v3988_v2 = vsel %vm3913_vm2, %v3826_v49, %v3828_v47 }
 0x434   :  { %4213 = vst [vmem:[%s8594_s3 + $0x250] sm:$0xff] %v3988_v2 }
 0x435   :  { %v3830_v53 = vpop.permute.xlu0 %3829 }
 0x436   :  { %v3989_v56 = vsel %vm3913_vm2, %v3828_v47, %v3830_v53  ;;  %v3832_v14 = vpop.permute.xlu1 %3831 }
 0x437   :  { %4214 = vst [vmem:[%s8594_s3 + $0x258] sm:$0xff] %v3989_v56  ;;  %v3990_v16 = vsel %vm3913_vm2, %v3830_v53, %v3832_v14 }
 0x438   :  { %4215 = vst.msk [vmem:[%s8594_s3 + $0x260] sm:$0xff] %vm4144_vm3, %v3990_v16 }
 0x439   :  { %v3834_v46 = vpop.permute.xlu0 %3833 }
 0x43a   :  { %v3836_v0 = vpop.permute.xlu1 %3835 }
 0x43b   :  { %v3991_v34 = vsel %vm3913_vm2, %v3834_v46, %v3836_v0 }
 0x43c   :  { %4216 = vst [vmem:[%s8594_s3 + $0x268] sm:$0xff] %v3991_v34 }
 0x43d   :  { %v3838_v12 = vpop.permute.xlu0 %3837 }
 0x43e   :  { %v3992_v19 = vsel %vm3913_vm2, %v3836_v0, %v3838_v12  ;;  %v3840_v13 = vpop.permute.xlu1 %3839 }
 0x43f   :  { %4217 = vst [vmem:[%s8594_s3 + $0x270] sm:$0xff] %v3992_v19  ;;  %v3993_v32 = vsel %vm3913_vm2, %v3838_v12, %v3840_v13 }
 0x440   :  { %4218 = vst [vmem:[%s8594_s3 + $0x278] sm:$0xff] %v3993_v32 }
 0x441   :  { %v3842_v54 = vpop.permute.xlu0 %3841 }
 0x442   :  { %v3994_v24 = vsel %vm3913_vm2, %v3840_v13, %v3842_v54  ;;  %v3844_v15 = vpop.permute.xlu1 %3843 }
 0x443   :  { %4219 = vst [vmem:[%s8594_s3 + $0x280] sm:$0xff] %v3994_v24  ;;  %v3995_v6 = vsel %vm3913_vm2, %v3842_v54, %v3844_v15 }
 0x444   :  { %4220 = vst [vmem:[%s8594_s3 + $0x288] sm:$0xff] %v3995_v6 }
 0x445   :  { %v3846_v36 = vpop.permute.xlu0 %3845 }
 0x446   :  { %v3996_v31 = vsel %vm3913_vm2, %v3844_v15, %v3846_v36  ;;  %v3848_v63 = vpop.permute.xlu1 %3847 }
 0x447   :  { %4221 = vst [vmem:[%s8594_s3 + $0x290] sm:$0xff] %v3996_v31  ;;  %v3997_v26 = vsel %vm3913_vm2, %v3846_v36, %v3848_v63 }
 0x448   :  { %4222 = vst.msk [vmem:[%s8594_s3 + $0x298] sm:$0xff] %vm4144_vm3, %v3997_v26 }
 0x449   :  { %v3850_v28 = vpop.permute.xlu0 %3849 }
 0x44a   :  { %v3852_v59 = vpop.permute.xlu1 %3851 }
 0x44b   :  { %v3998_v40 = vsel %vm3913_vm2, %v3850_v28, %v3852_v59 }
 0x44c   :  { %4223 = vst [vmem:[%s8594_s3 + $0x2a0] sm:$0xff] %v3998_v40 }
 0x44d   :  { %v3854_v1 = vpop.permute.xlu0 %3853 }
 0x44e   :  { %v3999_v48 = vsel %vm3913_vm2, %v3852_v59, %v3854_v1  ;;  %v3856_v17 = vpop.permute.xlu1 %3855 }
 0x44f   :  { %4224 = vst [vmem:[%s8594_s3 + $0x2a8] sm:$0xff] %v3999_v48  ;;  %v4000_v50 = vsel %vm3913_vm2, %v3854_v1, %v3856_v17 }
 0x450   :  { %4225 = vst [vmem:[%s8594_s3 + $0x2b0] sm:$0xff] %v4000_v50 }
 0x451   :  { %v3858_v60 = vpop.permute.xlu0 %3857 }
 0x452   :  { %v4001_v21 = vsel %vm3913_vm2, %v3856_v17, %v3858_v60  ;;  %v3860_v23 = vpop.permute.xlu1 %3859 }
 0x453   :  { %4226 = vst [vmem:[%s8594_s3 + $0x2b8] sm:$0xff] %v4001_v21  ;;  %v4002_v61 = vsel %vm3913_vm2, %v3858_v60, %v3860_v23 }
 0x454   :  { %4227 = vst [vmem:[%s8594_s3 + $0x2c0] sm:$0xff] %v4002_v61 }
 0x455   :  { %v3862_v62 = vpop.permute.xlu0 %3861 }
 0x456   :  { %v4003_v39 = vsel %vm3913_vm2, %v3860_v23, %v3862_v62  ;;  %v3864_v57 = vpop.permute.xlu1 %3863 }
 0x457   :  { %4228 = vst [vmem:[%s8594_s3 + $0x2c8] sm:$0xff] %v4003_v39  ;;  %v4004_v11 = vsel %vm3913_vm2, %v3862_v62, %v3864_v57 }
 0x458   :  { %4229 = vst.msk [vmem:[%s8594_s3 + $0x2d0] sm:$0xff] %vm4144_vm3, %v4004_v11 }
 0x459   :  { %v3866_v9 = vpop.permute.xlu0 %3865 }
 0x45a   :  { %v3868_v3 = vpop.permute.xlu1 %3867 }
 0x45b   :  { %v4005_v55 = vsel %vm3913_vm2, %v3866_v9, %v3868_v3 }
 0x45c   :  { %4230 = vst [vmem:[%s8594_s3 + $0x2d8] sm:$0xff] %v4005_v55 }
 0x45d   :  { %v3870_v27 = vpop.permute.xlu0 %3869 }
 0x45e   :  { %v4006_v51 = vsel %vm3913_vm2, %v3868_v3, %v3870_v27  ;;  %v3872_v45 = vpop.permute.xlu1 %3871 }
 0x45f   :  { %4231 = vst [vmem:[%s8594_s3 + $0x2e0] sm:$0xff] %v4006_v51  ;;  %v4007_v52 = vsel %vm3913_vm2, %v3870_v27, %v3872_v45 }
 0x460   :  { %4232 = vst [vmem:[%s8594_s3 + $0x2e8] sm:$0xff] %v4007_v52 }
 0x461   :  { %v3874_v41 = vpop.permute.xlu0 %3873 }
 0x462   :  { %v4008_v18 = vsel %vm3913_vm2, %v3872_v45, %v3874_v41  ;;  %v3876_v29 = vpop.permute.xlu1 %3875 }
 0x463   :  { %4233 = vst [vmem:[%s8594_s3 + $0x2f0] sm:$0xff] %v4008_v18  ;;  %v4009_v4 = vsel %vm3913_vm2, %v3874_v41, %v3876_v29 }
 0x464   :  { %4234 = vst [vmem:[%s8594_s3 + $0x2f8] sm:$0xff] %v4009_v4 }
 0x465   :  { %v3878_v37 = vpop.permute.xlu0 %3877 }
 0x466   :  { %v4010_v58 = vsel %vm3913_vm2, %v3876_v29, %v3878_v37  ;;  %v3880_v8 = vpop.permute.xlu1 %3879 }
 0x467   :  { %4235 = vst [vmem:[%s8594_s3 + $0x300] sm:$0xff] %v4010_v58  ;;  %v4011_v7 = vsel %vm3913_vm2, %v3878_v37, %v3880_v8 }
 0x468   :  { %4236 = vst.msk [vmem:[%s8594_s3 + $0x308] sm:$0xff] %vm4144_vm3, %v4011_v7 }
 0x469   :  { %v3882_v25 = vpop.permute.xlu0 %3881 }
 0x46a   :  { %v3884_v20 = vpop.permute.xlu1 %3883 }
 0x46b   :  { %v4012_v10 = vsel %vm3913_vm2, %v3882_v25, %v3884_v20 }
 0x46c   :  { %4237 = vst [vmem:[%s8594_s3 + $0x310] sm:$0xff] %v4012_v10 }
 0x46d   :  { %v3886_v5 = vpop.permute.xlu0 %3885 }
 0x46e   :  { %v4013_v22 = vsel %vm3913_vm2, %v3884_v20, %v3886_v5  ;;  %v3888_v35 = vpop.permute.xlu1 %3887 }
 0x46f   :  { %4238 = vst [vmem:[%s8594_s3 + $0x318] sm:$0xff] %v4013_v22  ;;  %v4014_v30 = vsel %vm3913_vm2, %v3886_v5, %v3888_v35 }
 0x470   :  { %4239 = vst [vmem:[%s8594_s3 + $0x320] sm:$0xff] %v4014_v30 }
 0x471   :  { %v3890_v42 = vpop.permute.xlu0 %3889 }
 0x472   :  { %v4015_v43 = vsel %vm3913_vm2, %v3888_v35, %v3890_v42  ;;  %v3892_v44 = vpop.permute.xlu1 %3891 }
 0x473   :  { %4240 = vst [vmem:[%s8594_s3 + $0x328] sm:$0xff] %v4015_v43  ;;  %v4016_v38 = vsel %vm3913_vm2, %v3890_v42, %v3892_v44 }
 0x474   :  { %4241 = vst [vmem:[%s8594_s3 + $0x330] sm:$0xff] %v4016_v38 }
 0x475   :  { %v3894_v49 = vpop.permute.xlu0 %3893 }
 0x476   :  { %v4017_v33 = vsel %vm3913_vm2, %v3892_v44, %v3894_v49  ;;  %v3896_v47 = vpop.permute.xlu1 %3895 }
 0x477   :  { %4242 = vst [vmem:[%s8594_s3 + $0x338] sm:$0xff] %v4017_v33  ;;  %v4018_v2 = vsel %vm3913_vm2, %v3894_v49, %v3896_v47 }
 0x478   :  { %4243 = vst.msk [vmem:[%s8594_s3 + $0x340] sm:$0xff] %vm4144_vm3, %v4018_v2 }
 0x479   :  { %v3898_v53 = vpop.permute.xlu0 %3897 }
 0x47a   :  { %v3900_v56 = vpop.permute.xlu1 %3899 }
 0x47b   :  { %v4019_v14 = vsel %vm3913_vm2, %v3898_v53, %v3900_v56 }
 0x47c   :  { %4244 = vst [vmem:[%s8594_s3 + $0x348] sm:$0xff] %v4019_v14 }
 0x47d   :  { %v3902_v16 = vpop.permute.xlu0 %3901 }
 0x47e   :  { %v4020_v46 = vsel %vm3913_vm2, %v3900_v56, %v3902_v16  ;;  %v3904_v0 = vpop.permute.xlu1 %3903 }
 0x47f   :  { %4245 = vst [vmem:[%s8594_s3 + $0x350] sm:$0xff] %v4020_v46  ;;  %v4021_v34 = vsel %vm3913_vm2, %v3902_v16, %v3904_v0 }
 0x480   :  { %4246 = vst [vmem:[%s8594_s3 + $0x358] sm:$0xff] %v4021_v34 }
 0x481   :  { %v3906_v12 = vpop.permute.xlu0 %3905 }
 0x482   :  { %v4022_v19 = vsel %vm3913_vm2, %v3904_v0, %v3906_v12  ;;  %v3908_v13 = vpop.permute.xlu1 %3907 }
 0x483   :  { %4247 = vst [vmem:[%s8594_s3 + $0x360] sm:$0xff] %v4022_v19  ;;  %v4023_v32 = vsel %vm3913_vm2, %v3906_v12, %v3908_v13 }
 0x484   :  { %4248 = vst [vmem:[%s8594_s3 + $0x368] sm:$0xff] %v4023_v32 }
 0x485   :  { %v3910_v54 = vpop.permute.xlu0 %3909 }
 0x486   :  { %v4024_v24 = vsel %vm3913_vm2, %v3908_v13, %v3910_v54  ;;  %v3912_v15 = vpop.permute.xlu1 %3911 }
 0x487   :  { %4249 = vst [vmem:[%s8594_s3 + $0x370] sm:$0xff] %v4024_v24  ;;  %v4025_v6 = vsel %vm3913_vm2, %v3910_v54, %v3912_v15 }
 0x488   :  { %4250 = vst.msk [vmem:[%s8594_s3 + $0x378] sm:$0xff] %vm4144_vm3, %v4025_v6 }

</bundles_post_ra>
